<compile_context>
chip_gen: v7x
topology: tpu7x:2x2x1
jax: 0.10.0
libtpu: 0.0.40
codegen_flags: <defaults>
</compile_context>

<pallas_src>
import functools

import numpy as np
import jax
import jax.numpy as jnp
from jax.experimental import pallas as pl
from jax.experimental.pallas import tpu as pltpu


# ---------------------------------------------------------------------------
# Fused conv1+pool1+conv2+pool2 kernel
# ---------------------------------------------------------------------------
def _conv2x2_relu_pool_stage(src_ref, wflat_ref, b_ref, sce_ref, sco_ref,
                             dst_ref, *, cin, cout, pb):
    """Conv2d(k=2, stride=1, valid) + ReLU + MaxPool2d(2, 2) for one image.

    src_ref   : (Cin, H, W)            VMEM (W on lanes)
    wflat_ref : (Cout*Cin*4,)          SMEM, PyTorch OIHW flatten order
    b_ref     : (Cout,)                SMEM
    sce_ref   : (W-1, Wp)              0/1 matrix selecting conv cols 2j
    sco_ref   : (W-1, Wp)              0/1 matrix selecting conv cols 2j+1
    dst_ref   : (Cout, Hp, Wp)         VMEM, Hp=(H-1)//2, Wp=(W-1)//2
    pb        : pooled rows per band (static)
    """
    _, H, W = src_ref.shape
    _, Hp, Wp = dst_ref.shape
    Wc = W - 1
    n_bands = pl.cdiv(Hp, pb)

    # Row-pair selection matrices (pb, 2*pb): pick conv rows 2i / 2i+1.
    i_out = jax.lax.broadcasted_iota(jnp.int32, (pb, 2 * pb), 0)
    i_in = jax.lax.broadcasted_iota(jnp.int32, (pb, 2 * pb), 1)
    row_even = (i_in == 2 * i_out).astype(jnp.float32)
    row_odd = (i_in == 2 * i_out + 1).astype(jnp.float32)

    @pl.loop(0, n_bands)
    def _band(bidx):
        # Clamp the tail band; overlapping rows are recomputed/rewritten
        # with identical values (idempotent).
        i0 = jnp.minimum(bidx * pb, Hp - pb)   # first pooled row of the band
        r0 = 2 * i0                            # first conv row of the band

        @pl.loop(0, cout)
        def _per_cout(co):
            wbase = co * (cin * 4)
            # conv rows [r0, r0 + 2*pb) at full width, accumulated on the VPU
            # from 4*cin contiguous row-band taps (no concat, no strided loads).
            acc = jnp.zeros((2 * pb, Wc), jnp.float32)
            for ci in range(cin):
                for kh in range(2):
                    rows = src_ref[ci, pl.ds(r0 + kh, 2 * pb), :]   # (2*pb, W)
                    for kw in range(2):
                        w_s = wflat_ref[wbase + ci * 4 + kh * 2 + kw]
                        acc = acc + w_s * rows[:, kw:kw + Wc]
            band = jnp.maximum(acc + b_ref[co], 0.0)                # bias+ReLU

            # 2x2 max-pool via 0/1 selection matmuls on the idle MXU:
            #   rows: pick conv rows 2i / 2i+1, then max
            conv_even = jnp.dot(row_even, band,
                                preferred_element_type=jnp.float32)  # (pb, Wc)
            conv_odd = jnp.dot(row_odd, band,
                               preferred_element_type=jnp.float32)
            rmax = jnp.maximum(conv_even, conv_odd)
            #   cols: pick conv cols 2j / 2j+1, then max  -> lane-dense (pb, Wp)
            p_even = jnp.dot(rmax, sce_ref[...],
                             preferred_element_type=jnp.float32)
            p_odd = jnp.dot(rmax, sco_ref[...],
                            preferred_element_type=jnp.float32)
            dst_ref[co, pl.ds(i0, pb), :] = jnp.maximum(p_even, p_odd)


def _convs_kernel(w1f_ref, b1_ref, w2f_ref, b2_ref,          # scalar prefetch
                  x_ref, sc1e_ref, sc1o_ref, sc2e_ref, sc2o_ref,
                  o_ref, p1_ref,
                  *, cin1, cout1, cin2, cout2, pb1, pb2):
    # conv1 + relu + pool1 -> VMEM scratch (never written to HBM)
    _conv2x2_relu_pool_stage(x_ref, w1f_ref, b1_ref, sc1e_ref, sc1o_ref,
                             p1_ref, cin=cin1, cout=cout1, pb=pb1)
    # conv2 + relu + pool2 -> per-image output block
    _conv2x2_relu_pool_stage(p1_ref, w2f_ref, b2_ref, sc2e_ref, sc2o_ref,
                             o_ref, cin=cin2, cout=cout2, pb=pb2)


def _pool_col_selectors(wc, wp):
    s = np.arange(wc)[:, None]
    j = np.arange(wp)[None, :]
    return (jnp.asarray((s == 2 * j).astype(np.float32)),
            jnp.asarray((s == 2 * j + 1).astype(np.float32)))


def convs_forward(x, w1, b1, w2, b2, *, pooled_band_rows=16):
    """x: (N, Cin, H, W) NCHW.  w1/w2: PyTorch OIHW conv weights."""
    N, C0, H, W = x.shape
    C1 = w1.shape[0]
    C2 = w2.shape[0]
    Hp1, Wp1 = (H - 1) // 2, (W - 1) // 2
    Hp2, Wp2 = (Hp1 - 1) // 2, (Wp1 - 1) // 2
    pb1 = min(pooled_band_rows, Hp1)
    pb2 = min(pooled_band_rows, Hp2)
    sc1e, sc1o = _pool_col_selectors(W - 1, Wp1)
    sc2e, sc2o = _pool_col_selectors(Wp1 - 1, Wp2)

    kernel = functools.partial(_convs_kernel, cin1=C0, cout1=C1,
                               cin2=C1, cout2=C2, pb1=pb1, pb2=pb2)
    return pl.pallas_call(
        kernel,
        out_shape=jax.ShapeDtypeStruct((N, C2, Hp2, Wp2), jnp.float32),
        grid_spec=pltpu.PrefetchScalarGridSpec(
            # conv weights/biases are tiny -> scalar-prefetched into SMEM and
            # read as scalars inside the tap loop.
            num_scalar_prefetch=4,
            grid=(N,),
            in_specs=[
                pl.BlockSpec((None, C0, H, W), lambda n, *_: (n, 0, 0, 0)),
                pl.BlockSpec((W - 1, Wp1), lambda n, *_: (0, 0)),
                pl.BlockSpec((W - 1, Wp1), lambda n, *_: (0, 0)),
                pl.BlockSpec((Wp1 - 1, Wp2), lambda n, *_: (0, 0)),
                pl.BlockSpec((Wp1 - 1, Wp2), lambda n, *_: (0, 0)),
            ],
            out_specs=pl.BlockSpec((None, C2, Hp2, Wp2),
                                   lambda n, *_: (n, 0, 0, 0)),
            scratch_shapes=[pltpu.VMEM((C1, Hp1, Wp1), jnp.float32)],
        ),
        # Batch axis is independent -> sharded across v7x's two TensorCores.
        compiler_params=pltpu.CompilerParams(dimension_semantics=("parallel",)),
    )(w1.reshape(-1), b1, w2.reshape(-1), b2, x, sc1e, sc1o, sc2e, sc2o)


# ---------------------------------------------------------------------------
# fc1: K-streamed partial sums (dual-TensorCore split of the K range)
# ---------------------------------------------------------------------------
def _fc1_partial_kernel(x_ref, w_ref, hpart_ref, acc_ref):
    k = pl.program_id(1)

    @pl.when(k == 0)
    def _():
        acc_ref[...] = jnp.zeros_like(acc_ref)

    acc_ref[...] += jnp.dot(x_ref[...], w_ref[...],
                            preferred_element_type=jnp.float32)

    @pl.when(k == pl.num_programs(1) - 1)
    def _():
        hpart_ref[...] = acc_ref[...]


def _pick_k_tile(din, target):
    """Largest multiple of 128 <= target dividing din; else `target` (then the
    caller zero-pads din up to a multiple of it)."""
    if din <= target:
        return din
    for cand in range((target // 128) * 128, 0, -128):
        if din % cand == 0:
            return cand
    return max((target // 128) * 128, 128)


def fc1_partial_forward(flat, w1, *, k_tile_target=2048, k_splits=2):
    B, Din = flat.shape
    D1 = w1.shape[1]
    tk = _pick_k_tile(Din, k_tile_target)
    if Din % tk:
        din_p = pl.cdiv(Din, tk) * tk
        # TODO(synk): at production _to_linear=72600 (no 128-multiple factor),
        # do this zero-pad once at checkpoint-load time instead of per call.
        flat = jnp.pad(flat, ((0, 0), (0, din_p - Din)))
        w1 = jnp.pad(w1, ((0, din_p - Din), (0, 0)))
        Din = din_p
    nk = Din // tk
    nj = k_splits if (k_splits > 1 and nk % k_splits == 0) else 1
    nkj = nk // nj

    return pl.pallas_call(
        _fc1_partial_kernel,
        out_shape=jax.ShapeDtypeStruct((nj, B, D1), jnp.float32),
        grid_spec=pltpu.PrefetchScalarGridSpec(
            num_scalar_prefetch=0,
            grid=(nj, nkj),
            in_specs=[
                pl.BlockSpec((B, tk), lambda j, k: (0, j * nkj + k)),
                pl.BlockSpec((tk, D1), lambda j, k: (j * nkj + k, 0)),
            ],
            out_specs=pl.BlockSpec((None, B, D1), lambda j, k: (j, 0, 0)),
            scratch_shapes=[pltpu.VMEM((B, D1), jnp.float32)],
        ),
        compiler_params=pltpu.CompilerParams(
            dimension_semantics=("parallel", "arbitrary")),
    )(flat, w1)


# ---------------------------------------------------------------------------
# fc tail: sum K-split partials + b1 -> relu -> fc2 -> relu -> fc3
# ---------------------------------------------------------------------------
def _fc_tail_kernel(h1p_ref, b1_ref, w2_ref, b2_ref, w3_ref, b3_ref, o_ref):
    h1 = jnp.maximum(jnp.sum(h1p_ref[...], axis=0) + b1_ref[...], 0.0)
    h2 = jnp.maximum(
        jnp.dot(h1, w2_ref[...], preferred_element_type=jnp.float32)
        + b2_ref[...], 0.0)
    o_ref[...] = (jnp.dot(h2, w3_ref[...], preferred_element_type=jnp.float32)
                  + b3_ref[...])


def fc_tail_forward(h1_partials, b1, w2, b2, w3, b3):
    B = h1_partials.shape[1]
    D3 = w3.shape[1]
    return pl.pallas_call(
        _fc_tail_kernel,
        out_shape=jax.ShapeDtypeStruct((B, D3), jnp.float32),
    )(h1_partials, b1.reshape(1, -1), w2, b2.reshape(1, -1), w3,
      b3.reshape(1, -1))


# ---------------------------------------------------------------------------
# Full forward (NCHW throughout; no layout transposes anywhere)
# ---------------------------------------------------------------------------
def pigs_forward(x, params, *, fc1_k_tile=2048, fc1_k_splits=2):
    p2 = convs_forward(x, params["conv1_w"], params["conv1_b"],
                       params["conv2_w"], params["conv2_b"])
    # NCHW flatten == torch .view(-1, _to_linear) order -> fc1_w needs no
    # row permutation, only the usual (out,in)->(in,out) transpose at load.
    flat = p2.reshape(p2.shape[0], -1)
    # TODO(synk): nn.Dropout(0.3) is identity in eval mode; training-mode
    # dropout (pltpu.prng_* masking + 1/(1-p) scaling) intentionally omitted.
    h1p = fc1_partial_forward(flat, params["fc1_w"],
                              k_tile_target=fc1_k_tile, k_splits=fc1_k_splits)
    return fc_tail_forward(h1p, params["fc1_b"], params["fc2_w"],
                           params["fc2_b"], params["fc3_w"], params["fc3_b"])


# ---------------------------------------------------------------------------
# Pure-JAX reference (for correctness check)
# ---------------------------------------------------------------------------
def _reference_forward(x, params):
    hi = jax.lax.Precision.HIGHEST

    def conv_relu_pool(h, w, b):
        y = jax.lax.conv_general_dilated(
            h, w, window_strides=(1, 1), padding="VALID",
            dimension_numbers=("NCHW", "OIHW", "NCHW"), precision=hi)
        y = jnp.maximum(y + b.reshape(1, -1, 1, 1), 0.0)
        return jax.lax.reduce_window(y, -jnp.inf, jax.lax.max,
                                     (1, 1, 2, 2), (1, 1, 2, 2), "VALID")

    h = conv_relu_pool(x, params["conv1_w"], params["conv1_b"])
    h = conv_relu_pool(h, params["conv2_w"], params["conv2_b"])
    flat = h.reshape(h.shape[0], -1)
    h1 = jnp.maximum(
        jnp.dot(flat, params["fc1_w"], precision=hi) + params["fc1_b"], 0.0)
    h2 = jnp.maximum(
        jnp.dot(h1, params["fc2_w"], precision=hi) + params["fc2_b"], 0.0)
    return jnp.dot(h2, params["fc3_w"], precision=hi) + params["fc3_b"]


def _uniform(key, shape, fan_in):
    bound = 1.0 / float(np.sqrt(fan_in))
    return jax.random.uniform(key, shape, jnp.float32, -bound, bound)


if __name__ == "__main__":
    # Small stand-in for the 224x224 production image:
    # 3x36x36 -> conv1 12x35x35 -> pool 12x17x17 -> conv2 24x16x16 -> pool 24x8x8
    # => _to_linear = 1536   (production: 224 -> _to_linear = 72600).
    N, C0, H, W = 2, 3, 36, 36
    hp1 = (H - 1) // 2
    hp2 = (hp1 - 1) // 2
    to_linear = 24 * hp2 * hp2

    key = jax.random.PRNGKey(0)
    ks = jax.random.split(key, 11)
    params = {
        # Conv weights in PyTorch OIHW layout; fc weights are fc.weight.T
        # (shape (in, out)) -- no row permutation needed (NCHW flatten order).
        "conv1_w": _uniform(ks[0], (12, 3, 2, 2), 2 * 2 * 3),
        "conv1_b": _uniform(ks[1], (12,), 2 * 2 * 3),
        "conv2_w": _uniform(ks[2], (24, 12, 2, 2), 2 * 2 * 12),
        "conv2_b": _uniform(ks[3], (24,), 2 * 2 * 12),
        "fc1_w": _uniform(ks[4], (to_linear, 200), to_linear),
        "fc1_b": _uniform(ks[5], (200,), to_linear),
        "fc2_w": _uniform(ks[6], (200, 100), 200),
        "fc2_b": _uniform(ks[7], (100,), 200),
        "fc3_w": _uniform(ks[8], (100, 4), 100),
        "fc3_b": _uniform(ks[9], (4,), 100),
    }
    x = jax.random.normal(ks[10], (N, C0, H, W), jnp.float32)

    # fc1_k_tile=384 so the small test shape exercises the K-streaming grid
    # (nk=4) and the dual-TensorCore K-split (nj=2) path; production default
    # is 2048 (with zero-padding of Din=72600 to 73728).
    fwd = jax.jit(functools.partial(pigs_forward, fc1_k_tile=384,
                                    fc1_k_splits=2))
    out = jax.block_until_ready(fwd(x, params))

    assert out.shape == (N, 4), out.shape
    assert bool(jnp.all(jnp.isfinite(out)))

    ref = _reference_forward(x, params)
    np.testing.assert_allclose(np.asarray(out), np.asarray(ref),
                               rtol=1e-2, atol=1e-2)
    print("KERNEL_OK")
</pallas_src>

<mosaic_0001>
module attributes {stable_mosaic.version = 11 : i64} {
  func.func @_convs_kernel(%arg0: i32, %arg1: memref<144xf32, #tpu.memory_space<smem>>, %arg2: memref<12xf32, #tpu.memory_space<smem>>, %arg3: memref<1152xf32, #tpu.memory_space<smem>>, %arg4: memref<24xf32, #tpu.memory_space<smem>>, %arg5: memref<1x3x36x36xf32, #tpu.memory_space<vmem>>, %arg6: memref<35x17xf32, #tpu.memory_space<vmem>>, %arg7: memref<35x17xf32, #tpu.memory_space<vmem>>, %arg8: memref<16x8xf32, #tpu.memory_space<vmem>>, %arg9: memref<16x8xf32, #tpu.memory_space<vmem>>, %arg10: memref<1x24x8x8xf32, #tpu.memory_space<vmem>>, %arg11: memref<12x17x17xf32, #tpu.memory_space<vmem>>) attributes {dimension_semantics = [#tpu.dimension_semantics<parallel>], iteration_bounds = array<i64: 2>, scalar_prefetch = 4 : i64, scratch_operands = 1 : i64, tpu.core_type = #tpu.core_type<tc>, window_params = [{transform_indices = @transform_0, window_bounds = array<i64: 1, 3, 36, 36>}, {pipeline_mode = #tpu.pipeline_mode<synchronous>, transform_indices = @transform_1, window_bounds = array<i64: 35, 17>}, {pipeline_mode = #tpu.pipeline_mode<synchronous>, transform_indices = @transform_2, window_bounds = array<i64: 35, 17>}, {pipeline_mode = #tpu.pipeline_mode<synchronous>, transform_indices = @transform_3, window_bounds = array<i64: 16, 8>}, {pipeline_mode = #tpu.pipeline_mode<synchronous>, transform_indices = @transform_4, window_bounds = array<i64: 16, 8>}, {transform_indices = @transform_5, window_bounds = array<i64: 1, 24, 8, 8>}]} {
    %0 = tpu.iota {dimensions = array<i32: 0>} : vector<16x32xi32>
    %1 = tpu.iota {dimensions = array<i32: 1>} : vector<16x32xi32>
    %c2_i32 = arith.constant 2 : i32
    %2 = vector.broadcast %c2_i32 : i32 to vector<16x32xi32>
    %3 = arith.muli %2, %0 : vector<16x32xi32>
    %4 = arith.cmpi eq, %1, %3 : vector<16x32xi32>
    %5 = arith.extui %4 : vector<16x32xi1> to vector<16x32xi32>
    %6 = arith.sitofp %5 : vector<16x32xi32> to vector<16x32xf32>
    %c2_i32_0 = arith.constant 2 : i32
    %7 = vector.broadcast %c2_i32_0 : i32 to vector<16x32xi32>
    %8 = arith.muli %7, %0 : vector<16x32xi32>
    %c1_i32 = arith.constant 1 : i32
    %9 = vector.broadcast %c1_i32 : i32 to vector<16x32xi32>
    %10 = arith.addi %8, %9 : vector<16x32xi32>
    %11 = arith.cmpi eq, %1, %10 : vector<16x32xi32>
    %12 = arith.extui %11 : vector<16x32xi1> to vector<16x32xi32>
    %13 = arith.sitofp %12 : vector<16x32xi32> to vector<16x32xf32>
    %c0_i32 = arith.constant 0 : i32
    %c2_i32_1 = arith.constant 2 : i32
    %14 = arith.addi %c0_i32, %c2_i32_1 : i32
    %c1_i32_2 = arith.constant 1 : i32
    scf.for %arg12 = %c0_i32 to %14 step %c1_i32_2  : i32 {
      %c1_i32_16 = arith.constant 1 : i32
      %35 = arith.muli %arg12, %c1_i32_16 : i32
      %c0_i32_17 = arith.constant 0 : i32
      %36 = arith.addi %c0_i32_17, %35 : i32
      %c16_i32 = arith.constant 16 : i32
      %37 = arith.muli %36, %c16_i32 : i32
      %c1_i32_18 = arith.constant 1 : i32
      %38 = arith.minsi %37, %c1_i32_18 : i32
      %c2_i32_19 = arith.constant 2 : i32
      %39 = arith.muli %c2_i32_19, %38 : i32
      %c0_i32_20 = arith.constant 0 : i32
      %c12_i32 = arith.constant 12 : i32
      %40 = arith.addi %c0_i32_20, %c12_i32 : i32
      %c1_i32_21 = arith.constant 1 : i32
      scf.for %arg13 = %c0_i32_20 to %40 step %c1_i32_21  : i32 {
        %c1_i32_23 = arith.constant 1 : i32
        %41 = arith.muli %arg13, %c1_i32_23 : i32
        %c0_i32_24 = arith.constant 0 : i32
        %42 = arith.addi %c0_i32_24, %41 : i32
        %c12_i32_25 = arith.constant 12 : i32
        %43 = arith.muli %42, %c12_i32_25 : i32
        %cst = arith.constant 0.000000e+00 : f32
        %44 = vector.broadcast %cst : f32 to vector<32x35xf32>
        %c0_i32_26 = arith.constant 0 : i32
        %45 = arith.addi %39, %c0_i32_26 : i32
        %c0 = arith.constant 0 : index
        %c0_27 = arith.constant 0 : index
        %46 = arith.index_cast %45 : i32 to index
        %c0_28 = arith.constant 0 : index
        %47 = vector.load %arg5[%c0, %c0_27, %46, %c0_28] : memref<1x3x36x36xf32, #tpu.memory_space<vmem>>, vector<1x1x32x36xf32>
        %48 = vector.shape_cast %47 : vector<1x1x32x36xf32> to vector<32x36xf32>
        %c0_i32_29 = arith.constant 0 : i32
        %49 = arith.addi %43, %c0_i32_29 : i32
        %c0_i32_30 = arith.constant 0 : i32
        %50 = arith.addi %49, %c0_i32_30 : i32
        %c0_i32_31 = arith.constant 0 : i32
        %51 = arith.addi %50, %c0_i32_31 : i32
        %52 = arith.index_cast %51 : i32 to index
        %53 = memref.load %arg1[%52] : memref<144xf32, #tpu.memory_space<smem>>
        %54 = vector.extract_strided_slice %48 {offsets = [0, 0], sizes = [32, 35], strides = [1, 1]} : vector<32x36xf32> to vector<32x35xf32>
        %55 = vector.broadcast %53 : f32 to vector<32x35xf32>
        %56 = arith.mulf %55, %54 : vector<32x35xf32>
        %57 = arith.addf %44, %56 : vector<32x35xf32>
        %c0_i32_32 = arith.constant 0 : i32
        %58 = arith.addi %43, %c0_i32_32 : i32
        %c0_i32_33 = arith.constant 0 : i32
        %59 = arith.addi %58, %c0_i32_33 : i32
        %c1_i32_34 = arith.constant 1 : i32
        %60 = arith.addi %59, %c1_i32_34 : i32
        %61 = arith.index_cast %60 : i32 to index
        %62 = memref.load %arg1[%61] : memref<144xf32, #tpu.memory_space<smem>>
        %63 = vector.extract_strided_slice %48 {offsets = [0, 1], sizes = [32, 35], strides = [1, 1]} : vector<32x36xf32> to vector<32x35xf32>
        %64 = vector.broadcast %62 : f32 to vector<32x35xf32>
        %65 = arith.mulf %64, %63 : vector<32x35xf32>
        %66 = arith.addf %57, %65 : vector<32x35xf32>
        %c1_i32_35 = arith.constant 1 : i32
        %67 = arith.addi %39, %c1_i32_35 : i32
        %c0_36 = arith.constant 0 : index
        %c0_37 = arith.constant 0 : index
        %68 = arith.index_cast %67 : i32 to index
        %c0_38 = arith.constant 0 : index
        %69 = vector.load %arg5[%c0_36, %c0_37, %68, %c0_38] : memref<1x3x36x36xf32, #tpu.memory_space<vmem>>, vector<1x1x32x36xf32>
        %70 = vector.shape_cast %69 : vector<1x1x32x36xf32> to vector<32x36xf32>
        %c0_i32_39 = arith.constant 0 : i32
        %71 = arith.addi %43, %c0_i32_39 : i32
        %c2_i32_40 = arith.constant 2 : i32
        %72 = arith.addi %71, %c2_i32_40 : i32
        %c0_i32_41 = arith.constant 0 : i32
        %73 = arith.addi %72, %c0_i32_41 : i32
        %74 = arith.index_cast %73 : i32 to index
        %75 = memref.load %arg1[%74] : memref<144xf32, #tpu.memory_space<smem>>
        %76 = vector.extract_strided_slice %70 {offsets = [0, 0], sizes = [32, 35], strides = [1, 1]} : vector<32x36xf32> to vector<32x35xf32>
        %77 = vector.broadcast %75 : f32 to vector<32x35xf32>
        %78 = arith.mulf %77, %76 : vector<32x35xf32>
        %79 = arith.addf %66, %78 : vector<32x35xf32>
        %c0_i32_42 = arith.constant 0 : i32
        %80 = arith.addi %43, %c0_i32_42 : i32
        %c2_i32_43 = arith.constant 2 : i32
        %81 = arith.addi %80, %c2_i32_43 : i32
        %c1_i32_44 = arith.constant 1 : i32
        %82 = arith.addi %81, %c1_i32_44 : i32
        %83 = arith.index_cast %82 : i32 to index
        %84 = memref.load %arg1[%83] : memref<144xf32, #tpu.memory_space<smem>>
        %85 = vector.extract_strided_slice %70 {offsets = [0, 1], sizes = [32, 35], strides = [1, 1]} : vector<32x36xf32> to vector<32x35xf32>
        %86 = vector.broadcast %84 : f32 to vector<32x35xf32>
        %87 = arith.mulf %86, %85 : vector<32x35xf32>
        %88 = arith.addf %79, %87 : vector<32x35xf32>
        %c0_i32_45 = arith.constant 0 : i32
        %89 = arith.addi %39, %c0_i32_45 : i32
        %c0_46 = arith.constant 0 : index
        %c1 = arith.constant 1 : index
        %90 = arith.index_cast %89 : i32 to index
        %c0_47 = arith.constant 0 : index
        %91 = vector.load %arg5[%c0_46, %c1, %90, %c0_47] : memref<1x3x36x36xf32, #tpu.memory_space<vmem>>, vector<1x1x32x36xf32>
        %92 = vector.shape_cast %91 : vector<1x1x32x36xf32> to vector<32x36xf32>
        %c4_i32 = arith.constant 4 : i32
        %93 = arith.addi %43, %c4_i32 : i32
        %c0_i32_48 = arith.constant 0 : i32
        %94 = arith.addi %93, %c0_i32_48 : i32
        %c0_i32_49 = arith.constant 0 : i32
        %95 = arith.addi %94, %c0_i32_49 : i32
        %96 = arith.index_cast %95 : i32 to index
        %97 = memref.load %arg1[%96] : memref<144xf32, #tpu.memory_space<smem>>
        %98 = vector.extract_strided_slice %92 {offsets = [0, 0], sizes = [32, 35], strides = [1, 1]} : vector<32x36xf32> to vector<32x35xf32>
        %99 = vector.broadcast %97 : f32 to vector<32x35xf32>
        %100 = arith.mulf %99, %98 : vector<32x35xf32>
        %101 = arith.addf %88, %100 : vector<32x35xf32>
        %c4_i32_50 = arith.constant 4 : i32
        %102 = arith.addi %43, %c4_i32_50 : i32
        %c0_i32_51 = arith.constant 0 : i32
        %103 = arith.addi %102, %c0_i32_51 : i32
        %c1_i32_52 = arith.constant 1 : i32
        %104 = arith.addi %103, %c1_i32_52 : i32
        %105 = arith.index_cast %104 : i32 to index
        %106 = memref.load %arg1[%105] : memref<144xf32, #tpu.memory_space<smem>>
        %107 = vector.extract_strided_slice %92 {offsets = [0, 1], sizes = [32, 35], strides = [1, 1]} : vector<32x36xf32> to vector<32x35xf32>
        %108 = vector.broadcast %106 : f32 to vector<32x35xf32>
        %109 = arith.mulf %108, %107 : vector<32x35xf32>
        %110 = arith.addf %101, %109 : vector<32x35xf32>
        %c1_i32_53 = arith.constant 1 : i32
        %111 = arith.addi %39, %c1_i32_53 : i32
        %c0_54 = arith.constant 0 : index
        %c1_55 = arith.constant 1 : index
        %112 = arith.index_cast %111 : i32 to index
        %c0_56 = arith.constant 0 : index
        %113 = vector.load %arg5[%c0_54, %c1_55, %112, %c0_56] : memref<1x3x36x36xf32, #tpu.memory_space<vmem>>, vector<1x1x32x36xf32>
        %114 = vector.shape_cast %113 : vector<1x1x32x36xf32> to vector<32x36xf32>
        %c4_i32_57 = arith.constant 4 : i32
        %115 = arith.addi %43, %c4_i32_57 : i32
        %c2_i32_58 = arith.constant 2 : i32
        %116 = arith.addi %115, %c2_i32_58 : i32
        %c0_i32_59 = arith.constant 0 : i32
        %117 = arith.addi %116, %c0_i32_59 : i32
        %118 = arith.index_cast %117 : i32 to index
        %119 = memref.load %arg1[%118] : memref<144xf32, #tpu.memory_space<smem>>
        %120 = vector.extract_strided_slice %114 {offsets = [0, 0], sizes = [32, 35], strides = [1, 1]} : vector<32x36xf32> to vector<32x35xf32>
        %121 = vector.broadcast %119 : f32 to vector<32x35xf32>
        %122 = arith.mulf %121, %120 : vector<32x35xf32>
        %123 = arith.addf %110, %122 : vector<32x35xf32>
        %c4_i32_60 = arith.constant 4 : i32
        %124 = arith.addi %43, %c4_i32_60 : i32
        %c2_i32_61 = arith.constant 2 : i32
        %125 = arith.addi %124, %c2_i32_61 : i32
        %c1_i32_62 = arith.constant 1 : i32
        %126 = arith.addi %125, %c1_i32_62 : i32
        %127 = arith.index_cast %126 : i32 to index
        %128 = memref.load %arg1[%127] : memref<144xf32, #tpu.memory_space<smem>>
        %129 = vector.extract_strided_slice %114 {offsets = [0, 1], sizes = [32, 35], strides = [1, 1]} : vector<32x36xf32> to vector<32x35xf32>
        %130 = vector.broadcast %128 : f32 to vector<32x35xf32>
        %131 = arith.mulf %130, %129 : vector<32x35xf32>
        %132 = arith.addf %123, %131 : vector<32x35xf32>
        %c0_i32_63 = arith.constant 0 : i32
        %133 = arith.addi %39, %c0_i32_63 : i32
        %c0_64 = arith.constant 0 : index
        %c2 = arith.constant 2 : index
        %134 = arith.index_cast %133 : i32 to index
        %c0_65 = arith.constant 0 : index
        %135 = vector.load %arg5[%c0_64, %c2, %134, %c0_65] : memref<1x3x36x36xf32, #tpu.memory_space<vmem>>, vector<1x1x32x36xf32>
        %136 = vector.shape_cast %135 : vector<1x1x32x36xf32> to vector<32x36xf32>
        %c8_i32_66 = arith.constant 8 : i32
        %137 = arith.addi %43, %c8_i32_66 : i32
        %c0_i32_67 = arith.constant 0 : i32
        %138 = arith.addi %137, %c0_i32_67 : i32
        %c0_i32_68 = arith.constant 0 : i32
        %139 = arith.addi %138, %c0_i32_68 : i32
        %140 = arith.index_cast %139 : i32 to index
        %141 = memref.load %arg1[%140] : memref<144xf32, #tpu.memory_space<smem>>
        %142 = vector.extract_strided_slice %136 {offsets = [0, 0], sizes = [32, 35], strides = [1, 1]} : vector<32x36xf32> to vector<32x35xf32>
        %143 = vector.broadcast %141 : f32 to vector<32x35xf32>
        %144 = arith.mulf %143, %142 : vector<32x35xf32>
        %145 = arith.addf %132, %144 : vector<32x35xf32>
        %c8_i32_69 = arith.constant 8 : i32
        %146 = arith.addi %43, %c8_i32_69 : i32
        %c0_i32_70 = arith.constant 0 : i32
        %147 = arith.addi %146, %c0_i32_70 : i32
        %c1_i32_71 = arith.constant 1 : i32
        %148 = arith.addi %147, %c1_i32_71 : i32
        %149 = arith.index_cast %148 : i32 to index
        %150 = memref.load %arg1[%149] : memref<144xf32, #tpu.memory_space<smem>>
        %151 = vector.extract_strided_slice %136 {offsets = [0, 1], sizes = [32, 35], strides = [1, 1]} : vector<32x36xf32> to vector<32x35xf32>
        %152 = vector.broadcast %150 : f32 to vector<32x35xf32>
        %153 = arith.mulf %152, %151 : vector<32x35xf32>
        %154 = arith.addf %145, %153 : vector<32x35xf32>
        %c1_i32_72 = arith.constant 1 : i32
        %155 = arith.addi %39, %c1_i32_72 : i32
        %c0_73 = arith.constant 0 : index
        %c2_74 = arith.constant 2 : index
        %156 = arith.index_cast %155 : i32 to index
        %c0_75 = arith.constant 0 : index
        %157 = vector.load %arg5[%c0_73, %c2_74, %156, %c0_75] : memref<1x3x36x36xf32, #tpu.memory_space<vmem>>, vector<1x1x32x36xf32>
        %158 = vector.shape_cast %157 : vector<1x1x32x36xf32> to vector<32x36xf32>
        %c8_i32_76 = arith.constant 8 : i32
        %159 = arith.addi %43, %c8_i32_76 : i32
        %c2_i32_77 = arith.constant 2 : i32
        %160 = arith.addi %159, %c2_i32_77 : i32
        %c0_i32_78 = arith.constant 0 : i32
        %161 = arith.addi %160, %c0_i32_78 : i32
        %162 = arith.index_cast %161 : i32 to index
        %163 = memref.load %arg1[%162] : memref<144xf32, #tpu.memory_space<smem>>
        %164 = vector.extract_strided_slice %158 {offsets = [0, 0], sizes = [32, 35], strides = [1, 1]} : vector<32x36xf32> to vector<32x35xf32>
        %165 = vector.broadcast %163 : f32 to vector<32x35xf32>
        %166 = arith.mulf %165, %164 : vector<32x35xf32>
        %167 = arith.addf %154, %166 : vector<32x35xf32>
        %c8_i32_79 = arith.constant 8 : i32
        %168 = arith.addi %43, %c8_i32_79 : i32
        %c2_i32_80 = arith.constant 2 : i32
        %169 = arith.addi %168, %c2_i32_80 : i32
        %c1_i32_81 = arith.constant 1 : i32
        %170 = arith.addi %169, %c1_i32_81 : i32
        %171 = arith.index_cast %170 : i32 to index
        %172 = memref.load %arg1[%171] : memref<144xf32, #tpu.memory_space<smem>>
        %173 = vector.extract_strided_slice %158 {offsets = [0, 1], sizes = [32, 35], strides = [1, 1]} : vector<32x36xf32> to vector<32x35xf32>
        %174 = vector.broadcast %172 : f32 to vector<32x35xf32>
        %175 = arith.mulf %174, %173 : vector<32x35xf32>
        %176 = arith.addf %167, %175 : vector<32x35xf32>
        %177 = arith.index_cast %42 : i32 to index
        %178 = memref.load %arg2[%177] : memref<12xf32, #tpu.memory_space<smem>>
        %179 = vector.broadcast %178 : f32 to vector<32x35xf32>
        %180 = arith.addf %176, %179 : vector<32x35xf32>
        %cst_82 = arith.constant 0.000000e+00 : f32
        %181 = vector.broadcast %cst_82 : f32 to vector<32x35xf32>
        %182 = arith.maximumf %180, %181 : vector<32x35xf32>
        %cst_83 = arith.constant dense<0.000000e+00> : vector<16x35xf32>
        %183 = tpu.matmul %6, %182, %cst_83 {dimension_numbers = #tpu.dot_dimension_numbers<[1], [0], [0], [1], [0, 0, 1, 1], [], []>} : vector<16x32xf32>, vector<32x35xf32>, vector<16x35xf32> -> vector<16x35xf32>
        %cst_84 = arith.constant dense<0.000000e+00> : vector<16x35xf32>
        %184 = tpu.matmul %13, %182, %cst_84 {dimension_numbers = #tpu.dot_dimension_numbers<[1], [0], [0], [1], [0, 0, 1, 1], [], []>} : vector<16x32xf32>, vector<32x35xf32>, vector<16x35xf32> -> vector<16x35xf32>
        %185 = arith.maximumf %183, %184 : vector<16x35xf32>
        %c0_85 = arith.constant 0 : index
        %c0_86 = arith.constant 0 : index
        %186 = vector.load %arg6[%c0_85, %c0_86] : memref<35x17xf32, #tpu.memory_space<vmem>>, vector<35x17xf32>
        %cst_87 = arith.constant dense<0.000000e+00> : vector<16x17xf32>
        %187 = tpu.matmul %185, %186, %cst_87 {dimension_numbers = #tpu.dot_dimension_numbers<[1], [0], [0], [1], [0, 0, 1, 1], [], []>} : vector<16x35xf32>, vector<35x17xf32>, vector<16x17xf32> -> vector<16x17xf32>
        %c0_88 = arith.constant 0 : index
        %c0_89 = arith.constant 0 : index
        %188 = vector.load %arg7[%c0_88, %c0_89] : memref<35x17xf32, #tpu.memory_space<vmem>>, vector<35x17xf32>
        %cst_90 = arith.constant dense<0.000000e+00> : vector<16x17xf32>
        %189 = tpu.matmul %185, %188, %cst_90 {dimension_numbers = #tpu.dot_dimension_numbers<[1], [0], [0], [1], [0, 0, 1, 1], [], []>} : vector<16x35xf32>, vector<35x17xf32>, vector<16x17xf32> -> vector<16x17xf32>
        %190 = arith.maximumf %187, %189 : vector<16x17xf32>
        %191 = arith.index_cast %42 : i32 to index
        %192 = arith.index_cast %38 : i32 to index
        %c0_91 = arith.constant 0 : index
        %193 = vector.load %arg11[%191, %192, %c0_91] : memref<12x17x17xf32, #tpu.memory_space<vmem>>, vector<1x16x17xf32>
        %194 = vector.shape_cast %193 : vector<1x16x17xf32> to vector<16x17xf32>
        %195 = vector.shape_cast %190 : vector<16x17xf32> to vector<1x16x17xf32>
        tpu.vector_store %arg11[%191, %192, %c0_91], %195 {strides = array<i32>} : memref<12x17x17xf32, #tpu.memory_space<vmem>>, vector<1x16x17xf32>,
      }
      %c12_i32_22 = arith.constant 12 : i32
    }
    %c2_i32_3 = arith.constant 2 : i32
    %15 = tpu.iota {dimensions = array<i32: 0>} : vector<8x16xi32>
    %16 = tpu.iota {dimensions = array<i32: 1>} : vector<8x16xi32>
    %c2_i32_4 = arith.constant 2 : i32
    %17 = vector.broadcast %c2_i32_4 : i32 to vector<8x16xi32>
    %18 = arith.muli %17, %15 : vector<8x16xi32>
    %19 = arith.cmpi eq, %16, %18 : vector<8x16xi32>
    %20 = arith.extui %19 : vector<8x16xi1> to vector<8x16xi32>
    %21 = arith.sitofp %20 : vector<8x16xi32> to vector<8x16xf32>
    %c2_i32_5 = arith.constant 2 : i32
    %22 = vector.broadcast %c2_i32_5 : i32 to vector<8x16xi32>
    %23 = arith.muli %22, %15 : vector<8x16xi32>
    %c1_i32_6 = arith.constant 1 : i32
    %24 = vector.broadcast %c1_i32_6 : i32 to vector<8x16xi32>
    %25 = arith.addi %23, %24 : vector<8x16xi32>
    %26 = arith.cmpi eq, %16, %25 : vector<8x16xi32>
    %27 = arith.extui %26 : vector<8x16xi1> to vector<8x16xi32>
    %28 = arith.sitofp %27 : vector<8x16xi32> to vector<8x16xf32>
    %c0_i32_7 = arith.constant 0 : i32
    %c1_i32_8 = arith.constant 1 : i32
    %29 = arith.muli %c0_i32_7, %c1_i32_8 : i32
    %c0_i32_9 = arith.constant 0 : i32
    %30 = arith.addi %c0_i32_9, %29 : i32
    %c8_i32 = arith.constant 8 : i32
    %31 = arith.muli %30, %c8_i32 : i32
    %c0_i32_10 = arith.constant 0 : i32
    %32 = arith.minsi %31, %c0_i32_10 : i32
    %c2_i32_11 = arith.constant 2 : i32
    %33 = arith.muli %c2_i32_11, %32 : i32
    %c0_i32_12 = arith.constant 0 : i32
    %c24_i32 = arith.constant 24 : i32
    %34 = arith.addi %c0_i32_12, %c24_i32 : i32
    %c1_i32_13 = arith.constant 1 : i32
    scf.for %arg12 = %c0_i32_12 to %34 step %c1_i32_13  : i32 {
      %c1_i32_16 = arith.constant 1 : i32
      %35 = arith.muli %arg12, %c1_i32_16 : i32
      %c0_i32_17 = arith.constant 0 : i32
      %36 = arith.addi %c0_i32_17, %35 : i32
      %c48_i32 = arith.constant 48 : i32
      %37 = arith.muli %36, %c48_i32 : i32
      %cst = arith.constant 0.000000e+00 : f32
      %38 = vector.broadcast %cst : f32 to vector<16x16xf32>
      %c0_i32_18 = arith.constant 0 : i32
      %39 = arith.addi %33, %c0_i32_18 : i32
      %c0 = arith.constant 0 : index
      %40 = arith.index_cast %39 : i32 to index
      %c0_19 = arith.constant 0 : index
      %41 = vector.load %arg11[%c0, %40, %c0_19] : memref<12x17x17xf32, #tpu.memory_space<vmem>>, vector<1x16x17xf32>
      %42 = vector.shape_cast %41 : vector<1x16x17xf32> to vector<16x17xf32>
      %c0_i32_20 = arith.constant 0 : i32
      %43 = arith.addi %37, %c0_i32_20 : i32
      %c0_i32_21 = arith.constant 0 : i32
      %44 = arith.addi %43, %c0_i32_21 : i32
      %c0_i32_22 = arith.constant 0 : i32
      %45 = arith.addi %44, %c0_i32_22 : i32
      %46 = arith.index_cast %45 : i32 to index
      %47 = memref.load %arg3[%46] : memref<1152xf32, #tpu.memory_space<smem>>
      %48 = vector.extract_strided_slice %42 {offsets = [0, 0], sizes = [16, 16], strides = [1, 1]} : vector<16x17xf32> to vector<16x16xf32>
      %49 = vector.broadcast %47 : f32 to vector<16x16xf32>
      %50 = arith.mulf %49, %48 : vector<16x16xf32>
      %51 = arith.addf %38, %50 : vector<16x16xf32>
      %c0_i32_23 = arith.constant 0 : i32
      %52 = arith.addi %37, %c0_i32_23 : i32
      %c0_i32_24 = arith.constant 0 : i32
      %53 = arith.addi %52, %c0_i32_24 : i32
      %c1_i32_25 = arith.constant 1 : i32
      %54 = arith.addi %53, %c1_i32_25 : i32
      %55 = arith.index_cast %54 : i32 to index
      %56 = memref.load %arg3[%55] : memref<1152xf32, #tpu.memory_space<smem>>
      %57 = vector.extract_strided_slice %42 {offsets = [0, 1], sizes = [16, 16], strides = [1, 1]} : vector<16x17xf32> to vector<16x16xf32>
      %58 = vector.broadcast %56 : f32 to vector<16x16xf32>
      %59 = arith.mulf %58, %57 : vector<16x16xf32>
      %60 = arith.addf %51, %59 : vector<16x16xf32>
      %c1_i32_26 = arith.constant 1 : i32
      %61 = arith.addi %33, %c1_i32_26 : i32
      %c0_27 = arith.constant 0 : index
      %62 = arith.index_cast %61 : i32 to index
      %c0_28 = arith.constant 0 : index
      %63 = vector.load %arg11[%c0_27, %62, %c0_28] : memref<12x17x17xf32, #tpu.memory_space<vmem>>, vector<1x16x17xf32>
      %64 = vector.shape_cast %63 : vector<1x16x17xf32> to vector<16x17xf32>
      %c0_i32_29 = arith.constant 0 : i32
      %65 = arith.addi %37, %c0_i32_29 : i32
      %c2_i32_30 = arith.constant 2 : i32
      %66 = arith.addi %65, %c2_i32_30 : i32
      %c0_i32_31 = arith.constant 0 : i32
      %67 = arith.addi %66, %c0_i32_31 : i32
      %68 = arith.index_cast %67 : i32 to index
      %69 = memref.load %arg3[%68] : memref<1152xf32, #tpu.memory_space<smem>>
      %70 = vector.extract_strided_slice %64 {offsets = [0, 0], sizes = [16, 16], strides = [1, 1]} : vector<16x17xf32> to vector<16x16xf32>
      %71 = vector.broadcast %69 : f32 to vector<16x16xf32>
      %72 = arith.mulf %71, %70 : vector<16x16xf32>
      %73 = arith.addf %60, %72 : vector<16x16xf32>
      %c0_i32_32 = arith.constant 0 : i32
      %74 = arith.addi %37, %c0_i32_32 : i32
      %c2_i32_33 = arith.constant 2 : i32
      %75 = arith.addi %74, %c2_i32_33 : i32
      %c1_i32_34 = arith.constant 1 : i32
      %76 = arith.addi %75, %c1_i32_34 : i32
      %77 = arith.index_cast %76 : i32 to index
      %78 = memref.load %arg3[%77] : memref<1152xf32, #tpu.memory_space<smem>>
      %79 = vector.extract_strided_slice %64 {offsets = [0, 1], sizes = [16, 16], strides = [1, 1]} : vector<16x17xf32> to vector<16x16xf32>
      %80 = vector.broadcast %78 : f32 to vector<16x16xf32>
      %81 = arith.mulf %80, %79 : vector<16x16xf32>
      %82 = arith.addf %73, %81 : vector<16x16xf32>
      %c0_i32_35 = arith.constant 0 : i32
      %83 = arith.addi %33, %c0_i32_35 : i32
      %c1 = arith.constant 1 : index
      %84 = arith.index_cast %83 : i32 to index
      %c0_36 = arith.constant 0 : index
      %85 = vector.load %arg11[%c1, %84, %c0_36] : memref<12x17x17xf32, #tpu.memory_space<vmem>>, vector<1x16x17xf32>
      %86 = vector.shape_cast %85 : vector<1x16x17xf32> to vector<16x17xf32>
      %c4_i32 = arith.constant 4 : i32
      %87 = arith.addi %37, %c4_i32 : i32
      %c0_i32_37 = arith.constant 0 : i32
      %88 = arith.addi %87, %c0_i32_37 : i32
      %c0_i32_38 = arith.constant 0 : i32
      %89 = arith.addi %88, %c0_i32_38 : i32
      %90 = arith.index_cast %89 : i32 to index
      %91 = memref.load %arg3[%90] : memref<1152xf32, #tpu.memory_space<smem>>
      %92 = vector.extract_strided_slice %86 {offsets = [0, 0], sizes = [16, 16], strides = [1, 1]} : vector<16x17xf32> to vector<16x16xf32>
      %93 = vector.broadcast %91 : f32 to vector<16x16xf32>
      %94 = arith.mulf %93, %92 : vector<16x16xf32>
      %95 = arith.addf %82, %94 : vector<16x16xf32>
      %c4_i32_39 = arith.constant 4 : i32
      %96 = arith.addi %37, %c4_i32_39 : i32
      %c0_i32_40 = arith.constant 0 : i32
      %97 = arith.addi %96, %c0_i32_40 : i32
      %c1_i32_41 = arith.constant 1 : i32
      %98 = arith.addi %97, %c1_i32_41 : i32
      %99 = arith.index_cast %98 : i32 to index
      %100 = memref.load %arg3[%99] : memref<1152xf32, #tpu.memory_space<smem>>
      %101 = vector.extract_strided_slice %86 {offsets = [0, 1], sizes = [16, 16], strides = [1, 1]} : vector<16x17xf32> to vector<16x16xf32>
      %102 = vector.broadcast %100 : f32 to vector<16x16xf32>
      %103 = arith.mulf %102, %101 : vector<16x16xf32>
      %104 = arith.addf %95, %103 : vector<16x16xf32>
      %c1_i32_42 = arith.constant 1 : i32
      %105 = arith.addi %33, %c1_i32_42 : i32
      %c1_43 = arith.constant 1 : index
      %106 = arith.index_cast %105 : i32 to index
      %c0_44 = arith.constant 0 : index
      %107 = vector.load %arg11[%c1_43, %106, %c0_44] : memref<12x17x17xf32, #tpu.memory_space<vmem>>, vector<1x16x17xf32>
      %108 = vector.shape_cast %107 : vector<1x16x17xf32> to vector<16x17xf32>
      %c4_i32_45 = arith.constant 4 : i32
      %109 = arith.addi %37, %c4_i32_45 : i32
      %c2_i32_46 = arith.constant 2 : i32
      %110 = arith.addi %109, %c2_i32_46 : i32
      %c0_i32_47 = arith.constant 0 : i32
      %111 = arith.addi %110, %c0_i32_47 : i32
      %112 = arith.index_cast %111 : i32 to index
      %113 = memref.load %arg3[%112] : memref<1152xf32, #tpu.memory_space<smem>>
      %114 = vector.extract_strided_slice %108 {offsets = [0, 0], sizes = [16, 16], strides = [1, 1]} : vector<16x17xf32> to vector<16x16xf32>
      %115 = vector.broadcast %113 : f32 to vector<16x16xf32>
      %116 = arith.mulf %115, %114 : vector<16x16xf32>
      %117 = arith.addf %104, %116 : vector<16x16xf32>
      %c4_i32_48 = arith.constant 4 : i32
      %118 = arith.addi %37, %c4_i32_48 : i32
      %c2_i32_49 = arith.constant 2 : i32
      %119 = arith.addi %118, %c2_i32_49 : i32
      %c1_i32_50 = arith.constant 1 : i32
      %120 = arith.addi %119, %c1_i32_50 : i32
      %121 = arith.index_cast %120 : i32 to index
      %122 = memref.load %arg3[%121] : memref<1152xf32, #tpu.memory_space<smem>>
      %123 = vector.extract_strided_slice %108 {offsets = [0, 1], sizes = [16, 16], strides = [1, 1]} : vector<16x17xf32> to vector<16x16xf32>
      %124 = vector.broadcast %122 : f32 to vector<16x16xf32>
      %125 = arith.mulf %124, %123 : vector<16x16xf32>
      %126 = arith.addf %117, %125 : vector<16x16xf32>
      %c0_i32_51 = arith.constant 0 : i32
      %127 = arith.addi %33, %c0_i32_51 : i32
      %c2 = arith.constant 2 : index
      %128 = arith.index_cast %127 : i32 to index
      %c0_52 = arith.constant 0 : index
      %129 = vector.load %arg11[%c2, %128, %c0_52] : memref<12x17x17xf32, #tpu.memory_space<vmem>>, vector<1x16x17xf32>
      %130 = vector.shape_cast %129 : vector<1x16x17xf32> to vector<16x17xf32>
      %c8_i32_53 = arith.constant 8 : i32
      %131 = arith.addi %37, %c8_i32_53 : i32
      %c0_i32_54 = arith.constant 0 : i32
      %132 = arith.addi %131, %c0_i32_54 : i32
      %c0_i32_55 = arith.constant 0 : i32
      %133 = arith.addi %132, %c0_i32_55 : i32
      %134 = arith.index_cast %133 : i32 to index
      %135 = memref.load %arg3[%134] : memref<1152xf32, #tpu.memory_space<smem>>
      %136 = vector.extract_strided_slice %130 {offsets = [0, 0], sizes = [16, 16], strides = [1, 1]} : vector<16x17xf32> to vector<16x16xf32>
      %137 = vector.broadcast %135 : f32 to vector<16x16xf32>
      %138 = arith.mulf %137, %136 : vector<16x16xf32>
      %139 = arith.addf %126, %138 : vector<16x16xf32>
      %c8_i32_56 = arith.constant 8 : i32
      %140 = arith.addi %37, %c8_i32_56 : i32
      %c0_i32_57 = arith.constant 0 : i32
      %141 = arith.addi %140, %c0_i32_57 : i32
      %c1_i32_58 = arith.constant 1 : i32
      %142 = arith.addi %141, %c1_i32_58 : i32
      %143 = arith.index_cast %142 : i32 to index
      %144 = memref.load %arg3[%143] : memref<1152xf32, #tpu.memory_space<smem>>
      %145 = vector.extract_strided_slice %130 {offsets = [0, 1], sizes = [16, 16], strides = [1, 1]} : vector<16x17xf32> to vector<16x16xf32>
      %146 = vector.broadcast %144 : f32 to vector<16x16xf32>
      %147 = arith.mulf %146, %145 : vector<16x16xf32>
      %148 = arith.addf %139, %147 : vector<16x16xf32>
      %c1_i32_59 = arith.constant 1 : i32
      %149 = arith.addi %33, %c1_i32_59 : i32
      %c2_60 = arith.constant 2 : index
      %150 = arith.index_cast %149 : i32 to index
      %c0_61 = arith.constant 0 : index
      %151 = vector.load %arg11[%c2_60, %150, %c0_61] : memref<12x17x17xf32, #tpu.memory_space<vmem>>, vector<1x16x17xf32>
      %152 = vector.shape_cast %151 : vector<1x16x17xf32> to vector<16x17xf32>
      %c8_i32_62 = arith.constant 8 : i32
      %153 = arith.addi %37, %c8_i32_62 : i32
      %c2_i32_63 = arith.constant 2 : i32
      %154 = arith.addi %153, %c2_i32_63 : i32
      %c0_i32_64 = arith.constant 0 : i32
      %155 = arith.addi %154, %c0_i32_64 : i32
      %156 = arith.index_cast %155 : i32 to index
      %157 = memref.load %arg3[%156] : memref<1152xf32, #tpu.memory_space<smem>>
      %158 = vector.extract_strided_slice %152 {offsets = [0, 0], sizes = [16, 16], strides = [1, 1]} : vector<16x17xf32> to vector<16x16xf32>
      %159 = vector.broadcast %157 : f32 to vector<16x16xf32>
      %160 = arith.mulf %159, %158 : vector<16x16xf32>
      %161 = arith.addf %148, %160 : vector<16x16xf32>
      %c8_i32_65 = arith.constant 8 : i32
      %162 = arith.addi %37, %c8_i32_65 : i32
      %c2_i32_66 = arith.constant 2 : i32
      %163 = arith.addi %162, %c2_i32_66 : i32
      %c1_i32_67 = arith.constant 1 : i32
      %164 = arith.addi %163, %c1_i32_67 : i32
      %165 = arith.index_cast %164 : i32 to index
      %166 = memref.load %arg3[%165] : memref<1152xf32, #tpu.memory_space<smem>>
      %167 = vector.extract_strided_slice %152 {offsets = [0, 1], sizes = [16, 16], strides = [1, 1]} : vector<16x17xf32> to vector<16x16xf32>
      %168 = vector.broadcast %166 : f32 to vector<16x16xf32>
      %169 = arith.mulf %168, %167 : vector<16x16xf32>
      %170 = arith.addf %161, %169 : vector<16x16xf32>
      %c0_i32_68 = arith.constant 0 : i32
      %171 = arith.addi %33, %c0_i32_68 : i32
      %c3 = arith.constant 3 : index
      %172 = arith.index_cast %171 : i32 to index
      %c0_69 = arith.constant 0 : index
      %173 = vector.load %arg11[%c3, %172, %c0_69] : memref<12x17x17xf32, #tpu.memory_space<vmem>>, vector<1x16x17xf32>
      %174 = vector.shape_cast %173 : vector<1x16x17xf32> to vector<16x17xf32>
      %c12_i32 = arith.constant 12 : i32
      %175 = arith.addi %37, %c12_i32 : i32
      %c0_i32_70 = arith.constant 0 : i32
      %176 = arith.addi %175, %c0_i32_70 : i32
      %c0_i32_71 = arith.constant 0 : i32
      %177 = arith.addi %176, %c0_i32_71 : i32
      %178 = arith.index_cast %177 : i32 to index
      %179 = memref.load %arg3[%178] : memref<1152xf32, #tpu.memory_space<smem>>
      %180 = vector.extract_strided_slice %174 {offsets = [0, 0], sizes = [16, 16], strides = [1, 1]} : vector<16x17xf32> to vector<16x16xf32>
      %181 = vector.broadcast %179 : f32 to vector<16x16xf32>
      %182 = arith.mulf %181, %180 : vector<16x16xf32>
      %183 = arith.addf %170, %182 : vector<16x16xf32>
      %c12_i32_72 = arith.constant 12 : i32
      %184 = arith.addi %37, %c12_i32_72 : i32
      %c0_i32_73 = arith.constant 0 : i32
      %185 = arith.addi %184, %c0_i32_73 : i32
      %c1_i32_74 = arith.constant 1 : i32
      %186 = arith.addi %185, %c1_i32_74 : i32
      %187 = arith.index_cast %186 : i32 to index
      %188 = memref.load %arg3[%187] : memref<1152xf32, #tpu.memory_space<smem>>
      %189 = vector.extract_strided_slice %174 {offsets = [0, 1], sizes = [16, 16], strides = [1, 1]} : vector<16x17xf32> to vector<16x16xf32>
      %190 = vector.broadcast %188 : f32 to vector<16x16xf32>
      %191 = arith.mulf %190, %189 : vector<16x16xf32>
      %192 = arith.addf %183, %191 : vector<16x16xf32>
      %c1_i32_75 = arith.constant 1 : i32
      %193 = arith.addi %33, %c1_i32_75 : i32
      %c3_76 = arith.constant 3 : index
      %194 = arith.index_cast %193 : i32 to index
      %c0_77 = arith.constant 0 : index
      %195 = vector.load %arg11[%c3_76, %194, %c0_77] : memref<12x17x17xf32, #tpu.memory_space<vmem>>, vector<1x16x17xf32>
      %196 = vector.shape_cast %195 : vector<1x16x17xf32> to vector<16x17xf32>
      %c12_i32_78 = arith.constant 12 : i32
      %197 = arith.addi %37, %c12_i32_78 : i32
      %c2_i32_79 = arith.constant 2 : i32
      %198 = arith.addi %197, %c2_i32_79 : i32
      %c0_i32_80 = arith.constant 0 : i32
      %199 = arith.addi %198, %c0_i32_80 : i32
      %200 = arith.index_cast %199 : i32 to index
      %201 = memref.load %arg3[%200] : memref<1152xf32, #tpu.memory_space<smem>>
      %202 = vector.extract_strided_slice %196 {offsets = [0, 0], sizes = [16, 16], strides = [1, 1]} : vector<16x17xf32> to vector<16x16xf32>
      %203 = vector.broadcast %201 : f32 to vector<16x16xf32>
      %204 = arith.mulf %203, %202 : vector<16x16xf32>
      %205 = arith.addf %192, %204 : vector<16x16xf32>
      %c12_i32_81 = arith.constant 12 : i32
      %206 = arith.addi %37, %c12_i32_81 : i32
      %c2_i32_82 = arith.constant 2 : i32
      %207 = arith.addi %206, %c2_i32_82 : i32
      %c1_i32_83 = arith.constant 1 : i32
      %208 = arith.addi %207, %c1_i32_83 : i32
      %209 = arith.index_cast %208 : i32 to index
      %210 = memref.load %arg3[%209] : memref<1152xf32, #tpu.memory_space<smem>>
      %211 = vector.extract_strided_slice %196 {offsets = [0, 1], sizes = [16, 16], strides = [1, 1]} : vector<16x17xf32> to vector<16x16xf32>
      %212 = vector.broadcast %210 : f32 to vector<16x16xf32>
      %213 = arith.mulf %212, %211 : vector<16x16xf32>
      %214 = arith.addf %205, %213 : vector<16x16xf32>
      %c0_i32_84 = arith.constant 0 : i32
      %215 = arith.addi %33, %c0_i32_84 : i32
      %c4 = arith.constant 4 : index
      %216 = arith.index_cast %215 : i32 to index
      %c0_85 = arith.constant 0 : index
      %217 = vector.load %arg11[%c4, %216, %c0_85] : memref<12x17x17xf32, #tpu.memory_space<vmem>>, vector<1x16x17xf32>
      %218 = vector.shape_cast %217 : vector<1x16x17xf32> to vector<16x17xf32>
      %c16_i32 = arith.constant 16 : i32
      %219 = arith.addi %37, %c16_i32 : i32
      %c0_i32_86 = arith.constant 0 : i32
      %220 = arith.addi %219, %c0_i32_86 : i32
      %c0_i32_87 = arith.constant 0 : i32
      %221 = arith.addi %220, %c0_i32_87 : i32
      %222 = arith.index_cast %221 : i32 to index
      %223 = memref.load %arg3[%222] : memref<1152xf32, #tpu.memory_space<smem>>
      %224 = vector.extract_strided_slice %218 {offsets = [0, 0], sizes = [16, 16], strides = [1, 1]} : vector<16x17xf32> to vector<16x16xf32>
      %225 = vector.broadcast %223 : f32 to vector<16x16xf32>
      %226 = arith.mulf %225, %224 : vector<16x16xf32>
      %227 = arith.addf %214, %226 : vector<16x16xf32>
      %c16_i32_88 = arith.constant 16 : i32
      %228 = arith.addi %37, %c16_i32_88 : i32
      %c0_i32_89 = arith.constant 0 : i32
      %229 = arith.addi %228, %c0_i32_89 : i32
      %c1_i32_90 = arith.constant 1 : i32
      %230 = arith.addi %229, %c1_i32_90 : i32
      %231 = arith.index_cast %230 : i32 to index
      %232 = memref.load %arg3[%231] : memref<1152xf32, #tpu.memory_space<smem>>
      %233 = vector.extract_strided_slice %218 {offsets = [0, 1], sizes = [16, 16], strides = [1, 1]} : vector<16x17xf32> to vector<16x16xf32>
      %234 = vector.broadcast %232 : f32 to vector<16x16xf32>
      %235 = arith.mulf %234, %233 : vector<16x16xf32>
      %236 = arith.addf %227, %235 : vector<16x16xf32>
      %c1_i32_91 = arith.constant 1 : i32
      %237 = arith.addi %33, %c1_i32_91 : i32
      %c4_92 = arith.constant 4 : index
      %238 = arith.index_cast %237 : i32 to index
      %c0_93 = arith.constant 0 : index
      %239 = vector.load %arg11[%c4_92, %238, %c0_93] : memref<12x17x17xf32, #tpu.memory_space<vmem>>, vector<1x16x17xf32>
      %240 = vector.shape_cast %239 : vector<1x16x17xf32> to vector<16x17xf32>
      %c16_i32_94 = arith.constant 16 : i32
      %241 = arith.addi %37, %c16_i32_94 : i32
      %c2_i32_95 = arith.constant 2 : i32
      %242 = arith.addi %241, %c2_i32_95 : i32
      %c0_i32_96 = arith.constant 0 : i32
      %243 = arith.addi %242, %c0_i32_96 : i32
      %244 = arith.index_cast %243 : i32 to index
      %245 = memref.load %arg3[%244] : memref<1152xf32, #tpu.memory_space<smem>>
      %246 = vector.extract_strided_slice %240 {offsets = [0, 0], sizes = [16, 16], strides = [1, 1]} : vector<16x17xf32> to vector<16x16xf32>
      %247 = vector.broadcast %245 : f32 to vector<16x16xf32>
      %248 = arith.mulf %247, %246 : vector<16x16xf32>
      %249 = arith.addf %236, %248 : vector<16x16xf32>
      %c16_i32_97 = arith.constant 16 : i32
      %250 = arith.addi %37, %c16_i32_97 : i32
      %c2_i32_98 = arith.constant 2 : i32
      %251 = arith.addi %250, %c2_i32_98 : i32
      %c1_i32_99 = arith.constant 1 : i32
      %252 = arith.addi %251, %c1_i32_99 : i32
      %253 = arith.index_cast %252 : i32 to index
      %254 = memref.load %arg3[%253] : memref<1152xf32, #tpu.memory_space<smem>>
      %255 = vector.extract_strided_slice %240 {offsets = [0, 1], sizes = [16, 16], strides = [1, 1]} : vector<16x17xf32> to vector<16x16xf32>
      %256 = vector.broadcast %254 : f32 to vector<16x16xf32>
      %257 = arith.mulf %256, %255 : vector<16x16xf32>
      %258 = arith.addf %249, %257 : vector<16x16xf32>
      %c0_i32_100 = arith.constant 0 : i32
      %259 = arith.addi %33, %c0_i32_100 : i32
      %c5 = arith.constant 5 : index
      %260 = arith.index_cast %259 : i32 to index
      %c0_101 = arith.constant 0 : index
      %261 = vector.load %arg11[%c5, %260, %c0_101] : memref<12x17x17xf32, #tpu.memory_space<vmem>>, vector<1x16x17xf32>
      %262 = vector.shape_cast %261 : vector<1x16x17xf32> to vector<16x17xf32>
      %c20_i32 = arith.constant 20 : i32
      %263 = arith.addi %37, %c20_i32 : i32
      %c0_i32_102 = arith.constant 0 : i32
      %264 = arith.addi %263, %c0_i32_102 : i32
      %c0_i32_103 = arith.constant 0 : i32
      %265 = arith.addi %264, %c0_i32_103 : i32
      %266 = arith.index_cast %265 : i32 to index
      %267 = memref.load %arg3[%266] : memref<1152xf32, #tpu.memory_space<smem>>
      %268 = vector.extract_strided_slice %262 {offsets = [0, 0], sizes = [16, 16], strides = [1, 1]} : vector<16x17xf32> to vector<16x16xf32>
      %269 = vector.broadcast %267 : f32 to vector<16x16xf32>
      %270 = arith.mulf %269, %268 : vector<16x16xf32>
      %271 = arith.addf %258, %270 : vector<16x16xf32>
      %c20_i32_104 = arith.constant 20 : i32
      %272 = arith.addi %37, %c20_i32_104 : i32
      %c0_i32_105 = arith.constant 0 : i32
      %273 = arith.addi %272, %c0_i32_105 : i32
      %c1_i32_106 = arith.constant 1 : i32
      %274 = arith.addi %273, %c1_i32_106 : i32
      %275 = arith.index_cast %274 : i32 to index
      %276 = memref.load %arg3[%275] : memref<1152xf32, #tpu.memory_space<smem>>
      %277 = vector.extract_strided_slice %262 {offsets = [0, 1], sizes = [16, 16], strides = [1, 1]} : vector<16x17xf32> to vector<16x16xf32>
      %278 = vector.broadcast %276 : f32 to vector<16x16xf32>
      %279 = arith.mulf %278, %277 : vector<16x16xf32>
      %280 = arith.addf %271, %279 : vector<16x16xf32>
      %c1_i32_107 = arith.constant 1 : i32
      %281 = arith.addi %33, %c1_i32_107 : i32
      %c5_108 = arith.constant 5 : index
      %282 = arith.index_cast %281 : i32 to index
      %c0_109 = arith.constant 0 : index
      %283 = vector.load %arg11[%c5_108, %282, %c0_109] : memref<12x17x17xf32, #tpu.memory_space<vmem>>, vector<1x16x17xf32>
      %284 = vector.shape_cast %283 : vector<1x16x17xf32> to vector<16x17xf32>
      %c20_i32_110 = arith.constant 20 : i32
      %285 = arith.addi %37, %c20_i32_110 : i32
      %c2_i32_111 = arith.constant 2 : i32
      %286 = arith.addi %285, %c2_i32_111 : i32
      %c0_i32_112 = arith.constant 0 : i32
      %287 = arith.addi %286, %c0_i32_112 : i32
      %288 = arith.index_cast %287 : i32 to index
      %289 = memref.load %arg3[%288] : memref<1152xf32, #tpu.memory_space<smem>>
      %290 = vector.extract_strided_slice %284 {offsets = [0, 0], sizes = [16, 16], strides = [1, 1]} : vector<16x17xf32> to vector<16x16xf32>
      %291 = vector.broadcast %289 : f32 to vector<16x16xf32>
      %292 = arith.mulf %291, %290 : vector<16x16xf32>
      %293 = arith.addf %280, %292 : vector<16x16xf32>
      %c20_i32_113 = arith.constant 20 : i32
      %294 = arith.addi %37, %c20_i32_113 : i32
      %c2_i32_114 = arith.constant 2 : i32
      %295 = arith.addi %294, %c2_i32_114 : i32
      %c1_i32_115 = arith.constant 1 : i32
      %296 = arith.addi %295, %c1_i32_115 : i32
      %297 = arith.index_cast %296 : i32 to index
      %298 = memref.load %arg3[%297] : memref<1152xf32, #tpu.memory_space<smem>>
      %299 = vector.extract_strided_slice %284 {offsets = [0, 1], sizes = [16, 16], strides = [1, 1]} : vector<16x17xf32> to vector<16x16xf32>
      %300 = vector.broadcast %298 : f32 to vector<16x16xf32>
      %301 = arith.mulf %300, %299 : vector<16x16xf32>
      %302 = arith.addf %293, %301 : vector<16x16xf32>
      %c0_i32_116 = arith.constant 0 : i32
      %303 = arith.addi %33, %c0_i32_116 : i32
      %c6 = arith.constant 6 : index
      %304 = arith.index_cast %303 : i32 to index
      %c0_117 = arith.constant 0 : index
      %305 = vector.load %arg11[%c6, %304, %c0_117] : memref<12x17x17xf32, #tpu.memory_space<vmem>>, vector<1x16x17xf32>
      %306 = vector.shape_cast %305 : vector<1x16x17xf32> to vector<16x17xf32>
      %c24_i32_118 = arith.constant 24 : i32
      %307 = arith.addi %37, %c24_i32_118 : i32
      %c0_i32_119 = arith.constant 0 : i32
      %308 = arith.addi %307, %c0_i32_119 : i32
      %c0_i32_120 = arith.constant 0 : i32
      %309 = arith.addi %308, %c0_i32_120 : i32
      %310 = arith.index_cast %309 : i32 to index
      %311 = memref.load %arg3[%310] : memref<1152xf32, #tpu.memory_space<smem>>
      %312 = vector.extract_strided_slice %306 {offsets = [0, 0], sizes = [16, 16], strides = [1, 1]} : vector<16x17xf32> to vector<16x16xf32>
      %313 = vector.broadcast %311 : f32 to vector<16x16xf32>
      %314 = arith.mulf %313, %312 : vector<16x16xf32>
      %315 = arith.addf %302, %314 : vector<16x16xf32>
      %c24_i32_121 = arith.constant 24 : i32
      %316 = arith.addi %37, %c24_i32_121 : i32
      %c0_i32_122 = arith.constant 0 : i32
      %317 = arith.addi %316, %c0_i32_122 : i32
      %c1_i32_123 = arith.constant 1 : i32
      %318 = arith.addi %317, %c1_i32_123 : i32
      %319 = arith.index_cast %318 : i32 to index
      %320 = memref.load %arg3[%319] : memref<1152xf32, #tpu.memory_space<smem>>
      %321 = vector.extract_strided_slice %306 {offsets = [0, 1], sizes = [16, 16], strides = [1, 1]} : vector<16x17xf32> to vector<16x16xf32>
      %322 = vector.broadcast %320 : f32 to vector<16x16xf32>
      %323 = arith.mulf %322, %321 : vector<16x16xf32>
      %324 = arith.addf %315, %323 : vector<16x16xf32>
      %c1_i32_124 = arith.constant 1 : i32
      %325 = arith.addi %33, %c1_i32_124 : i32
      %c6_125 = arith.constant 6 : index
      %326 = arith.index_cast %325 : i32 to index
      %c0_126 = arith.constant 0 : index
      %327 = vector.load %arg11[%c6_125, %326, %c0_126] : memref<12x17x17xf32, #tpu.memory_space<vmem>>, vector<1x16x17xf32>
      %328 = vector.shape_cast %327 : vector<1x16x17xf32> to vector<16x17xf32>
      %c24_i32_127 = arith.constant 24 : i32
      %329 = arith.addi %37, %c24_i32_127 : i32
      %c2_i32_128 = arith.constant 2 : i32
      %330 = arith.addi %329, %c2_i32_128 : i32
      %c0_i32_129 = arith.constant 0 : i32
      %331 = arith.addi %330, %c0_i32_129 : i32
      %332 = arith.index_cast %331 : i32 to index
      %333 = memref.load %arg3[%332] : memref<1152xf32, #tpu.memory_space<smem>>
      %334 = vector.extract_strided_slice %328 {offsets = [0, 0], sizes = [16, 16], strides = [1, 1]} : vector<16x17xf32> to vector<16x16xf32>
      %335 = vector.broadcast %333 : f32 to vector<16x16xf32>
      %336 = arith.mulf %335, %334 : vector<16x16xf32>
      %337 = arith.addf %324, %336 : vector<16x16xf32>
      %c24_i32_130 = arith.constant 24 : i32
      %338 = arith.addi %37, %c24_i32_130 : i32
      %c2_i32_131 = arith.constant 2 : i32
      %339 = arith.addi %338, %c2_i32_131 : i32
      %c1_i32_132 = arith.constant 1 : i32
      %340 = arith.addi %339, %c1_i32_132 : i32
      %341 = arith.index_cast %340 : i32 to index
      %342 = memref.load %arg3[%341] : memref<1152xf32, #tpu.memory_space<smem>>
      %343 = vector.extract_strided_slice %328 {offsets = [0, 1], sizes = [16, 16], strides = [1, 1]} : vector<16x17xf32> to vector<16x16xf32>
      %344 = vector.broadcast %342 : f32 to vector<16x16xf32>
      %345 = arith.mulf %344, %343 : vector<16x16xf32>
      %346 = arith.addf %337, %345 : vector<16x16xf32>
      %c0_i32_133 = arith.constant 0 : i32
      %347 = arith.addi %33, %c0_i32_133 : i32
      %c7 = arith.constant 7 : index
      %348 = arith.index_cast %347 : i32 to index
      %c0_134 = arith.constant 0 : index
      %349 = vector.load %arg11[%c7, %348, %c0_134] : memref<12x17x17xf32, #tpu.memory_space<vmem>>, vector<1x16x17xf32>
      %350 = vector.shape_cast %349 : vector<1x16x17xf32> to vector<16x17xf32>
      %c28_i32 = arith.constant 28 : i32
      %351 = arith.addi %37, %c28_i32 : i32
      %c0_i32_135 = arith.constant 0 : i32
      %352 = arith.addi %351, %c0_i32_135 : i32
      %c0_i32_136 = arith.constant 0 : i32
      %353 = arith.addi %352, %c0_i32_136 : i32
      %354 = arith.index_cast %353 : i32 to index
      %355 = memref.load %arg3[%354] : memref<1152xf32, #tpu.memory_space<smem>>
      %356 = vector.extract_strided_slice %350 {offsets = [0, 0], sizes = [16, 16], strides = [1, 1]} : vector<16x17xf32> to vector<16x16xf32>
      %357 = vector.broadcast %355 : f32 to vector<16x16xf32>
      %358 = arith.mulf %357, %356 : vector<16x16xf32>
      %359 = arith.addf %346, %358 : vector<16x16xf32>
      %c28_i32_137 = arith.constant 28 : i32
      %360 = arith.addi %37, %c28_i32_137 : i32
      %c0_i32_138 = arith.constant 0 : i32
      %361 = arith.addi %360, %c0_i32_138 : i32
      %c1_i32_139 = arith.constant 1 : i32
      %362 = arith.addi %361, %c1_i32_139 : i32
      %363 = arith.index_cast %362 : i32 to index
      %364 = memref.load %arg3[%363] : memref<1152xf32, #tpu.memory_space<smem>>
      %365 = vector.extract_strided_slice %350 {offsets = [0, 1], sizes = [16, 16], strides = [1, 1]} : vector<16x17xf32> to vector<16x16xf32>
      %366 = vector.broadcast %364 : f32 to vector<16x16xf32>
      %367 = arith.mulf %366, %365 : vector<16x16xf32>
      %368 = arith.addf %359, %367 : vector<16x16xf32>
      %c1_i32_140 = arith.constant 1 : i32
      %369 = arith.addi %33, %c1_i32_140 : i32
      %c7_141 = arith.constant 7 : index
      %370 = arith.index_cast %369 : i32 to index
      %c0_142 = arith.constant 0 : index
      %371 = vector.load %arg11[%c7_141, %370, %c0_142] : memref<12x17x17xf32, #tpu.memory_space<vmem>>, vector<1x16x17xf32>
      %372 = vector.shape_cast %371 : vector<1x16x17xf32> to vector<16x17xf32>
      %c28_i32_143 = arith.constant 28 : i32
      %373 = arith.addi %37, %c28_i32_143 : i32
      %c2_i32_144 = arith.constant 2 : i32
      %374 = arith.addi %373, %c2_i32_144 : i32
      %c0_i32_145 = arith.constant 0 : i32
      %375 = arith.addi %374, %c0_i32_145 : i32
      %376 = arith.index_cast %375 : i32 to index
      %377 = memref.load %arg3[%376] : memref<1152xf32, #tpu.memory_space<smem>>
      %378 = vector.extract_strided_slice %372 {offsets = [0, 0], sizes = [16, 16], strides = [1, 1]} : vector<16x17xf32> to vector<16x16xf32>
      %379 = vector.broadcast %377 : f32 to vector<16x16xf32>
      %380 = arith.mulf %379, %378 : vector<16x16xf32>
      %381 = arith.addf %368, %380 : vector<16x16xf32>
      %c28_i32_146 = arith.constant 28 : i32
      %382 = arith.addi %37, %c28_i32_146 : i32
      %c2_i32_147 = arith.constant 2 : i32
      %383 = arith.addi %382, %c2_i32_147 : i32
      %c1_i32_148 = arith.constant 1 : i32
      %384 = arith.addi %383, %c1_i32_148 : i32
      %385 = arith.index_cast %384 : i32 to index
      %386 = memref.load %arg3[%385] : memref<1152xf32, #tpu.memory_space<smem>>
      %387 = vector.extract_strided_slice %372 {offsets = [0, 1], sizes = [16, 16], strides = [1, 1]} : vector<16x17xf32> to vector<16x16xf32>
      %388 = vector.broadcast %386 : f32 to vector<16x16xf32>
      %389 = arith.mulf %388, %387 : vector<16x16xf32>
      %390 = arith.addf %381, %389 : vector<16x16xf32>
      %c0_i32_149 = arith.constant 0 : i32
      %391 = arith.addi %33, %c0_i32_149 : i32
      %c8 = arith.constant 8 : index
      %392 = arith.index_cast %391 : i32 to index
      %c0_150 = arith.constant 0 : index
      %393 = vector.load %arg11[%c8, %392, %c0_150] : memref<12x17x17xf32, #tpu.memory_space<vmem>>, vector<1x16x17xf32>
      %394 = vector.shape_cast %393 : vector<1x16x17xf32> to vector<16x17xf32>
      %c32_i32 = arith.constant 32 : i32
      %395 = arith.addi %37, %c32_i32 : i32
      %c0_i32_151 = arith.constant 0 : i32
      %396 = arith.addi %395, %c0_i32_151 : i32
      %c0_i32_152 = arith.constant 0 : i32
      %397 = arith.addi %396, %c0_i32_152 : i32
      %398 = arith.index_cast %397 : i32 to index
      %399 = memref.load %arg3[%398] : memref<1152xf32, #tpu.memory_space<smem>>
      %400 = vector.extract_strided_slice %394 {offsets = [0, 0], sizes = [16, 16], strides = [1, 1]} : vector<16x17xf32> to vector<16x16xf32>
      %401 = vector.broadcast %399 : f32 to vector<16x16xf32>
      %402 = arith.mulf %401, %400 : vector<16x16xf32>
      %403 = arith.addf %390, %402 : vector<16x16xf32>
      %c32_i32_153 = arith.constant 32 : i32
      %404 = arith.addi %37, %c32_i32_153 : i32
      %c0_i32_154 = arith.constant 0 : i32
      %405 = arith.addi %404, %c0_i32_154 : i32
      %c1_i32_155 = arith.constant 1 : i32
      %406 = arith.addi %405, %c1_i32_155 : i32
      %407 = arith.index_cast %406 : i32 to index
      %408 = memref.load %arg3[%407] : memref<1152xf32, #tpu.memory_space<smem>>
      %409 = vector.extract_strided_slice %394 {offsets = [0, 1], sizes = [16, 16], strides = [1, 1]} : vector<16x17xf32> to vector<16x16xf32>
      %410 = vector.broadcast %408 : f32 to vector<16x16xf32>
      %411 = arith.mulf %410, %409 : vector<16x16xf32>
      %412 = arith.addf %403, %411 : vector<16x16xf32>
      %c1_i32_156 = arith.constant 1 : i32
      %413 = arith.addi %33, %c1_i32_156 : i32
      %c8_157 = arith.constant 8 : index
      %414 = arith.index_cast %413 : i32 to index
      %c0_158 = arith.constant 0 : index
      %415 = vector.load %arg11[%c8_157, %414, %c0_158] : memref<12x17x17xf32, #tpu.memory_space<vmem>>, vector<1x16x17xf32>
      %416 = vector.shape_cast %415 : vector<1x16x17xf32> to vector<16x17xf32>
      %c32_i32_159 = arith.constant 32 : i32
      %417 = arith.addi %37, %c32_i32_159 : i32
      %c2_i32_160 = arith.constant 2 : i32
      %418 = arith.addi %417, %c2_i32_160 : i32
      %c0_i32_161 = arith.constant 0 : i32
      %419 = arith.addi %418, %c0_i32_161 : i32
      %420 = arith.index_cast %419 : i32 to index
      %421 = memref.load %arg3[%420] : memref<1152xf32, #tpu.memory_space<smem>>
      %422 = vector.extract_strided_slice %416 {offsets = [0, 0], sizes = [16, 16], strides = [1, 1]} : vector<16x17xf32> to vector<16x16xf32>
      %423 = vector.broadcast %421 : f32 to vector<16x16xf32>
      %424 = arith.mulf %423, %422 : vector<16x16xf32>
      %425 = arith.addf %412, %424 : vector<16x16xf32>
      %c32_i32_162 = arith.constant 32 : i32
      %426 = arith.addi %37, %c32_i32_162 : i32
      %c2_i32_163 = arith.constant 2 : i32
      %427 = arith.addi %426, %c2_i32_163 : i32
      %c1_i32_164 = arith.constant 1 : i32
      %428 = arith.addi %427, %c1_i32_164 : i32
      %429 = arith.index_cast %428 : i32 to index
      %430 = memref.load %arg3[%429] : memref<1152xf32, #tpu.memory_space<smem>>
      %431 = vector.extract_strided_slice %416 {offsets = [0, 1], sizes = [16, 16], strides = [1, 1]} : vector<16x17xf32> to vector<16x16xf32>
      %432 = vector.broadcast %430 : f32 to vector<16x16xf32>
      %433 = arith.mulf %432, %431 : vector<16x16xf32>
      %434 = arith.addf %425, %433 : vector<16x16xf32>
      %c0_i32_165 = arith.constant 0 : i32
      %435 = arith.addi %33, %c0_i32_165 : i32
      %c9 = arith.constant 9 : index
      %436 = arith.index_cast %435 : i32 to index
      %c0_166 = arith.constant 0 : index
      %437 = vector.load %arg11[%c9, %436, %c0_166] : memref<12x17x17xf32, #tpu.memory_space<vmem>>, vector<1x16x17xf32>
      %438 = vector.shape_cast %437 : vector<1x16x17xf32> to vector<16x17xf32>
      %c36_i32 = arith.constant 36 : i32
      %439 = arith.addi %37, %c36_i32 : i32
      %c0_i32_167 = arith.constant 0 : i32
      %440 = arith.addi %439, %c0_i32_167 : i32
      %c0_i32_168 = arith.constant 0 : i32
      %441 = arith.addi %440, %c0_i32_168 : i32
      %442 = arith.index_cast %441 : i32 to index
      %443 = memref.load %arg3[%442] : memref<1152xf32, #tpu.memory_space<smem>>
      %444 = vector.extract_strided_slice %438 {offsets = [0, 0], sizes = [16, 16], strides = [1, 1]} : vector<16x17xf32> to vector<16x16xf32>
      %445 = vector.broadcast %443 : f32 to vector<16x16xf32>
      %446 = arith.mulf %445, %444 : vector<16x16xf32>
      %447 = arith.addf %434, %446 : vector<16x16xf32>
      %c36_i32_169 = arith.constant 36 : i32
      %448 = arith.addi %37, %c36_i32_169 : i32
      %c0_i32_170 = arith.constant 0 : i32
      %449 = arith.addi %448, %c0_i32_170 : i32
      %c1_i32_171 = arith.constant 1 : i32
      %450 = arith.addi %449, %c1_i32_171 : i32
      %451 = arith.index_cast %450 : i32 to index
      %452 = memref.load %arg3[%451] : memref<1152xf32, #tpu.memory_space<smem>>
      %453 = vector.extract_strided_slice %438 {offsets = [0, 1], sizes = [16, 16], strides = [1, 1]} : vector<16x17xf32> to vector<16x16xf32>
      %454 = vector.broadcast %452 : f32 to vector<16x16xf32>
      %455 = arith.mulf %454, %453 : vector<16x16xf32>
      %456 = arith.addf %447, %455 : vector<16x16xf32>
      %c1_i32_172 = arith.constant 1 : i32
      %457 = arith.addi %33, %c1_i32_172 : i32
      %c9_173 = arith.constant 9 : index
      %458 = arith.index_cast %457 : i32 to index
      %c0_174 = arith.constant 0 : index
      %459 = vector.load %arg11[%c9_173, %458, %c0_174] : memref<12x17x17xf32, #tpu.memory_space<vmem>>, vector<1x16x17xf32>
      %460 = vector.shape_cast %459 : vector<1x16x17xf32> to vector<16x17xf32>
      %c36_i32_175 = arith.constant 36 : i32
      %461 = arith.addi %37, %c36_i32_175 : i32
      %c2_i32_176 = arith.constant 2 : i32
      %462 = arith.addi %461, %c2_i32_176 : i32
      %c0_i32_177 = arith.constant 0 : i32
      %463 = arith.addi %462, %c0_i32_177 : i32
      %464 = arith.index_cast %463 : i32 to index
      %465 = memref.load %arg3[%464] : memref<1152xf32, #tpu.memory_space<smem>>
      %466 = vector.extract_strided_slice %460 {offsets = [0, 0], sizes = [16, 16], strides = [1, 1]} : vector<16x17xf32> to vector<16x16xf32>
      %467 = vector.broadcast %465 : f32 to vector<16x16xf32>
      %468 = arith.mulf %467, %466 : vector<16x16xf32>
      %469 = arith.addf %456, %468 : vector<16x16xf32>
      %c36_i32_178 = arith.constant 36 : i32
      %470 = arith.addi %37, %c36_i32_178 : i32
      %c2_i32_179 = arith.constant 2 : i32
      %471 = arith.addi %470, %c2_i32_179 : i32
      %c1_i32_180 = arith.constant 1 : i32
      %472 = arith.addi %471, %c1_i32_180 : i32
      %473 = arith.index_cast %472 : i32 to index
      %474 = memref.load %arg3[%473] : memref<1152xf32, #tpu.memory_space<smem>>
      %475 = vector.extract_strided_slice %460 {offsets = [0, 1], sizes = [16, 16], strides = [1, 1]} : vector<16x17xf32> to vector<16x16xf32>
      %476 = vector.broadcast %474 : f32 to vector<16x16xf32>
      %477 = arith.mulf %476, %475 : vector<16x16xf32>
      %478 = arith.addf %469, %477 : vector<16x16xf32>
      %c0_i32_181 = arith.constant 0 : i32
      %479 = arith.addi %33, %c0_i32_181 : i32
      %c10 = arith.constant 10 : index
      %480 = arith.index_cast %479 : i32 to index
      %c0_182 = arith.constant 0 : index
      %481 = vector.load %arg11[%c10, %480, %c0_182] : memref<12x17x17xf32, #tpu.memory_space<vmem>>, vector<1x16x17xf32>
      %482 = vector.shape_cast %481 : vector<1x16x17xf32> to vector<16x17xf32>
      %c40_i32 = arith.constant 40 : i32
      %483 = arith.addi %37, %c40_i32 : i32
      %c0_i32_183 = arith.constant 0 : i32
      %484 = arith.addi %483, %c0_i32_183 : i32
      %c0_i32_184 = arith.constant 0 : i32
      %485 = arith.addi %484, %c0_i32_184 : i32
      %486 = arith.index_cast %485 : i32 to index
      %487 = memref.load %arg3[%486] : memref<1152xf32, #tpu.memory_space<smem>>
      %488 = vector.extract_strided_slice %482 {offsets = [0, 0], sizes = [16, 16], strides = [1, 1]} : vector<16x17xf32> to vector<16x16xf32>
      %489 = vector.broadcast %487 : f32 to vector<16x16xf32>
      %490 = arith.mulf %489, %488 : vector<16x16xf32>
      %491 = arith.addf %478, %490 : vector<16x16xf32>
      %c40_i32_185 = arith.constant 40 : i32
      %492 = arith.addi %37, %c40_i32_185 : i32
      %c0_i32_186 = arith.constant 0 : i32
      %493 = arith.addi %492, %c0_i32_186 : i32
      %c1_i32_187 = arith.constant 1 : i32
      %494 = arith.addi %493, %c1_i32_187 : i32
      %495 = arith.index_cast %494 : i32 to index
      %496 = memref.load %arg3[%495] : memref<1152xf32, #tpu.memory_space<smem>>
      %497 = vector.extract_strided_slice %482 {offsets = [0, 1], sizes = [16, 16], strides = [1, 1]} : vector<16x17xf32> to vector<16x16xf32>
      %498 = vector.broadcast %496 : f32 to vector<16x16xf32>
      %499 = arith.mulf %498, %497 : vector<16x16xf32>
      %500 = arith.addf %491, %499 : vector<16x16xf32>
      %c1_i32_188 = arith.constant 1 : i32
      %501 = arith.addi %33, %c1_i32_188 : i32
      %c10_189 = arith.constant 10 : index
      %502 = arith.index_cast %501 : i32 to index
      %c0_190 = arith.constant 0 : index
      %503 = vector.load %arg11[%c10_189, %502, %c0_190] : memref<12x17x17xf32, #tpu.memory_space<vmem>>, vector<1x16x17xf32>
      %504 = vector.shape_cast %503 : vector<1x16x17xf32> to vector<16x17xf32>
      %c40_i32_191 = arith.constant 40 : i32
      %505 = arith.addi %37, %c40_i32_191 : i32
      %c2_i32_192 = arith.constant 2 : i32
      %506 = arith.addi %505, %c2_i32_192 : i32
      %c0_i32_193 = arith.constant 0 : i32
      %507 = arith.addi %506, %c0_i32_193 : i32
      %508 = arith.index_cast %507 : i32 to index
      %509 = memref.load %arg3[%508] : memref<1152xf32, #tpu.memory_space<smem>>
      %510 = vector.extract_strided_slice %504 {offsets = [0, 0], sizes = [16, 16], strides = [1, 1]} : vector<16x17xf32> to vector<16x16xf32>
      %511 = vector.broadcast %509 : f32 to vector<16x16xf32>
      %512 = arith.mulf %511, %510 : vector<16x16xf32>
      %513 = arith.addf %500, %512 : vector<16x16xf32>
      %c40_i32_194 = arith.constant 40 : i32
      %514 = arith.addi %37, %c40_i32_194 : i32
      %c2_i32_195 = arith.constant 2 : i32
      %515 = arith.addi %514, %c2_i32_195 : i32
      %c1_i32_196 = arith.constant 1 : i32
      %516 = arith.addi %515, %c1_i32_196 : i32
      %517 = arith.index_cast %516 : i32 to index
      %518 = memref.load %arg3[%517] : memref<1152xf32, #tpu.memory_space<smem>>
      %519 = vector.extract_strided_slice %504 {offsets = [0, 1], sizes = [16, 16], strides = [1, 1]} : vector<16x17xf32> to vector<16x16xf32>
      %520 = vector.broadcast %518 : f32 to vector<16x16xf32>
      %521 = arith.mulf %520, %519 : vector<16x16xf32>
      %522 = arith.addf %513, %521 : vector<16x16xf32>
      %c0_i32_197 = arith.constant 0 : i32
      %523 = arith.addi %33, %c0_i32_197 : i32
      %c11 = arith.constant 11 : index
      %524 = arith.index_cast %523 : i32 to index
      %c0_198 = arith.constant 0 : index
      %525 = vector.load %arg11[%c11, %524, %c0_198] : memref<12x17x17xf32, #tpu.memory_space<vmem>>, vector<1x16x17xf32>
      %526 = vector.shape_cast %525 : vector<1x16x17xf32> to vector<16x17xf32>
      %c44_i32 = arith.constant 44 : i32
      %527 = arith.addi %37, %c44_i32 : i32
      %c0_i32_199 = arith.constant 0 : i32
      %528 = arith.addi %527, %c0_i32_199 : i32
      %c0_i32_200 = arith.constant 0 : i32
      %529 = arith.addi %528, %c0_i32_200 : i32
      %530 = arith.index_cast %529 : i32 to index
      %531 = memref.load %arg3[%530] : memref<1152xf32, #tpu.memory_space<smem>>
      %532 = vector.extract_strided_slice %526 {offsets = [0, 0], sizes = [16, 16], strides = [1, 1]} : vector<16x17xf32> to vector<16x16xf32>
      %533 = vector.broadcast %531 : f32 to vector<16x16xf32>
      %534 = arith.mulf %533, %532 : vector<16x16xf32>
      %535 = arith.addf %522, %534 : vector<16x16xf32>
      %c44_i32_201 = arith.constant 44 : i32
      %536 = arith.addi %37, %c44_i32_201 : i32
      %c0_i32_202 = arith.constant 0 : i32
      %537 = arith.addi %536, %c0_i32_202 : i32
      %c1_i32_203 = arith.constant 1 : i32
      %538 = arith.addi %537, %c1_i32_203 : i32
      %539 = arith.index_cast %538 : i32 to index
      %540 = memref.load %arg3[%539] : memref<1152xf32, #tpu.memory_space<smem>>
      %541 = vector.extract_strided_slice %526 {offsets = [0, 1], sizes = [16, 16], strides = [1, 1]} : vector<16x17xf32> to vector<16x16xf32>
      %542 = vector.broadcast %540 : f32 to vector<16x16xf32>
      %543 = arith.mulf %542, %541 : vector<16x16xf32>
      %544 = arith.addf %535, %543 : vector<16x16xf32>
      %c1_i32_204 = arith.constant 1 : i32
      %545 = arith.addi %33, %c1_i32_204 : i32
      %c11_205 = arith.constant 11 : index
      %546 = arith.index_cast %545 : i32 to index
      %c0_206 = arith.constant 0 : index
      %547 = vector.load %arg11[%c11_205, %546, %c0_206] : memref<12x17x17xf32, #tpu.memory_space<vmem>>, vector<1x16x17xf32>
      %548 = vector.shape_cast %547 : vector<1x16x17xf32> to vector<16x17xf32>
      %c44_i32_207 = arith.constant 44 : i32
      %549 = arith.addi %37, %c44_i32_207 : i32
      %c2_i32_208 = arith.constant 2 : i32
      %550 = arith.addi %549, %c2_i32_208 : i32
      %c0_i32_209 = arith.constant 0 : i32
      %551 = arith.addi %550, %c0_i32_209 : i32
      %552 = arith.index_cast %551 : i32 to index
      %553 = memref.load %arg3[%552] : memref<1152xf32, #tpu.memory_space<smem>>
      %554 = vector.extract_strided_slice %548 {offsets = [0, 0], sizes = [16, 16], strides = [1, 1]} : vector<16x17xf32> to vector<16x16xf32>
      %555 = vector.broadcast %553 : f32 to vector<16x16xf32>
      %556 = arith.mulf %555, %554 : vector<16x16xf32>
      %557 = arith.addf %544, %556 : vector<16x16xf32>
      %c44_i32_210 = arith.constant 44 : i32
      %558 = arith.addi %37, %c44_i32_210 : i32
      %c2_i32_211 = arith.constant 2 : i32
      %559 = arith.addi %558, %c2_i32_211 : i32
      %c1_i32_212 = arith.constant 1 : i32
      %560 = arith.addi %559, %c1_i32_212 : i32
      %561 = arith.index_cast %560 : i32 to index
      %562 = memref.load %arg3[%561] : memref<1152xf32, #tpu.memory_space<smem>>
      %563 = vector.extract_strided_slice %548 {offsets = [0, 1], sizes = [16, 16], strides = [1, 1]} : vector<16x17xf32> to vector<16x16xf32>
      %564 = vector.broadcast %562 : f32 to vector<16x16xf32>
      %565 = arith.mulf %564, %563 : vector<16x16xf32>
      %566 = arith.addf %557, %565 : vector<16x16xf32>
      %567 = arith.index_cast %36 : i32 to index
      %568 = memref.load %arg4[%567] : memref<24xf32, #tpu.memory_space<smem>>
      %569 = vector.broadcast %568 : f32 to vector<16x16xf32>
      %570 = arith.addf %566, %569 : vector<16x16xf32>
      %cst_213 = arith.constant 0.000000e+00 : f32
      %571 = vector.broadcast %cst_213 : f32 to vector<16x16xf32>
      %572 = arith.maximumf %570, %571 : vector<16x16xf32>
      %cst_214 = arith.constant dense<0.000000e+00> : vector<8x16xf32>
      %573 = tpu.matmul %21, %572, %cst_214 {dimension_numbers = #tpu.dot_dimension_numbers<[1], [0], [0], [1], [0, 0, 1, 1], [], []>} : vector<8x16xf32>, vector<16x16xf32>, vector<8x16xf32> -> vector<8x16xf32>
      %cst_215 = arith.constant dense<0.000000e+00> : vector<8x16xf32>
      %574 = tpu.matmul %28, %572, %cst_215 {dimension_numbers = #tpu.dot_dimension_numbers<[1], [0], [0], [1], [0, 0, 1, 1], [], []>} : vector<8x16xf32>, vector<16x16xf32>, vector<8x16xf32> -> vector<8x16xf32>
      %575 = arith.maximumf %573, %574 : vector<8x16xf32>
      %c0_216 = arith.constant 0 : index
      %c0_217 = arith.constant 0 : index
      %576 = vector.load %arg8[%c0_216, %c0_217] : memref<16x8xf32, #tpu.memory_space<vmem>>, vector<16x8xf32>
      %cst_218 = arith.constant dense<0.000000e+00> : vector<8x8xf32>
      %577 = tpu.matmul %575, %576, %cst_218 {dimension_numbers = #tpu.dot_dimension_numbers<[1], [0], [0], [1], [0, 0, 1, 1], [], []>} : vector<8x16xf32>, vector<16x8xf32>, vector<8x8xf32> -> vector<8x8xf32>
      %c0_219 = arith.constant 0 : index
      %c0_220 = arith.constant 0 : index
      %578 = vector.load %arg9[%c0_219, %c0_220] : memref<16x8xf32, #tpu.memory_space<vmem>>, vector<16x8xf32>
      %cst_221 = arith.constant dense<0.000000e+00> : vector<8x8xf32>
      %579 = tpu.matmul %575, %578, %cst_221 {dimension_numbers = #tpu.dot_dimension_numbers<[1], [0], [0], [1], [0, 0, 1, 1], [], []>} : vector<8x16xf32>, vector<16x8xf32>, vector<8x8xf32> -> vector<8x8xf32>
      %580 = arith.maximumf %577, %579 : vector<8x8xf32>
      %c0_222 = arith.constant 0 : index
      %581 = arith.index_cast %36 : i32 to index
      %582 = arith.index_cast %32 : i32 to index
      %c0_223 = arith.constant 0 : index
      %583 = vector.load %arg10[%c0_222, %581, %582, %c0_223] : memref<1x24x8x8xf32, #tpu.memory_space<vmem>>, vector<1x1x8x8xf32>
      %584 = vector.shape_cast %583 : vector<1x1x8x8xf32> to vector<8x8xf32>
      %585 = vector.shape_cast %580 : vector<8x8xf32> to vector<1x1x8x8xf32>
      tpu.vector_store %arg10[%c0_222, %581, %582, %c0_223], %585 {strides = array<i32>} : memref<1x24x8x8xf32, #tpu.memory_space<vmem>>, vector<1x1x8x8xf32>,
    }
    %c24_i32_14 = arith.constant 24 : i32
    %c1_i32_15 = arith.constant 1 : i32
    return
  }
  func.func @transform_0(%arg0: i32, %arg1: memref<144xf32, #tpu.memory_space<smem>>, %arg2: memref<12xf32, #tpu.memory_space<smem>>, %arg3: memref<1152xf32, #tpu.memory_space<smem>>, %arg4: memref<24xf32, #tpu.memory_space<smem>>) -> (i32, i32, i32, i32) {
    %c0_i32 = arith.constant 0 : i32
    %c0_i32_0 = arith.constant 0 : i32
    %c0_i32_1 = arith.constant 0 : i32
    %c0_i32_2 = arith.constant 0 : i32
    return %arg0, %c0_i32, %c0_i32_0, %c0_i32_1 : i32, i32, i32, i32
  }
  func.func @transform_1(%arg0: i32, %arg1: memref<144xf32, #tpu.memory_space<smem>>, %arg2: memref<12xf32, #tpu.memory_space<smem>>, %arg3: memref<1152xf32, #tpu.memory_space<smem>>, %arg4: memref<24xf32, #tpu.memory_space<smem>>) -> (i32, i32) {
    %c0_i32 = arith.constant 0 : i32
    %c0_i32_0 = arith.constant 0 : i32
    %c0_i32_1 = arith.constant 0 : i32
    return %c0_i32, %c0_i32_0 : i32, i32
  }
  func.func @transform_2(%arg0: i32, %arg1: memref<144xf32, #tpu.memory_space<smem>>, %arg2: memref<12xf32, #tpu.memory_space<smem>>, %arg3: memref<1152xf32, #tpu.memory_space<smem>>, %arg4: memref<24xf32, #tpu.memory_space<smem>>) -> (i32, i32) {
    %c0_i32 = arith.constant 0 : i32
    %c0_i32_0 = arith.constant 0 : i32
    %c0_i32_1 = arith.constant 0 : i32
    return %c0_i32, %c0_i32_0 : i32, i32
  }
  func.func @transform_3(%arg0: i32, %arg1: memref<144xf32, #tpu.memory_space<smem>>, %arg2: memref<12xf32, #tpu.memory_space<smem>>, %arg3: memref<1152xf32, #tpu.memory_space<smem>>, %arg4: memref<24xf32, #tpu.memory_space<smem>>) -> (i32, i32) {
    %c0_i32 = arith.constant 0 : i32
    %c0_i32_0 = arith.constant 0 : i32
    %c0_i32_1 = arith.constant 0 : i32
    return %c0_i32, %c0_i32_0 : i32, i32
  }
  func.func @transform_4(%arg0: i32, %arg1: memref<144xf32, #tpu.memory_space<smem>>, %arg2: memref<12xf32, #tpu.memory_space<smem>>, %arg3: memref<1152xf32, #tpu.memory_space<smem>>, %arg4: memref<24xf32, #tpu.memory_space<smem>>) -> (i32, i32) {
    %c0_i32 = arith.constant 0 : i32
    %c0_i32_0 = arith.constant 0 : i32
    %c0_i32_1 = arith.constant 0 : i32
    return %c0_i32, %c0_i32_0 : i32, i32
  }
  func.func @transform_5(%arg0: i32, %arg1: memref<144xf32, #tpu.memory_space<smem>>, %arg2: memref<12xf32, #tpu.memory_space<smem>>, %arg3: memref<1152xf32, #tpu.memory_space<smem>>, %arg4: memref<24xf32, #tpu.memory_space<smem>>) -> (i32, i32, i32, i32) {
    %c0_i32 = arith.constant 0 : i32
    %c0_i32_0 = arith.constant 0 : i32
    %c0_i32_1 = arith.constant 0 : i32
    %c0_i32_2 = arith.constant 0 : i32
    return %arg0, %c0_i32, %c0_i32_0, %c0_i32_1 : i32, i32, i32, i32
  }
}

module attributes {stable_mosaic.version = 11 : i64} {
  func.func @_fc1_partial_kernel(%arg0: i32, %arg1: i32, %arg2: memref<2x384xf32, #tpu.memory_space<vmem>>, %arg3: memref<384x200xf32, #tpu.memory_space<vmem>>, %arg4: memref<1x2x200xf32, #tpu.memory_space<vmem>>, %arg5: memref<2x200xf32, #tpu.memory_space<vmem>>) attributes {dimension_semantics = [#tpu.dimension_semantics<parallel>, #tpu.dimension_semantics<arbitrary>], iteration_bounds = array<i64: 2, 2>, scalar_prefetch = 0 : i64, scratch_operands = 1 : i64, tpu.core_type = #tpu.core_type<tc>, window_params = [{transform_indices = @transform_0, window_bounds = array<i64: 2, 384>}, {transform_indices = @transform_1, window_bounds = array<i64: 384, 200>}, {transform_indices = @transform_2, window_bounds = array<i64: 1, 2, 200>}]} {
    %c0_i32 = arith.constant 0 : i32
    %0 = arith.cmpi eq, %arg1, %c0_i32 : i32
    %1 = arith.extui %0 : i1 to i32
    %c0_i32_0 = arith.constant 0 : i32
    %2 = arith.cmpi ne, %1, %c0_i32_0 : i32
    scf.if %2 {
      %cst_9 = arith.constant 0.000000e+00 : f32
      %12 = vector.broadcast %cst_9 : f32 to vector<2x200xf32>
      %c0_10 = arith.constant 0 : index
      %c0_11 = arith.constant 0 : index
      %13 = vector.load %arg5[%c0_10, %c0_11] : memref<2x200xf32, #tpu.memory_space<vmem>>, vector<2x200xf32>
      tpu.vector_store %arg5[%c0_10, %c0_11], %12 {strides = array<i32>} : memref<2x200xf32, #tpu.memory_space<vmem>>, vector<2x200xf32>,
    } else {
    }
    %c0 = arith.constant 0 : index
    %c0_1 = arith.constant 0 : index
    %3 = vector.load %arg5[%c0, %c0_1] : memref<2x200xf32, #tpu.memory_space<vmem>>, vector<2x200xf32>
    %c0_2 = arith.constant 0 : index
    %c0_3 = arith.constant 0 : index
    %4 = vector.load %arg2[%c0_2, %c0_3] : memref<2x384xf32, #tpu.memory_space<vmem>>, vector<2x384xf32>
    %c0_4 = arith.constant 0 : index
    %c0_5 = arith.constant 0 : index
    %5 = vector.load %arg3[%c0_4, %c0_5] : memref<384x200xf32, #tpu.memory_space<vmem>>, vector<384x200xf32>
    %cst = arith.constant dense<0.000000e+00> : vector<2x200xf32>
    %6 = tpu.matmul %4, %5, %cst {dimension_numbers = #tpu.dot_dimension_numbers<[1], [0], [0], [1], [0, 0, 1, 1], [], []>} : vector<2x384xf32>, vector<384x200xf32>, vector<2x200xf32> -> vector<2x200xf32>
    %7 = arith.addf %3, %6 : vector<2x200xf32>
    %c0_6 = arith.constant 0 : index
    %c0_7 = arith.constant 0 : index
    %8 = vector.load %arg5[%c0_6, %c0_7] : memref<2x200xf32, #tpu.memory_space<vmem>>, vector<2x200xf32>
    tpu.vector_store %arg5[%c0_6, %c0_7], %7 {strides = array<i32>} : memref<2x200xf32, #tpu.memory_space<vmem>>, vector<2x200xf32>,
    %c1_i32 = arith.constant 1 : i32
    %9 = arith.cmpi eq, %arg1, %c1_i32 : i32
    %10 = arith.extui %9 : i1 to i32
    %c0_i32_8 = arith.constant 0 : i32
    %11 = arith.cmpi ne, %10, %c0_i32_8 : i32
    scf.if %11 {
      %c0_9 = arith.constant 0 : index
      %c0_10 = arith.constant 0 : index
      %12 = vector.load %arg5[%c0_9, %c0_10] : memref<2x200xf32, #tpu.memory_space<vmem>>, vector<2x200xf32>
      %c0_11 = arith.constant 0 : index
      %c0_12 = arith.constant 0 : index
      %c0_13 = arith.constant 0 : index
      %13 = vector.load %arg4[%c0_11, %c0_12, %c0_13] : memref<1x2x200xf32, #tpu.memory_space<vmem>>, vector<1x2x200xf32>
      %14 = vector.shape_cast %13 : vector<1x2x200xf32> to vector<2x200xf32>
      %15 = vector.shape_cast %12 : vector<2x200xf32> to vector<1x2x200xf32>
      tpu.vector_store %arg4[%c0_11, %c0_12, %c0_13], %15 {strides = array<i32>} : memref<1x2x200xf32, #tpu.memory_space<vmem>>, vector<1x2x200xf32>,
    } else {
    }
    return
  }
  func.func @transform_0(%arg0: i32, %arg1: i32) -> (i32, i32) {
    %c2_i32 = arith.constant 2 : i32
    %0 = arith.muli %arg0, %c2_i32 : i32
    %1 = arith.addi %0, %arg1 : i32
    %c0_i32 = arith.constant 0 : i32
    %c0_i32_0 = arith.constant 0 : i32
    return %c0_i32, %1 : i32, i32
  }
  func.func @transform_1(%arg0: i32, %arg1: i32) -> (i32, i32) {
    %c2_i32 = arith.constant 2 : i32
    %0 = arith.muli %arg0, %c2_i32 : i32
    %1 = arith.addi %0, %arg1 : i32
    %c0_i32 = arith.constant 0 : i32
    %c0_i32_0 = arith.constant 0 : i32
    return %1, %c0_i32 : i32, i32
  }
  func.func @transform_2(%arg0: i32, %arg1: i32) -> (i32, i32, i32) {
    %c0_i32 = arith.constant 0 : i32
    %c0_i32_0 = arith.constant 0 : i32
    %c0_i32_1 = arith.constant 0 : i32
    return %arg0, %c0_i32, %c0_i32_0 : i32, i32, i32
  }
}

module attributes {stable_mosaic.version = 11 : i64} {
  func.func @_fc_tail_kernel(%arg0: memref<2x2x200xf32, #tpu.memory_space<vmem>>, %arg1: memref<1x200xf32, #tpu.memory_space<vmem>>, %arg2: memref<200x100xf32, #tpu.memory_space<vmem>>, %arg3: memref<1x100xf32, #tpu.memory_space<vmem>>, %arg4: memref<100x4xf32, #tpu.memory_space<vmem>>, %arg5: memref<1x4xf32, #tpu.memory_space<vmem>>, %arg6: memref<2x4xf32, #tpu.memory_space<vmem>>) attributes {dimension_semantics = [], scalar_prefetch = 0 : i64, scratch_operands = 0 : i64, tpu.core_type = #tpu.core_type<tc>} {
    %c0 = arith.constant 0 : index
    %c0_0 = arith.constant 0 : index
    %c0_1 = arith.constant 0 : index
    %0 = vector.load %arg0[%c0, %c0_0, %c0_1] : memref<2x2x200xf32, #tpu.memory_space<vmem>>, vector<2x2x200xf32>
    %cst = arith.constant dense<0.000000e+00> : vector<2x200xf32>
    %1 = vector.multi_reduction <add>, %0, %cst [0] : vector<2x2x200xf32> to vector<2x200xf32>
    %c0_2 = arith.constant 0 : index
    %c0_3 = arith.constant 0 : index
    %2 = vector.load %arg1[%c0_2, %c0_3] : memref<1x200xf32, #tpu.memory_space<vmem>>, vector<1x200xf32>
    %3 = vector.broadcast %2 : vector<1x200xf32> to vector<2x200xf32>
    %4 = arith.addf %1, %3 : vector<2x200xf32>
    %cst_4 = arith.constant 0.000000e+00 : f32
    %5 = vector.broadcast %cst_4 : f32 to vector<2x200xf32>
    %6 = arith.maximumf %4, %5 : vector<2x200xf32>
    %c0_5 = arith.constant 0 : index
    %c0_6 = arith.constant 0 : index
    %7 = vector.load %arg2[%c0_5, %c0_6] : memref<200x100xf32, #tpu.memory_space<vmem>>, vector<200x100xf32>
    %cst_7 = arith.constant dense<0.000000e+00> : vector<2x100xf32>
    %8 = tpu.matmul %6, %7, %cst_7 {dimension_numbers = #tpu.dot_dimension_numbers<[1], [0], [0], [1], [0, 0, 1, 1], [], []>} : vector<2x200xf32>, vector<200x100xf32>, vector<2x100xf32> -> vector<2x100xf32>
    %c0_8 = arith.constant 0 : index
    %c0_9 = arith.constant 0 : index
    %9 = vector.load %arg3[%c0_8, %c0_9] : memref<1x100xf32, #tpu.memory_space<vmem>>, vector<1x100xf32>
    %10 = vector.broadcast %9 : vector<1x100xf32> to vector<2x100xf32>
    %11 = arith.addf %8, %10 : vector<2x100xf32>
    %cst_10 = arith.constant 0.000000e+00 : f32
    %12 = vector.broadcast %cst_10 : f32 to vector<2x100xf32>
    %13 = arith.maximumf %11, %12 : vector<2x100xf32>
    %c0_11 = arith.constant 0 : index
    %c0_12 = arith.constant 0 : index
    %14 = vector.load %arg4[%c0_11, %c0_12] : memref<100x4xf32, #tpu.memory_space<vmem>>, vector<100x4xf32>
    %cst_13 = arith.constant dense<0.000000e+00> : vector<2x4xf32>
    %15 = tpu.matmul %13, %14, %cst_13 {dimension_numbers = #tpu.dot_dimension_numbers<[1], [0], [0], [1], [0, 0, 1, 1], [], []>} : vector<2x100xf32>, vector<100x4xf32>, vector<2x4xf32> -> vector<2x4xf32>
    %c0_14 = arith.constant 0 : index
    %c0_15 = arith.constant 0 : index
    %16 = vector.load %arg5[%c0_14, %c0_15] : memref<1x4xf32, #tpu.memory_space<vmem>>, vector<1x4xf32>
    %17 = vector.broadcast %16 : vector<1x4xf32> to vector<2x4xf32>
    %18 = arith.addf %15, %17 : vector<2x4xf32>
    %c0_16 = arith.constant 0 : index
    %c0_17 = arith.constant 0 : index
    %19 = vector.load %arg6[%c0_16, %c0_17] : memref<2x4xf32, #tpu.memory_space<vmem>>, vector<2x4xf32>
    tpu.vector_store %arg6[%c0_16, %c0_17], %18 {strides = array<i32>} : memref<2x4xf32, #tpu.memory_space<vmem>>, vector<2x4xf32>,
    return
  }
}

</mosaic_0001>

<bundles_post_ra>
// kernel: pigs_forward.4
= control target key start
LH: loop header
LB: loop body
LE: loop exit
PB: predicated region body
PF: predicated region fallthrough
CT: control target
= control target key end

     0   :  { %s801_s9 = smov 0   ;;  %s803_s10 = smov 0   ;;  %s974_s0 = inlined_call_operand.vmem [shape: f32[2,1536], index: 0, kind: input, shape index: {}]   ;;  %s975_s1 = inlined_call_operand.vmem [shape: f32[1536,200], index: 1, kind: input, shape index: {}]   ;;  %s976_s2 = inlined_call_operand.vmem [shape: f32[2,2,200], index: 2, kind: output, shape index: {}]  }
   0x1   :  { %s805_s11 = smov 0   ;;  %s807_s12 = smov 0  }
   0x2   :  { %s809_s13 = smov 0  }
   0x3 LB: > { %s21_s14 = sadd.s32 1, %s773_s11  ;;  %s24_s15 = sadd.s32 1, %s777_s12  ;;  %s781_s13 = sphi %s809_s13, %s12_s13   ;;  %s777_s12 = sphi %s807_s12, %s980_s12   ;;  %s773_s11 = sphi %s805_s11, %s979_s11   ;;  %s769_s10 = sphi %s803_s10, %s978_s10   ;;  %s765_s9 = sphi %s801_s9, %s977_s9  }
   0x4   : > { %p22_p0 = scmp.ge.s32.totalorder %s21_s14, 2  ;;  %p587_p1 = scmp.ge.s32.totalorder %s781_s13, 1 }
   0x5   : > { %p153_p2 = scmp.lt.s32.totalorder %s781_s13, 5 }
   0x6   : > { %s982_s14 = smov (%p22_p0, %s21_s14), 0  ;;  %s984_s15 = smov (!%p22_p0, %s24_s15), %s777_s12 }
   0x7   : > { %p154_p3 = pnand %p587_p1, %p153_p2  ;;  %p26_p4 = scmp.ge.s32.totalorder %s984_s15, 2 }
   0x8   : > { %s588_s16 = sshll.u32 (!%p154_p3), %s769_s10, 1  ;;  %p206_p7 = scmp.lt.s32.totalorder (!%p154_p3), %s769_s10, 1 }
   0x9   : > { %s986_s15 = smov (%p26_p4, %s984_s15), 0  ;;  %157 = sbr.rel (%p154_p3) target bundleno = 323 (0x143), region = 28 }
   0xa   : > { %s186_s17 = sadd.s32 (!%p154_p3), %s765_s9, %s588_s16  ;;  %p595_p8 = scmp.ne.s32.totalorder (!%p154_p3), %s765_s9, 0 }
   0xb   : > { %s187_s18 = smul.u32 (!%p154_p3), 3, %s186_s17 }
   0xc   : > { %s197_s19 = smul.u32 (!%p154_p3), 48, %s186_s17 }
   0xd   : > { %p188_p5 = scmp.lt.s32.totalorder (!%p154_p3), %s187_s18, 11 }
   0xe   : > { %p198_p6 = scmp.lt.s32.totalorder (!%p154_p3), %s197_s19, 191 }
  0x10   : > { %s988_s18 = smov (!%p188_p5, %s187_s18), 11  ;;  %s990_s19 = smov (!%p198_p6, %s197_s19), 191 }
  0x11   : > { %s589_s20 = sshll.u32 %s988_s18, 1  ;;  %s599_s24 = sshll.u32 %s990_s19, 4  ;;  %vm215_vm0 = vcmask (!%p595_p8), 1041408   ;;  %vm216_vm1 = vcmask (!%p595_p8), 584706   ;;  %v783_v0 = vmov (!%p595_p8), 0.0  }
  0x12   : > { %s837_s23 = scalar_lea.vmem %s974_s0, %s589_s20  ;;  %s842_s27 = scalar_lea.vmem %s975_s1, %s599_s24  ;;  %vm217_vm2 = vmor (!%p595_p8), %vm216_vm1, %vm215_vm0 }
  0x13   : > { %s992_s10 = smov (!%p206_p7, %s769_s10), 1  ;;  %214 = sbr.rel (%p595_p8) target bundleno = 26 (0x1a), region = 32 }
  0x14   : > { %s600_s28 = sshll.u32 %s992_s10, 2  ;;  %218 = vst.msk [vmem:[#allocation2] sm:$0xf] (!%p595_p8), %vm217_vm2, %v783_v0 }
  0x15   : > { %s847_s3 = scalar_lea.vmem %s976_s2, %s600_s28 }
  0x1a PF: > { %v222_v1 = vld [vmem:[%s842_s27 + $0x8] sm:$0xff]  ;;  %v224_v2 = vld [vmem:[%s842_s27 + $0x18] sm:$0xff]  ;;  %v221_v3 = vld [vmem:[%s842_s27] sm:$0xff]  ;;  %v784_v8 = vmov 0.0   ;;  %vm491_vm3 = vcmask 1041408   ;;  %vm492_vm4 = vcmask 584706  }
  0x1b   : > { %v601_v4 = vpack.c.bf16 %v224_v2, %v222_v1  ;;  %v223_v5 = vld [vmem:[%s842_s27 + $0x10] sm:$0xff]  ;;  %v226_v6 = vld [vmem:[%s842_s27 + $0x28] sm:$0xff]  ;;  %v228_v7 = vld [vmem:[%s842_s27 + $0x38] sm:$0xff]  ;;  %472 = vmatprep.mubr.f32.mxu0 %v784_v8  ;;  %p596_p9 = scmp.ne.s32.totalorder %s765_s9, 1 }
  0x1c   : > { %v603_v9 = vpack.c.bf16 %v223_v5, %v221_v3  ;;  %v605_v10 = vpack.c.bf16 %v228_v7, %v226_v6  ;;  %v225_v11 = vld [vmem:[%s842_s27 + $0x20] sm:$0xff]  ;;  %v227_v12 = vld [vmem:[%s842_s27 + $0x30] sm:$0xff]  ;;  %v230_v13 = vld [vmem:[%s842_s27 + $0x48] sm:$0xff]  ;;  %v322_v6 = vlaneseq }
  0x1d   : > { %602 = vmatprep.subr.bf16.mxu1 %v601_v4  ;;  %v232_v14 = vld [vmem:[%s842_s27 + $0x58] sm:$0xff]  ;;  %v607_v15 = vpack.c.bf16 %v227_v12, %v225_v11  ;;  %v229_v17 = vld [vmem:[%s842_s27 + $0x40] sm:$0xff]  ;;  %v231_v18 = vld [vmem:[%s842_s27 + $0x50] sm:$0xff]  ;;  %v785_v4 = vmov 1983009808  }
  0x1e   : > { %604 = vmatpush1.bf16.msra.mxu1 %v603_v9  ;;  %v609_v16 = vpack.c.bf16 %v232_v14, %v230_v13  ;;  %v234_v19 = vld [vmem:[%s842_s27 + $0x68] sm:$0xff]  ;;  %v236_v20 = vld [vmem:[%s842_s27 + $0x78] sm:$0xff]  ;;  %v611_v21 = vpack.c.bf16 %v231_v18, %v229_v17  ;;  %v233_v23 = vld [vmem:[%s842_s27 + $0x60] sm:$0xff]  ;;  %v320_v5 = vunpack.c.l.s4 %v785_v4 }
  0x1f   : > { %606 = vmatprep.subr.bf16.mxu1 %v605_v10  ;;  %v613_v22 = vpack.c.bf16 %v236_v20, %v234_v19  ;;  %v235_v24 = vld [vmem:[%s842_s27 + $0x70] sm:$0xff]  ;;  %v238_v25 = vld [vmem:[%s842_s27 + $0x88] sm:$0xff]  ;;  %v240_v26 = vld [vmem:[%s842_s27 + $0x98] sm:$0xff]  ;;  %v323_v20 = vshrl.u32 %v322_v6, 7 }
  0x20   : > { %v286_v27 = vld [vmem:[%s842_s27 + $0x208] sm:$0xff]  ;;  %v288_v28 = vld [vmem:[%s842_s27 + $0x218] sm:$0xff]  ;;  %v615_v29 = vpack.c.bf16 %v235_v24, %v233_v23  ;;  %v237_v30 = vld [vmem:[%s842_s27 + $0x80] sm:$0xff]  ;;  %v617_v34 = vpack.c.bf16 %v240_v26, %v238_v25  ;;  %v321_v19 = vunpack.c.0.s8 %v320_v5 }
  0x21   : > { %v665_v31 = vpack.c.bf16 %v288_v28, %v286_v27  ;;  %v285_v32 = vld [vmem:[%s842_s27 + $0x200] sm:$0xff]  ;;  %v287_v33 = vld [vmem:[%s842_s27 + $0x210] sm:$0xff]  ;;  %v290_v37 = vld [vmem:[%s842_s27 + $0x228] sm:$0xff] }
  0x22   : > { %608 = vmatpush1.bf16.msra.mxu1 %v607_v15  ;;  %v239_v35 = vld [vmem:[%s842_s27 + $0x90] sm:$0xff]  ;;  %v667_v36 = vpack.c.bf16 %v287_v33, %v285_v32  ;;  %v292_v38 = vld [vmem:[%s842_s27 + $0x238] sm:$0xff]  ;;  %v242_v39 = vld [vmem:[%s842_s27 + $0xa8] sm:$0xff]  ;;  %v912_v33 = vsub.s32 %v321_v19, %v323_v20 }
  0x23   : > { %610 = vmatprep.subr.bf16.mxu1 %v609_v16  ;;  %v244_v40 = vld [vmem:[%s842_s27 + $0xb8] sm:$0xff]  ;;  %666 = vmatprep.subr.bf16.mxu0 %v665_v31  ;;  %v669_v41 = vpack.c.bf16 %v292_v38, %v290_v37  ;;  %v289_v42 = vld [vmem:[%s842_s27 + $0x220] sm:$0xff]  ;;  %v291_v43 = vld [vmem:[%s842_s27 + $0x230] sm:$0xff]  ;;  %v619_v44 = vpack.c.bf16 %v239_v35, %v237_v30 }
  0x24   : > { %668 = vmatpush1.bf16.msra.mxu0 %v667_v36  ;;  %v241_v45 = vld [vmem:[%s842_s27 + $0xa0] sm:$0xff]  ;;  %v671_v46 = vpack.c.bf16 %v291_v43, %v289_v42  ;;  %v294_v47 = vld [vmem:[%s842_s27 + $0x248] sm:$0xff]  ;;  %v296_v48 = vld [vmem:[%s842_s27 + $0x258] sm:$0xff]  ;;  %v621_v49 = vpack.c.bf16 %v244_v40, %v242_v39 }
  0x25   : > { %670 = vmatprep.subr.bf16.mxu0 %v669_v41  ;;  %v243_v50 = vld [vmem:[%s842_s27 + $0xb0] sm:$0xff]  ;;  %v673_v51 = vpack.c.bf16 %v296_v48, %v294_v47  ;;  %v293_v52 = vld [vmem:[%s842_s27 + $0x240] sm:$0xff]  ;;  %v246_v54 = vld [vmem:[%s842_s27 + $0xc8] sm:$0xff] }
  0x26   : > { %612 = vmatpush1.bf16.msra.mxu1 %v611_v21  ;;  %v295_v53 = vld [vmem:[%s842_s27 + $0x250] sm:$0xff]  ;;  %v248_v55 = vld [vmem:[%s842_s27 + $0xd8] sm:$0xff]  ;;  %v298_v56 = vld [vmem:[%s842_s27 + $0x268] sm:$0xff]  ;;  %v623_v59 = vpack.c.bf16 %v243_v50, %v241_v45 }
  0x27   : > { %614 = vmatprep.subr.bf16.mxu1 %v613_v22  ;;  %v675_v57 = vpack.c.bf16 %v295_v53, %v293_v52  ;;  %v300_v58 = vld [vmem:[%s842_s27 + $0x278] sm:$0xff]  ;;  %v245_v60 = vld [vmem:[%s842_s27 + $0xc0] sm:$0xff]  ;;  %v299_v63 = vld [vmem:[%s842_s27 + $0x270] sm:$0xff]  ;;  %v625_v0 = vpack.c.bf16 %v248_v55, %v246_v54 }
  0x28   : > { %672 = vmatpush1.bf16.msra.mxu0 %v671_v46  ;;  %v677_v61 = vpack.c.bf16 %v300_v58, %v298_v56  ;;  %v297_v62 = vld [vmem:[%s842_s27 + $0x260] sm:$0xff]  ;;  %v247_v1 = vld [vmem:[%s842_s27 + $0xd0] sm:$0xff]  ;;  %v302_v2 = vld [vmem:[%s842_s27 + $0x288] sm:$0xff] }
  0x29   : > { %674 = vmatprep.subr.bf16.mxu0 %v673_v51  ;;  %v304_v3 = vld [vmem:[%s842_s27 + $0x298] sm:$0xff]  ;;  %v250_v7 = vld [vmem:[%s842_s27 + $0xe8] sm:$0xff]  ;;  %v679_v9 = vpack.c.bf16 %v299_v63, %v297_v62  ;;  %v627_v10 = vpack.c.bf16 %v247_v1, %v245_v60  ;;  %v249_v11 = vld [vmem:[%s842_s27 + $0xe0] sm:$0xff] }
  0x2a   : > { %616 = vmatpush1.bf16.msra.mxu1 %v615_v29  ;;  %v252_v8 = vld [vmem:[%s842_s27 + $0xf8] sm:$0xff]  ;;  %v681_v12 = vpack.c.bf16 %v304_v3, %v302_v2  ;;  %v301_v13 = vld [vmem:[%s842_s27 + $0x280] sm:$0xff]  ;;  %v303_v14 = vld [vmem:[%s842_s27 + $0x290] sm:$0xff] }
  0x2b   : > { %618 = vmatprep.subr.bf16.mxu1 %v617_v34  ;;  %v629_v15 = vpack.c.bf16 %v252_v8, %v250_v7  ;;  %v251_v16 = vld [vmem:[%s842_s27 + $0xf0] sm:$0xff]  ;;  %v306_v17 = vld [vmem:[%s842_s27 + $0x2a8] sm:$0xff]  ;;  %v308_v18 = vld [vmem:[%s842_s27 + $0x2b8] sm:$0xff]  ;;  %v683_v23 = vpack.c.bf16 %v303_v14, %v301_v13 }
  0x2c   : > { %676 = vmatpush1.bf16.msra.mxu0 %v675_v57  ;;  %v254_v21 = vld [vmem:[%s842_s27 + $0x108] sm:$0xff]  ;;  %v256_v22 = vld [vmem:[%s842_s27 + $0x118] sm:$0xff]  ;;  %v631_v24 = vpack.c.bf16 %v251_v16, %v249_v11  ;;  %v253_v25 = vld [vmem:[%s842_s27 + $0x100] sm:$0xff]  ;;  %v685_v26 = vpack.c.bf16 %v308_v18, %v306_v17 }
  0x2d   : > { %678 = vmatprep.subr.bf16.mxu0 %v677_v61  ;;  %v305_v27 = vld [vmem:[%s842_s27 + $0x2a0] sm:$0xff]  ;;  %v307_v28 = vld [vmem:[%s842_s27 + $0x2b0] sm:$0xff]  ;;  %v633_v29 = vpack.c.bf16 %v256_v22, %v254_v21  ;;  %v310_v31 = vld [vmem:[%s842_s27 + $0x2c8] sm:$0xff] }
  0x2e   : > { %620 = vmatpush1.bf16.msra.mxu1 %v619_v44  ;;  %v255_v30 = vld [vmem:[%s842_s27 + $0x110] sm:$0xff]  ;;  %v312_v32 = vld [vmem:[%s842_s27 + $0x2d8] sm:$0xff]  ;;  %v258_v34 = vld [vmem:[%s842_s27 + $0x128] sm:$0xff]  ;;  %v687_v37 = vpack.c.bf16 %v307_v28, %v305_v27 }
  0x2f   : > { %622 = vmatprep.subr.bf16.mxu1 %v621_v49  ;;  %v260_v35 = vld [vmem:[%s842_s27 + $0x138] sm:$0xff]  ;;  %v257_v36 = vld [vmem:[%s842_s27 + $0x120] sm:$0xff]  ;;  %v635_v38 = vpack.c.bf16 %v255_v30, %v253_v25  ;;  %v689_v39 = vpack.c.bf16 %v312_v32, %v310_v31  ;;  %v311_v41 = vld [vmem:[%s842_s27 + $0x2d0] sm:$0xff] }
  0x30   : > { %680 = vmatpush1.bf16.msra.mxu0 %v679_v9  ;;  %v309_v40 = vld [vmem:[%s842_s27 + $0x2c0] sm:$0xff]  ;;  %v637_v43 = vpack.c.bf16 %v260_v35, %v258_v34  ;;  %v259_v44 = vld [vmem:[%s842_s27 + $0x130] sm:$0xff]  ;;  %v314_v45 = vld [vmem:[%s842_s27 + $0x2e8] sm:$0xff] }
  0x31   : > { %682 = vmatprep.subr.bf16.mxu0 %v681_v12  ;;  %v220_v42 = vld [vmem:[%s837_s23] sm:$0x3f]  ;;  %v316_v46 = vld [vmem:[%s842_s27 + $0x2f8] sm:$0xff]  ;;  %v262_v48 = vld [vmem:[%s842_s27 + $0x148] sm:$0xff]  ;;  %v691_v50 = vpack.c.bf16 %v311_v41, %v309_v40  ;;  %v639_v52 = vpack.c.bf16 %v259_v44, %v257_v36 }
  0x32   : > { %624 = vmatpush1.bf16.msra.mxu1 %v623_v59  ;;  %v924_v47 = vrot.slane %v220_v42, %v912_v33  ;;  %v264_v49 = vld [vmem:[%s842_s27 + $0x158] sm:$0xff]  ;;  %v693_v53 = vpack.c.bf16 %v316_v46, %v314_v45  ;;  %v313_v54 = vld [vmem:[%s842_s27 + $0x2e0] sm:$0xff]  ;;  %v315_v55 = vld [vmem:[%s842_s27 + $0x2f0] sm:$0xff]  ;;  %v318_v61 = vcombine.high %v220_v42, %v220_v42 }
  0x33   : > { %626 = vmatprep.subr.bf16.mxu1 %v625_v0  ;;  %v641_v56 = vpack.c.bf16 %v264_v49, %v262_v48  ;;  %v261_v57 = vld [vmem:[%s842_s27 + $0x140] sm:$0xff]  ;;  %v263_v58 = vld [vmem:[%s842_s27 + $0x150] sm:$0xff]  ;;  %v266_v59 = vld [vmem:[%s842_s27 + $0x168] sm:$0xff]  ;;  %v695_v62 = vpack.c.bf16 %v315_v55, %v313_v54 }
  0x34   : > { %684 = vmatpush1.bf16.msra.mxu0 %v683_v23  ;;  %v333_v51 = vcombine.high %v924_v47, %v924_v47  ;;  %v268_v60 = vld [vmem:[%s842_s27 + $0x178] sm:$0xff]  ;;  %v643_v63 = vpack.c.bf16 %v263_v58, %v261_v57  ;;  %v265_v1 = vld [vmem:[%s842_s27 + $0x160] sm:$0xff]  ;;  %v267_v2 = vld [vmem:[%s842_s27 + $0x170] sm:$0xff]  ;;  %v332_v5 = vrot.slane %v318_v61, %v912_v33 }
  0x35   : > { %686 = vmatprep.subr.bf16.mxu0 %v685_v26  ;;  %v645_v0 = vpack.c.bf16 %v268_v60, %v266_v59  ;;  %v270_v3 = vld [vmem:[%s842_s27 + $0x188] sm:$0xff]  ;;  %v272_v4 = vld [vmem:[%s842_s27 + $0x198] sm:$0xff]  ;;  %v647_v6 = vpack.c.bf16 %v267_v2, %v265_v1  ;;  %v269_v8 = vld [vmem:[%s842_s27 + $0x180] sm:$0xff] }
  0x36   : > { %628 = vmatpush1.bf16.msra.mxu1 %v627_v10  ;;  %401 = vmatprep.mubr.f32.mxu1 %v333_v51  ;;  %v649_v7 = vpack.c.bf16 %v272_v4, %v270_v3  ;;  %v271_v9 = vld [vmem:[%s842_s27 + $0x190] sm:$0xff]  ;;  %v274_v10 = vld [vmem:[%s842_s27 + $0x1a8] sm:$0xff]  ;;  %v276_v11 = vld [vmem:[%s842_s27 + $0x1b8] sm:$0xff] }
  0x37   : > { %630 = vmatprep.subr.bf16.mxu1 %v629_v15  ;;  %v651_v12 = vpack.c.bf16 %v271_v9, %v269_v8  ;;  %v653_v13 = vpack.c.bf16 %v276_v11, %v274_v10  ;;  %v273_v14 = vld [vmem:[%s842_s27 + $0x1a0] sm:$0xff]  ;;  %v275_v15 = vld [vmem:[%s842_s27 + $0x1b0] sm:$0xff]  ;;  %v278_v16 = vld [vmem:[%s842_s27 + $0x1c8] sm:$0xff] }
  0x38   : > { %688 = vmatpush1.bf16.msra.mxu0 %v687_v37  ;;  %v280_v17 = vld [vmem:[%s842_s27 + $0x1d8] sm:$0xff]  ;;  %v655_v18 = vpack.c.bf16 %v275_v15, %v273_v14  ;;  %v277_v20 = vld [vmem:[%s842_s27 + $0x1c0] sm:$0xff]  ;;  %v279_v21 = vld [vmem:[%s842_s27 + $0x1d0] sm:$0xff] }
  0x39   : > { %690 = vmatprep.subr.bf16.mxu0 %v689_v39  ;;  %v657_v19 = vpack.c.bf16 %v280_v17, %v278_v16  ;;  %v282_v22 = vld [vmem:[%s842_s27 + $0x1e8] sm:$0xff]  ;;  %v284_v23 = vld [vmem:[%s842_s27 + $0x1f8] sm:$0xff]  ;;  %v281_v26 = vld [vmem:[%s842_s27 + $0x1e0] sm:$0xff] }
  0x3a   : > { %632 = vmatpush1.bf16.msra.mxu1 %v631_v24  ;;  %v659_v24 = vpack.c.bf16 %v279_v21, %v277_v20  ;;  %v661_v25 = vpack.c.bf16 %v284_v23, %v282_v22  ;;  %v283_v27 = vld [vmem:[%s842_s27 + $0x1f0] sm:$0xff]  ;;  %v219_v37 = vld [vmem:[#allocation2] sm:$0xf]  ;;  %vm493_vm5 = vmor %vm492_vm4, %vm491_vm3 }
  0x3b   : > { %634 = vmatprep.subr.bf16.mxu1 %v633_v29  ;;  %v663_v28 = vpack.c.bf16 %v283_v27, %v281_v26 }
  0x3c   : > { %692 = vmatpush1.bf16.msra.mxu0 %v691_v50 }
  0x3d   : > { %694 = vmatprep.subr.bf16.mxu0 %v693_v53 }
  0x3e   : > { %636 = vmatpush1.bf16.msra.mxu1 %v635_v38 }
  0x3f   : > { %638 = vmatprep.subr.bf16.mxu1 %v637_v43 }
  0x40   : > { %696 = vmatpush1.bf16.msra.mxu0 %v695_v62 }
  0x42   : > { %640 = vmatpush1.bf16.msra.mxu1 %v639_v52 }
  0x43   : > { %642 = vmatprep.subr.bf16.mxu1 %v641_v56  ;;  %473 = vmatmul.mubr.f32.vlgmr.msra.gmra.mrb[0].mxu0 %v332_v5 }
  0x46   : > { %644 = vmatpush1.bf16.msra.mxu1 %v643_v63 }
  0x47   : > { %646 = vmatprep.subr.bf16.mxu1 %v645_v0 }
  0x4a   : > { %648 = vmatpush1.bf16.msra.mxu1 %v647_v6 }
  0x4b   : > { %650 = vmatprep.subr.bf16.mxu1 %v649_v7 }
  0x4e   : > { %652 = vmatpush1.bf16.msra.mxu1 %v651_v12 }
  0x4f   : > { %654 = vmatprep.subr.bf16.mxu1 %v653_v13 }
  0x52   : > { %656 = vmatpush1.bf16.msra.mxu1 %v655_v18 }
  0x53   : > { %658 = vmatprep.subr.bf16.mxu1 %v657_v19 }
  0x56   : > { %660 = vmatpush1.bf16.msra.mxu1 %v659_v24 }
  0x57   : > { %662 = vmatprep.subr.bf16.mxu1 %v661_v25 }
  0x5a   : > { %664 = vmatpush1.bf16.msra.mxu1 %v663_v28 }
  0x5d   : > { %402 = vmatmul.mubr.f32.vlgmr.msra.gmra.mrb[0].mxu1 %v924_v47 }
 0x116   : > { %v474_v29 = vpop.f32.mrb[0].mxu0 }
 0x117   : > { %v476_v30 = vpop.f32.mrb[1].mxu0 }
 0x130   : > { %v403_v31 = vpop.f32.mrb[0].mxu1 }
 0x131   : > { %v475_v32 = vadd.f32 %v474_v29, %v403_v31  ;;  %v405_v34 = vpop.f32.mrb[1].mxu1 }
 0x132   : > { %v477_v35 = vadd.f32 %v476_v30, %v405_v34 }
 0x134   : > { %v481_v36 = vcombine.low %v475_v32, %v477_v35  ;;  %498 = sbr.rel (%p596_p9) target bundleno = 323 (0x143), region = 36 }
 0x136   : > { %v488_v38 = vrot.slane %v481_v36, %v912_v33 }
 0x138   : > { %v490_v39 = vadd.f32 %v488_v38, %v219_v37 }
 0x13a   : > { %494 = vst.msk [vmem:[#allocation2] sm:$0xf] %vm493_vm5, %v490_v39 }
 0x141   : > { %v499_v40 = vld [vmem:[#allocation2] sm:$0xf] }
 0x142   : > { %500 = vst.msk [vmem:[%s847_s3] sm:$0xf] %vm493_vm5, %v499_v40 }
 0x143 PF: > { %s12_s13 = sadd.s32 1, %s781_s13   ;;  %s977_s9 = smov %s773_s11 }
 0x144   : > { %p9_p10 = scmp.ge.s32.totalorder %s12_s13, 6   ;;  %s978_s10 = smov %s777_s12 }
 0x145   : > { %s979_s11 = smov %s982_s14  ;;  %s980_s12 = smov %s986_s15 }
 0x146   :  { %11 = sbr.rel (!%p9_p10) target bundleno = 3 (0x3), region = 69 }

// kernel: pigs_forward.3
= control target key start
LH: loop header
LB: loop body
LE: loop exit
PB: predicated region body
PF: predicated region fallthrough
CT: control target
= control target key end

     0   :  { %s3334_s0 = inlined_call_operand.vmem [shape: f32[144], index: 0, kind: input, shape index: {}]   ;;  %s3335_s4 = inlined_call_operand.vmem [shape: f32[2,3,36,36], index: 4, kind: input, shape index: {}]   ;;  %s3336_s5 = inlined_call_operand.hbm [shape: f32[35,17], index: 5, kind: input, shape index: {}]   ;;  %s3337_s6 = inlined_call_operand.hbm [shape: f32[35,17], index: 6, kind: input, shape index: {}]   ;;  %s3338_s7 = inlined_call_operand.hbm [shape: f32[16,8], index: 7, kind: input, shape index: {}]   ;;  %s3339_s8 = inlined_call_operand.hbm [shape: f32[16,8], index: 8, kind: input, shape index: {}]   ;;  %s3340_s9 = inlined_call_operand.vmem [shape: f32[2,24,8,8], index: 9, kind: output, shape index: {}]   ;;  %s3341_s2 = inlined_call_operand.vmem [shape: f32[1152], index: 2, kind: input, shape index: {}]   ;;  %s3342_s1 = inlined_call_operand.hbm [shape: f32[12], index: 1, kind: input, shape index: {}]   ;;  %s3343_s3 = inlined_call_operand.hbm [shape: f32[24], index: 3, kind: input, shape index: {}]  }
   0x1   :  { %s14_s11 = sshll.u32 %s3334_s0, 4  ;;  %s20_s14 = sshll.u32 %s3341_s2, 4  ;;  %s15_s11 = int_to_ptr.vmem [resolvable:$true] %s14_s11  ;;  %s21_s14 = int_to_ptr.vmem [resolvable:$true] %s20_s14 }
   0x2   :  { %s2299_s15 = scalar_lea.vmem %s15_s11, 32  ;;  %p2304_p1 = scmp.lt.s32.totalorder %s15_s11, %s15_s11 }
   0x3   :  { %p2300_p0 = scmp.ne.s32.totalorder %s15_s11, %s2299_s15  ;;  %p2305_p2 = scmp.lt.s32.totalorder %s2299_s15, %s2299_s15 }
   0x5   :  { %p2306_p3 = por %p2305_p2, %p2304_p1 }
   0x7   :  { %p2307_p4 = pnand %p2306_p3, %p2300_p0 }
   0x9   :  { %2310 = shalt.err (!%p2307_p4)  }
   0xa   :  { %s2501_s16 = smov [#allocation4]   ;;  %s2311_s19 = scalar_lea.hbm %s3342_s1, 16 }
   0xb   :  { %17 = dma.vmem_to_smem %s15_s11, 32, %s2501_s16, [#allocation3] }
   0xc   :  { %p2312_p5 = scmp.ne.s32.totalorder %s3342_s1, %s2311_s19  ;;  %p2315_p6 = scmp.lt.u32.totalorder %s2311_s19, %s3342_s1 }
   0xe   :  { %p2317_p7 = pnand %p2315_p6, %p2312_p5 }
  0x10   :  { %2320 = shalt.err (!%p2317_p7)  }
  0x11   :  { %s2502_s22 = smov [#allocation5]   ;;  %s2321_s25 = scalar_lea.vmem %s21_s14, 144 }
  0x12   :  { %19 = dma.hbm_to_smem %s3342_s1, 16, %s2502_s22, [#allocation3] }
  0x13   :  { %p2322_p8 = scmp.ne.s32.totalorder %s21_s14, %s2321_s25  ;;  %s2325_s26 = scalar_lea.vmem %s21_s14, 256 }
  0x14   :  { %p2326_p9 = scmp.lt.s32.totalorder %s21_s14, %s21_s14  ;;  %p2327_p10 = scmp.lt.s32.totalorder %s2325_s26, %s2321_s25 }
  0x16   :  { %p2328_p11 = por %p2327_p10, %p2326_p9 }
  0x18   :  { %p2329_p12 = pnand %p2328_p11, %p2322_p8 }
  0x1a   :  { %2332 = shalt.err (!%p2329_p12)  }
  0x1b   :  { %s2503_s27 = smov [#allocation6]   ;;  %s2333_s30 = scalar_lea.hbm %s3343_s3, 16 }
  0x1c   :  { %23 = dma.vmem_to_smem %s21_s14, 144, %s2503_s27, [#allocation3] }
  0x1d   :  { %p2334_p13 = scmp.ne.s32.totalorder %s3343_s3, %s2333_s30  ;;  %p2337_p0 = scmp.lt.u32.totalorder %s2333_s30, %s3343_s3 }
  0x1f   :  { %p2339_p1 = pnand %p2337_p0, %p2334_p13 }
  0x21   :  { %2342 = shalt.err (!%p2339_p1)  }
  0x22   :  { %s2504_s13 = smov [#allocation7]  }
  0x23   :  { %25 = dma.hbm_to_smem %s3343_s3, 16, %s2504_s13, [#allocation3] }
  0x24   :  { %2471 = dma.done.wait [#allocation3], 208 }
  0x25   :  { %2472 = vsyncadd [#allocation3], 4294967088 }
  0x26   :  { %27 = sfence }
  0x27   :  { %28 = vsyncpa [#allocation9], 0 }
  0x28   :  { %29 = vsyncpa [#allocation11], 0 }
  0x29   :  { %30 = vsyncpa [#allocation14], 0  ;;  %s2597_s14 = smov 0  }
  0x2a LB: > { %s2603_s17 = sadd.s32 4294967295, %s2487_s14   ;;  %p1993_p2 = scmp.ge.s32.totalorder %s2487_s14, 1  ;;  %s2487_s14 = sphi %s2597_s14, %s36_s14  }
  0x2b   : > { %p177_p3 = scmp.lt.s32.totalorder %s2487_s14, 3  ;;  %p3344_p4 = scmp.eq.s32.totalorder %s2603_s17, 0 }
  0x2c   : > { %s2505_s18 = smov [#allocation10]   ;;  %s2506_s0 = smov [#allocation8]  }
  0x2d   : > { %p2608_p5 = pnand %p1993_p2, %p177_p3  ;;  %s202_s19 = sshll.u32 %s2505_s18, 4  ;;  %s2612_s19 = int_to_ptr.vmem [resolvable:$true] %s202_s19 }
  0x2e   : > { %s189_s20 = sshll.u32 %s2506_s0, 4  ;;  %s2507_s21 = smov [#allocation12]   ;;  %s2616_s20 = int_to_ptr.vmem [resolvable:$true] %s189_s20 }
  0x2f   : > { %s3352_s3 = scalar_select %p2608_p5, 1, 0 }
  0x30   : > { %p2230_p6 = pneg %p2608_p5  ;;  %s215_s22 = sshll.u32 %s2507_s21, 4  ;;  %s2624_s22 = int_to_ptr.vmem [resolvable:$true] %s215_s22 }
  0x31   : > { %s2508_s23 = smov [#allocation13]   ;;  %s2343_s27 = scalar_lea.hbm %s3337_s6, 640 }
  0x32   : > { %p2620_p7 = pnand %p3344_p4, %p2230_p6  ;;  %s2626_s24 = sshll.u32 %s2508_s23, 4  ;;  %s229_s24 = int_to_ptr.vmem [resolvable:$true] %s2626_s24 }
  0x33   : > { %p2344_p8 = scmp.ne.s32.totalorder %s3337_s6, %s2343_s27  ;;  %p2350_p12 = scmp.lt.u32.totalorder %s2343_s27, %s3337_s6 }
  0x34   : > { %p2636_p9 = pneg %p2620_p7 }
  0x36   : > { %p2346_p10 = pnand %p2636_p9, %p2344_p8 }
  0x38   : > { %p2347_p11 = pneg %p2346_p10 }
  0x3a   : > { %p2352_p13 = pnand %p2350_p12, %p2347_p11 }
  0x3c   : > { %2355 = shalt.err (!%p2352_p13)
}
  0x3d   : > { %s2356_s12 = scalar_lea.vmem %s2612_s19, 640  ;;  %p2364_p3 = scmp.lt.s32.totalorder %s2612_s19, %s2612_s19 }
  0x3e   : > { %p2357_p0 = scmp.ne.s32.totalorder %s2612_s19, %s2356_s12  ;;  %p2365_p6 = scmp.lt.s32.totalorder %s2356_s12, %s2356_s12 }
  0x40   : > { %p2359_p1 = pnand %p2357_p0, %p2636_p9  ;;  %p2366_p8 = por %p2365_p6, %p2364_p3 }
  0x42   : > { %p2360_p2 = pneg %p2359_p1 }
  0x44   : > { %p2367_p10 = pnand %p2366_p8, %p2360_p2 }
  0x46   : > { %2370 = shalt.err (!%p2367_p10)
}
  0x47   : > { %s2509_s1 = smov 128   ;;  %s2510_s13 = smov 8  }
  0x48   : > { %2236 = dma.hbm_to_vmem [thread:$0]  (!%p2620_p7), %s3337_s6, 640, %s2612_s19, [#allocation11], %s2509_s1, %s2509_s1, %s2510_s13  }
  0x49   : > { %s2371_s21 = scalar_lea.hbm %s3336_s5, 640 }
  0x4a   : > { %p2372_p11 = scmp.ne.s32.totalorder %s3336_s5, %s2371_s21  ;;  %p2378_p0 = scmp.lt.u32.totalorder %s2371_s21, %s3336_s5 }
  0x4c   : > { %p2374_p12 = pnand %p2372_p11, %p2636_p9 }
  0x4e   : > { %p2375_p13 = pneg %p2374_p12 }
  0x50   : > { %p2380_p1 = pnand %p2378_p0, %p2375_p13 }
  0x52   : > { %2383 = shalt.err (!%p2380_p1)
}
  0x53   : > { %s2384_s19 = scalar_lea.vmem %s2616_s20, 640  ;;  %p2392_p8 = scmp.lt.s32.totalorder %s2616_s20, %s2616_s20 }
  0x54   : > { %p2385_p2 = scmp.ne.s32.totalorder %s2616_s20, %s2384_s19  ;;  %p2393_p10 = scmp.lt.s32.totalorder %s2384_s19, %s2384_s19 }
  0x56   : > { %p2387_p3 = pnand %p2385_p2, %p2636_p9  ;;  %p2394_p11 = por %p2393_p10, %p2392_p8 }
  0x58   : > { %p2388_p6 = pneg %p2387_p3 }
  0x5a   : > { %p2395_p12 = pnand %p2394_p11, %p2388_p6 }
  0x5c   : > { %2398 = shalt.err (!%p2395_p12)
}
  0x5d   : > { %2233 = dma.hbm_to_vmem [thread:$0]  (!%p2620_p7), %s3336_s5, 640, %s2616_s20, [#allocation9], %s2509_s1, %s2509_s1, %s2510_s13  }
  0x5e   : > { %s2399_s12 = scalar_lea.hbm %s3338_s7, 256 }
  0x5f   : > { %p2400_p13 = scmp.ne.s32.totalorder %s3338_s7, %s2399_s12  ;;  %p2406_p2 = scmp.lt.u32.totalorder %s2399_s12, %s3338_s7 }
  0x61   : > { %p2402_p0 = pnand %p2400_p13, %p2636_p9 }
  0x63   : > { %p2403_p1 = pneg %p2402_p0 }
  0x65   : > { %p2408_p3 = pnand %p2406_p2, %p2403_p1 }
  0x67   : > { %2411 = shalt.err (!%p2408_p3)
}
  0x68   : > { %s2412_s20 = scalar_lea.vmem %s2624_s22, 256  ;;  %p2420_p11 = scmp.lt.s32.totalorder %s2624_s22, %s2624_s22 }
  0x69   : > { %p2413_p6 = scmp.ne.s32.totalorder %s2624_s22, %s2412_s20  ;;  %p2421_p12 = scmp.lt.s32.totalorder %s2412_s20, %s2412_s20 }
  0x6b   : > { %p2415_p8 = pnand %p2413_p6, %p2636_p9  ;;  %p2422_p13 = por %p2421_p12, %p2420_p11 }
  0x6d   : > { %p2416_p10 = pneg %p2415_p8 }
  0x6f   : > { %p2423_p0 = pnand %p2422_p13, %p2416_p10 }
  0x71   : > { %2426 = shalt.err (!%p2423_p0)
}
  0x72   : > { %2239 = dma.hbm_to_vmem [thread:$0]  (!%p2620_p7), %s3338_s7, 256, %s2624_s22, [#allocation11], %s2509_s1, %s2509_s1, %s2510_s13  }
  0x73   : > { %s2427_s27 = scalar_lea.hbm %s3339_s8, 256 }
  0x74   : > { %p2428_p1 = scmp.ne.s32.totalorder %s3339_s8, %s2427_s27  ;;  %p2434_p6 = scmp.lt.u32.totalorder %s2427_s27, %s3339_s8 }
  0x76   : > { %p2430_p2 = pnand %p2428_p1, %p2636_p9 }
  0x78   : > { %p2431_p3 = pneg %p2430_p2 }
  0x7a   : > { %p2436_p8 = pnand %p2434_p6, %p2431_p3 }
  0x7c   : > { %2439 = shalt.err (!%p2436_p8)
}
  0x7d   : > { %s2440_s11 = scalar_lea.vmem %s229_s24, 256  ;;  %p2448_p13 = scmp.lt.s32.totalorder %s229_s24, %s229_s24 }
  0x7e   : > { %p2441_p10 = scmp.ne.s32.totalorder %s229_s24, %s2440_s11  ;;  %p2449_p0 = scmp.lt.s32.totalorder %s2440_s11, %s2440_s11 }
  0x80   : > { %p2443_p11 = pnand %p2441_p10, %p2636_p9  ;;  %p2450_p4 = por %p2449_p0, %p2448_p13 }
  0x82   : > { %p2444_p12 = pneg %p2443_p11 }
  0x84   : > { %p2451_p5 = pnand %p2450_p4, %p2444_p12 }
  0x86   : > { %2454 = shalt.err (!%p2451_p5)
}
  0x87   : > { %2242 = dma.hbm_to_vmem [thread:$0]  (!%p2620_p7), %s3339_s8, 256, %s229_s24, [#allocation14], %s2509_s1, %s2509_s1, %s2510_s13  }
  0x88   : > { %p3355_p1 = scmp.ne.s32.totalorder %s3352_s3, 0 }
  0x89   : > { %p3356_p9 = scmp.eq.s32.totalorder (!%p3355_p1), %s2603_s17, 0 }
  0x8a   : > { %252 = sbr.rel (%p3355_p1) target bundleno = 1455 (0x5af), region = 40 }
  0x91   : > { %2474 = dma.done.wait (%p3356_p9), [#allocation9], 640   ;;  %p3357_p2 = pmov %p3356_p9 }
  0x93   : > { %2476 = vsyncadd (%p3357_p2), [#allocation9], 4294966656  ;;  %p3358_p4 = pmov %p3357_p2 }
  0x94   : > { %p3359_p5 = pmov %p3357_p2 }
  0x95   : > { %2478 = dma.done.wait (%p3358_p4), [#allocation11], 896  }
  0x96   : > { %2480 = vsyncadd (%p3359_p5), [#allocation11], 4294966400  ;;  %p3360_p3 = pmov %p3357_p2 }
  0x97   : > { %p3361_p7 = pmov %p3357_p2 }
  0x98   : > { %2482 = dma.done.wait (%p3360_p3), [#allocation14], 256  }
  0x99   : > { %2484 = vsyncadd (%p3361_p7), [#allocation14], 4294967040  ;;  %p292_p6 = scmp.lt.s32.totalorder %s2603_s17, 1  ;;  %v302_v0 = vlaneseq  ;;  %v2511_v7 = vmov 0.0  }
  0x9b   : > { %s3369_s17 = smov (!%p292_p6, %s2603_s17), 1  ;;  %v303_v1 = vshrl.u32 %v302_v0, 7  ;;  %v306_v2 = vand.u32 127, %v302_v0 }
  0x9c   : > { %s2212_s3 = smul.u32 120, %s3369_s17 }
  0x9d   : > { %v304_v3 = vadd.s32 8, %v303_v1  ;;  %v307_v4 = vmul.u32 2, %v303_v1  ;;  %s2213_s2 = smul.u32 192, %s3369_s17  ;;  %s2768_s17 = smov 0  }
  0x9e   : > { %s2753_s1 = scalar_lea.vmem %s3335_s4, %s2212_s3 }
  0x9f   : > { %v308_v5 = vmul.u32 2, %v304_v3  ;;  %vm309_vm0 = vcmp.eq.s32.totalorder %v306_v2, %v307_v4  ;;  %v315_v6 = vadd.s32 1, %v307_v4  ;;  %s2758_s16 = scalar_lea.vmem %s3340_s9, %s2213_s2 }
  0xa0   : > { %v2760_v8 = vsel %vm309_vm0, 1.0, %v2511_v7 }
  0xa1   : > { %3362 = vst [vmem:[#allocation19_spill] sm:$0xff] %v2760_v8  ;;  %vm310_vm1 = vcmp.eq.s32.totalorder %v306_v2, %v308_v5  ;;  %v316_v9 = vadd.s32 1, %v308_v5  ;;  %vm317_vm2 = vcmp.eq.s32.totalorder %v306_v2, %v315_v6 }
  0xa2   : > { %v2762_v10 = vsel %vm310_vm1, 1.0, %v2511_v7  ;;  %v2764_v11 = vsel %vm317_vm2, 1.0, %v2511_v7 }
  0xa3   : > { %3363 = vst [vmem:[#allocation20_spill] sm:$0xff] %v2764_v11  ;;  %vm318_vm3 = vcmp.eq.s32.totalorder %v306_v2, %v316_v9 }
  0xa4   : > { %v2766_v12 = vsel %vm318_vm3, 1.0, %v2511_v7 }
  0xa5 LB: >> { %s2010_s18 = sshll.u32 %s2491_s17, 4  ;;  %s2777_s20 = smov 0   ;;  %s2491_s17 = sphi %s2768_s17, %s328_s17  }
  0xa6   : >> { %p330_p8 = scmp.lt.s32.totalorder %s2010_s18, 1 }
  0xa8   : >> { %s3371_s18 = smov (!%p330_p8, %s2010_s18), 1 }
  0xa9   : >> { %s2011_s0 = sshll.u32 %s3371_s18, 1 }
  0xaa LB: >>> { %s2783_s21 = smul.u32 12, %s2495_s20  ;;  %s2790_s27 = scalar_lea.vmem %s2753_s1, %s2011_s0  ;;  %vm612_vm4 = vcmask 261120   ;;  %vm789_vm5 = vcmask 1042432   ;;  %vm782_vm6 = vcmask 285696   ;;  %vm956_vm7 = vcmask 138240   ;;  %s2495_s20 = sphi %s2777_s20, %s338_s20  }
  0xab   : >>> { %v343_v13 = vld [vmem:[%s2790_s27 + $0x10] sm:$0xff]  ;;  %v341_v14 = vld [vmem:[%s2790_s27] sm:$0xff]  ;;  %v344_v16 = vld [vmem:[%s2790_s27 + $0x18] sm:$0xff]  ;;  %s2512_s24 = smov 127   ;;  %2100 = vmatprep.mubr.msk.f32.mxu0 %vm612_vm4, %v2760_v8  ;;  %2111 = vmatprep.mubr.msk.f32.mxu1 %vm612_vm4, %v2764_v11 }
  0xac   : >>> { %s355_s23 = sadd.s32 1, %s2783_s21  ;;  %s399_s25 = sadd.s32 3, %s2783_s21  ;;  %v342_v17 = vld [vmem:[%s2790_s27 + $0x8] sm:$0xff]  ;;  %v2016_v25 = vld [vmem:[%s2790_s27 + $0x19] sm:$0xff]  ;;  %v2015_v26 = vld [vmem:[%s2790_s27 + $0x11] sm:$0xff] }
  0xad   : >>> { %s356_s26 = sld [smem:[#allocation4 + %s355_s23]]  ;;  %s443_s19 = sadd.s32 5, %s2783_s21  ;;  %v2014_v22 = vld [vmem:[%s2790_s27 + $0x9] sm:$0xff]  ;;  %v2013_v24 = vld [vmem:[%s2790_s27 + $0x1] sm:$0xff]  ;;  %v2020_v41 = vld [vmem:[%s2790_s27 + $0x38] sm:$0xff] }
  0xae   : >>> { %s400_s28 = sld [smem:[#allocation4 + %s399_s25]]  ;;  %s388_s11 = sadd.s32 2, %s2783_s21  ;;  %v2019_v34 = vld [vmem:[%s2790_s27 + $0x30] sm:$0xff]  ;;  %v2018_v36 = vld [vmem:[%s2790_s27 + $0x28] sm:$0xff]  ;;  %v2021_v40 = vld [vmem:[%s2790_s27 + $0x40] sm:$0xff] }
  0xaf   : >>> { %s2795_s29 = sld [smem:[#allocation4 + %s443_s19]]  ;;  %s432_s12 = sadd.s32 4, %s2783_s21  ;;  %v2024_v42 = vld [vmem:[%s2790_s27 + $0x31] sm:$0xff]  ;;  %v2023_v47 = vld [vmem:[%s2790_s27 + $0x29] sm:$0xff]  ;;  %v2026_v52 = vld [vmem:[%s2790_s27 + $0x41] sm:$0xff] }
  0xb0   : >>> { %s345_s10 = sld [smem:[#allocation4 + %s2783_s21]]  ;;  %s476_s2 = sadd.s32 6, %s2783_s21  ;;  %v2025_v53 = vld [vmem:[%s2790_s27 + $0x39] sm:$0xff]  ;;  %v2028_v59 = vld [vmem:[%s2790_s27 + $0x50] sm:$0xff]  ;;  %v2031_v3 = vld [vmem:[%s2790_s27 + $0x68] sm:$0xff] }
  0xb1   : >>> { %s389_s22 = sld [smem:[#allocation4 + %s388_s11]]  ;;  %s520_s13 = sadd.s32 8, %s2783_s21  ;;  %v2029_v58 = vld [vmem:[%s2790_s27 + $0x58] sm:$0xff]  ;;  %v2030_v4 = vld [vmem:[%s2790_s27 + $0x60] sm:$0xff] }
  0xb2   : >>> { %s433_s3 = sld [smem:[#allocation4 + %s432_s12]]  ;;  %s487_s23 = sadd.s32 7, %s2783_s21 }
  0xb3   : >>> { %v357_v15 = vstv %s356_s26  ;;  %s2805_s30 = sld [smem:[#allocation4 + %s476_s2]]  ;;  %s564_s26 = sadd.s32 10, %s2783_s21 }
  0xb4   : >>> { %v360_v18 = vmul.f32 %v357_v15, %v343_v13  ;;  %v358_v19 = vmul.f32 %v357_v15, %v341_v14  ;;  %v361_v20 = vmul.f32 %v357_v15, %v344_v16  ;;  %v359_v21 = vmul.f32 %v357_v15, %v342_v17  ;;  %s2814_s15 = sld [smem:[#allocation4 + %s520_s13]]  ;;  %v2033_v15 = vld [vmem:[%s2790_s27 + $0x51] sm:$0xff] }
  0xb5   : >>> { %v401_v23 = vstv %s400_s28  ;;  %v445_v35 = vstv %s2795_s29  ;;  %s488_s25 = sld [smem:[#allocation4 + %s487_s23]]  ;;  %s531_s28 = sadd.s32 9, %s2783_s21 }
  0xb6   : >>> { %370 = vrot.lane.b32.xlu1 %v360_v18, %s2512_s24  ;;  %366 = vrot.lane.b32.xlu0 %v358_v19, %s2512_s24  ;;  %v346_v27 = vstv %s345_s10  ;;  %v403_v28 = vmul.f32 %v2014_v22, %v401_v23  ;;  %v402_v29 = vmul.f32 %v2013_v24, %v401_v23  ;;  %v405_v31 = vmul.f32 %v2016_v25, %v401_v23  ;;  %s565_s19 = sld [smem:[#allocation4 + %s564_s26]]  ;;  %s575_s10 = sadd.s32 11, %s2783_s21 }
  0xb7   : >>> { %v390_v30 = vstv %s389_s22  ;;  %v404_v32 = vmul.f32 %v2015_v26, %v401_v23  ;;  %v2820_v37 = vmul.f32 %v346_v27, %v343_v13  ;;  %v2822_v38 = vmul.f32 %v346_v27, %v341_v14  ;;  %s532_s29 = sld [smem:[#allocation4 + %s531_s28]]  ;;  %v2034_v14 = vld [vmem:[%s2790_s27 + $0x59] sm:$0xff] }
  0xb8   : >>> { %v434_v33 = vstv %s433_s3  ;;  %v2824_v39 = vmul.f32 %v346_v27, %v344_v16  ;;  %v2829_v43 = vmul.f32 %v346_v27, %v342_v17  ;;  %v2831_v44 = vmul.f32 %v2014_v22, %v390_v30  ;;  %v2035_v22 = vld [vmem:[%s2790_s27 + $0x61] sm:$0xff]  ;;  %s576_s11 = sld [smem:[#allocation4 + %s575_s10]] }
  0xb9   : >>> { %v2833_v45 = vmul.f32 %v2013_v24, %v390_v30  ;;  %v2835_v46 = vmul.f32 %v2016_v25, %v390_v30  ;;  %v2840_v48 = vmul.f32 %v2015_v26, %v390_v30  ;;  %v2842_v49 = vmul.f32 %v2019_v34, %v434_v33  ;;  %s602_s21 = sld [smem:[#allocation5 + %s2495_s20]] }
  0xba   : >>> { %372 = vrot.lane.b32.xlu1 %v361_v20, %s2512_s24  ;;  %368 = vrot.lane.b32.xlu0 %v359_v21, %s2512_s24  ;;  %v2844_v50 = vmul.f32 %v2018_v36, %v434_v33  ;;  %v478_v51 = vstv %s2805_s30  ;;  %v2849_v54 = vmul.f32 %v2021_v40, %v434_v33  ;;  %v2851_v55 = vmul.f32 %v2020_v41, %v434_v33  ;;  %v2036_v21 = vld [vmem:[%s2790_s27 + $0x69] sm:$0xff]  ;;  %s953_s27 = smul.u32 24, %s2495_s20  ;;  %s338_s20 = sadd.s32 1, %s2495_s20  }
  0xbb   : >>> { %v2853_v56 = vmul.f32 %v2024_v42, %v478_v51  ;;  %v2855_v57 = vmul.f32 %v2023_v47, %v478_v51  ;;  %v2859_v60 = vmul.f32 %v2026_v52, %v478_v51  ;;  %v2861_v61 = vmul.f32 %v2025_v53, %v478_v51  ;;  %p335_p10 = scmp.ge.s32.totalorder %s338_s20, 12  }
  0xbc   : >>> { %v522_v62 = vstv %s2814_s15  ;;  %v447_v1 = vmul.f32 %v2019_v34, %v445_v35  ;;  %v446_v2 = vmul.f32 %v2018_v36, %v445_v35  ;;  %v449_v7 = vmul.f32 %v2021_v40, %v445_v35  ;;  %s954_s22 = sadd.s32 %s953_s27, %s3371_s18  ;;  %s328_s17 = sadd.s32 (%p335_p10), 1, %s2491_s17  }
  0xbd   : >>> { %v2864_v63 = vmul.f32 %v2029_v58, %v522_v62  ;;  %v2866_v0 = vmul.f32 %v2028_v59, %v522_v62  ;;  %v2874_v5 = vmul.f32 %v2031_v3, %v522_v62  ;;  %v2876_v6 = vmul.f32 %v2030_v4, %v522_v62  ;;  %s955_s12 = scalar_lea.vmem [#allocation2], %s954_s22  ;;  %p325_p11 = scmp.ge.s32.totalorder (%p335_p10), %s328_s17, 2  }
  0xbe   : >>> { %412 = vrot.lane.b32.xlu1 %v403_v28, %s2512_s24  ;;  %410 = vrot.lane.b32.xlu0 %v402_v29, %s2512_s24  ;;  %v448_v9 = vmul.f32 %v2020_v41, %v445_v35  ;;  %v489_v13 = vstv %s488_s25  ;;  %v566_v16 = vstv %s565_s19 }
  0xbf   : >>> { %v2882_v17 = vmul.f32 %v2034_v14, %v566_v16  ;;  %v2884_v18 = vmul.f32 %v2033_v15, %v566_v16  ;;  %v491_v19 = vmul.f32 %v2024_v42, %v489_v13  ;;  %v490_v20 = vmul.f32 %v2023_v47, %v489_v13 }
  0xc0   : >>> { %v2891_v23 = vmul.f32 %v2036_v21, %v566_v16  ;;  %v2893_v24 = vmul.f32 %v2035_v22, %v566_v16  ;;  %v493_v25 = vmul.f32 %v2026_v52, %v489_v13  ;;  %v492_v26 = vmul.f32 %v2025_v53, %v489_v13 }
  0xc1   : >>> { %v533_v27 = vstv %s532_s29 }
  0xc2   : >>> { %416 = vrot.lane.b32.xlu1 %v405_v31, %s2512_s24  ;;  %414 = vrot.lane.b32.xlu0 %v404_v32, %s2512_s24  ;;  %v535_v28 = vmul.f32 %v2029_v58, %v533_v27  ;;  %v534_v29 = vmul.f32 %v2028_v59, %v533_v27  ;;  %v537_v30 = vmul.f32 %v2031_v3, %v533_v27  ;;  %v577_v32 = vstv %s576_s11 }
  0xc3   : >>> { %v536_v31 = vmul.f32 %v2030_v4, %v533_v27  ;;  %v579_v33 = vmul.f32 %v2034_v14, %v577_v32  ;;  %v578_v34 = vmul.f32 %v2033_v15, %v577_v32  ;;  %v581_v35 = vmul.f32 %v2036_v21, %v577_v32 }
  0xc4   : >>> { %v580_v36 = vmul.f32 %v2035_v22, %v577_v32 }
  0xc6   : >>> { %456 = vrot.lane.b32.xlu1 %v447_v1, %s2512_s24  ;;  %454 = vrot.lane.b32.xlu0 %v446_v2, %s2512_s24 }
  0xca   : >>> { %460 = vrot.lane.b32.xlu1 %v449_v7, %s2512_s24  ;;  %458 = vrot.lane.b32.xlu0 %v448_v9, %s2512_s24 }
  0xce   : >>> { %500 = vrot.lane.b32.xlu1 %v491_v19, %s2512_s24  ;;  %498 = vrot.lane.b32.xlu0 %v490_v20, %s2512_s24 }
  0xd2   : >>> { %504 = vrot.lane.b32.xlu1 %v493_v25, %s2512_s24  ;;  %502 = vrot.lane.b32.xlu0 %v492_v26, %s2512_s24 }
  0xd6   : >>> { %544 = vrot.lane.b32.xlu1 %v535_v28, %s2512_s24  ;;  %542 = vrot.lane.b32.xlu0 %v534_v29, %s2512_s24 }
  0xda   : >>> { %548 = vrot.lane.b32.xlu1 %v537_v30, %s2512_s24  ;;  %546 = vrot.lane.b32.xlu0 %v536_v31, %s2512_s24 }
  0xde   : >>> { %588 = vrot.lane.b32.xlu1 %v579_v33, %s2512_s24  ;;  %586 = vrot.lane.b32.xlu0 %v578_v34, %s2512_s24 }
  0xe2   : >>> { %592 = vrot.lane.b32.xlu1 %v581_v35, %s2512_s24  ;;  %590 = vrot.lane.b32.xlu0 %v580_v36, %s2512_s24 }
 0x128   : >>> { %v371_v40 = vpop.permute.xlu1 %370  ;;  %v367_v41 = vpop.permute.xlu0 %366 }
 0x129   : >>> { %v380_v42 = vadd.f32 %v371_v40, %v2820_v37  ;;  %v378_v47 = vadd.f32 %v367_v41, %v2822_v38 }
 0x12b   : >>> { %v395_v51 = vadd.f32 %v2833_v45, %v378_v47  ;;  %v397_v52 = vadd.f32 %v2840_v48, %v380_v42 }
 0x12c   : >>> { %v373_v53 = vpop.permute.xlu1 %372  ;;  %v369_v58 = vpop.permute.xlu0 %368 }
 0x12d   : >>> { %v381_v59 = vadd.f32 %v373_v53, %v2824_v39  ;;  %v379_v62 = vadd.f32 %v369_v58, %v2829_v43 }
 0x12f   : >>> { %v396_v1 = vadd.f32 %v2831_v44, %v379_v62  ;;  %v398_v2 = vadd.f32 %v2835_v46, %v381_v59 }
 0x130   : >>> { %v413_v3 = vpop.permute.xlu1 %412  ;;  %v411_v4 = vpop.permute.xlu0 %410 }
 0x131   : >>> { %v423_v7 = vadd.f32 %v413_v3, %v396_v1  ;;  %v422_v37 = vadd.f32 %v411_v4, %v395_v51 }
 0x133   : >>> { %v440_v38 = vadd.f32 %v2842_v49, %v423_v7  ;;  %v439_v45 = vadd.f32 %v2844_v50, %v422_v37 }
 0x134   : >>> { %v417_v9 = vpop.permute.xlu1 %416  ;;  %v415_v48 = vpop.permute.xlu0 %414 }
 0x135   : >>> { %v425_v13 = vadd.f32 %v417_v9, %v398_v2  ;;  %v424_v14 = vadd.f32 %v415_v48, %v397_v52  ;;  %v777_v9 = vld [vmem:[#allocation8] sm:$0xff]  ;;  %v868_v48 = vld [vmem:[#allocation10] sm:$0xff] }
 0x137   : >>> { %v442_v39 = vadd.f32 %v2849_v54, %v425_v13  ;;  %v441_v43 = vadd.f32 %v2851_v55, %v424_v14 }
 0x138   : >>> { %v457_v15 = vpop.permute.xlu1 %456  ;;  %v455_v44 = vpop.permute.xlu0 %454 }
 0x139   : >>> { %v467_v16 = vadd.f32 %v457_v15, %v440_v38  ;;  %v466_v46 = vadd.f32 %v455_v44, %v439_v45  ;;  %v779_v44 = vld [vmem:[#allocation8 + $0x10] sm:$0xff] }
 0x13b   : >>> { %v484_v19 = vadd.f32 %v2853_v56, %v467_v16  ;;  %v483_v20 = vadd.f32 %v2855_v57, %v466_v46  ;;  %v780_v16 = vld [vmem:[#allocation8 + $0x18] sm:$0xff] }
 0x13c   : >>> { %v461_v21 = vpop.permute.xlu1 %460  ;;  %v459_v49 = vpop.permute.xlu0 %458  ;;  %v870_v46 = vld [vmem:[#allocation10 + $0x10] sm:$0xff] }
 0x13d   : >>> { %v469_v22 = vadd.f32 %v461_v21, %v442_v39  ;;  %v468_v50 = vadd.f32 %v459_v49, %v441_v43  ;;  %v781_v49 = vld [vmem:[#allocation8 + $0x20] sm:$0x7] }
 0x13f   : >>> { %v486_v25 = vadd.f32 %v2859_v60, %v469_v22  ;;  %v485_v26 = vadd.f32 %v2861_v61, %v468_v50  ;;  %v872_v22 = vld [vmem:[#allocation10 + $0x20] sm:$0x7] }
 0x140   : >>> { %v501_v54 = vpop.permute.xlu1 %500  ;;  %v499_v27 = vpop.permute.xlu0 %498 }
 0x141   : >>> { %v511_v55 = vadd.f32 %v501_v54, %v484_v19  ;;  %v510_v28 = vadd.f32 %v499_v27, %v483_v20  ;;  %v871_v19 = vld [vmem:[#allocation10 + $0x18] sm:$0xff]  ;;  %v2188_v20 = vpack.c.bf16 %v780_v16, %v779_v44 }
 0x142   : >>> { %v2196_v21 = vpack.c.bf16 %v871_v19, %v870_v46 }
 0x143   : >>> { %v528_v29 = vadd.f32 %v2864_v63, %v511_v55  ;;  %v527_v30 = vadd.f32 %v2866_v0, %v510_v28 }
 0x144   : >>> { %v505_v56 = vpop.permute.xlu1 %504  ;;  %v503_v31 = vpop.permute.xlu0 %502 }
 0x145   : >>> { %v513_v57 = vadd.f32 %v505_v56, %v486_v25  ;;  %v512_v32 = vadd.f32 %v503_v31, %v485_v26 }
 0x147   : >>> { %v530_v33 = vadd.f32 %v2874_v5, %v513_v57  ;;  %v529_v34 = vadd.f32 %v2876_v6, %v512_v32  ;;  %v603_v5 = vstv %s602_s21 }
 0x148   : >>> { %v545_v60 = vpop.permute.xlu1 %544  ;;  %v543_v35 = vpop.permute.xlu0 %542 }
 0x149   : >>> { %v555_v61 = vadd.f32 %v545_v60, %v528_v29  ;;  %v554_v36 = vadd.f32 %v543_v35, %v527_v30 }
 0x14b   : >>> { %v572_v40 = vadd.f32 %v2882_v17, %v555_v61  ;;  %v571_v41 = vadd.f32 %v2884_v18, %v554_v36 }
 0x14c   : >>> { %v549_v63 = vpop.permute.xlu1 %548  ;;  %v547_v42 = vpop.permute.xlu0 %546 }
 0x14d   : >>> { %v557_v0 = vadd.f32 %v549_v63, %v530_v33  ;;  %v556_v47 = vadd.f32 %v547_v42, %v529_v34 }
 0x14f   : >>> { %v574_v51 = vadd.f32 %v2891_v23, %v557_v0  ;;  %v573_v52 = vadd.f32 %v2893_v24, %v556_v47  ;;  %v778_v23 = vld [vmem:[#allocation8 + $0x8] sm:$0xff]  ;;  %v869_v24 = vld [vmem:[#allocation10 + $0x8] sm:$0xff] }
 0x150   : >>> { %v589_v53 = vpop.permute.xlu1 %588  ;;  %v587_v6 = vpop.permute.xlu0 %586  ;;  %v2184_v43 = vpack.c.bf16 %v778_v23, %v777_v9  ;;  %v2192_v15 = vpack.c.bf16 %v869_v24, %v868_v48 }
 0x151   : >>> { %v599_v58 = vadd.f32 %v589_v53, %v572_v40  ;;  %v598_v59 = vadd.f32 %v587_v6, %v571_v41 }
 0x153   : >>> { %v605_v62 = vadd.f32 %v603_v5, %v599_v58  ;;  %v604_v1 = vadd.f32 %v603_v5, %v598_v59 }
 0x154   : >>> { %v593_v2 = vpop.permute.xlu1 %592  ;;  %v591_v3 = vpop.permute.xlu0 %590 }
 0x155   : >>> { %v609_v17 = vmax.f32 %v605_v62, 0.0  ;;  %v608_v4 = vmax.f32 %v604_v1, 0.0  ;;  %v601_v18 = vadd.f32 %v593_v2, %v574_v51  ;;  %v600_v7 = vadd.f32 %v591_v3, %v573_v52 }
 0x157   : >>> { %v2168_v37 = vpack.c.bf16 %v609_v17, %v608_v4  ;;  %v607_v38 = vadd.f32 %v603_v5, %v601_v18  ;;  %v606_v45 = vadd.f32 %v603_v5, %v600_v7 }
 0x159   : >>> { %v611_v13 = vmax.f32 %v607_v38, 0.0  ;;  %v610_v14 = vmax.f32 %v606_v45, 0.0  ;;  %2169 = vmatprep.subr.bf16.mxu0 %v2168_v37  ;;  %2177 = vmatprep.subr.bf16.mxu1 %v2168_v37 }
 0x15a   : >>> { %2171 = vmatpush3.bf16.msra.mxu0 %v2168_v37  ;;  %2179 = vmatpush3.bf16.msra.mxu1 %v2168_v37 }
 0x15b   : >>> { %v2172_v39 = vpack.c.bf16 %v611_v13, %v610_v14 }
 0x15d   : >>> { %2173 = vmatprep.subr.bf16.mxu0 %v2172_v39  ;;  %2181 = vmatprep.subr.bf16.mxu1 %v2172_v39 }
 0x15e   : >>> { %2175 = vmatpush3.bf16.msra.mxu0 %v2172_v39  ;;  %2183 = vmatpush3.bf16.msra.mxu1 %v2172_v39 }
 0x15f   : >>> { %2185 = vmatprep.subr.bf16.mxu0 %v2184_v43  ;;  %2193 = vmatprep.subr.bf16.mxu1 %v2192_v15 }
 0x161   : >>> { %2101 = vmatmul.mubr.msk.f32.vlgmr.msra.gmra.mrb[0].mxu0 %vm612_vm4, %v2762_v10  ;;  %2112 = vmatmul.mubr.msk.f32.vlgmr.msra.gmra.mrb[0].mxu1 %vm612_vm4, %v2766_v12 }
 0x162   : >>> { %2187 = vmatpush3.bf16.msra.mxu0 %v2184_v43  ;;  %2195 = vmatpush3.bf16.msra.mxu1 %v2192_v15 }
 0x163   : >>> { %2189 = vmatprep.subr.bf16.mxu0 %v2188_v20  ;;  %2197 = vmatprep.subr.bf16.mxu1 %v2196_v21 }
 0x166   : >>> { %2191 = vmatpush3.bf16.msra.mxu0 %v2188_v20  ;;  %2199 = vmatpush3.bf16.msra.mxu1 %v2196_v21 }
 0x167   : >>> { %2122 = vmatprep.subr.msk.mxu0 %vm789_vm5, %v781_v49  ;;  %2135 = vmatprep.subr.msk.mxu1 %vm789_vm5, %v872_v22 }
 0x16a   : >>> { %2123 = vmatpush3.msk.msra.mxu0 %vm789_vm5, %v781_v49  ;;  %2136 = vmatpush3.msk.msra.mxu1 %vm789_vm5, %v872_v22 }
 0x234   : >>> { %v2102_v50 = vpop.f32.mrb[0].mxu0  ;;  %v2113_v25 = vpop.f32.mrb[0].mxu1 }
 0x235   : >>> { %v776_v26 = vmax.f32 %v2102_v50, %v2113_v25  ;;  %v685_v54 = vpop.f32.mrb[1].mxu0  ;;  %v766_v27 = vpop.f32.mrb[1].mxu1 }
 0x236   : >>> { %v775_v55 = vmax.f32 %v685_v54, %v766_v27 }
 0x238   : >>> { %2124 = vmatprep.mubr.msk.f32.mxu0 %vm782_vm6, %v775_v55  ;;  %2137 = vmatprep.mubr.msk.f32.mxu1 %vm782_vm6, %v775_v55 }
 0x239   : >>> { %2125 = vmatmul.mubr.msk.f32.vlgmr.msra.gmra.mrb[2].mxu0 %vm782_vm6, %v776_v26  ;;  %2138 = vmatmul.mubr.msk.f32.vlgmr.msra.gmra.mrb[2].mxu1 %vm782_vm6, %v776_v26 }
 0x30a   : >> { %337 = sbr.rel (!%p335_p10) target bundleno = 170 (0xaa), region = 127 }
 0x30c   : >>> { %v2126_v28 = vpop.f32.mrb[2].mxu0  ;;  %v2139_v29 = vpop.f32.mrb[2].mxu1 }
 0x30d   : >>> { %v952_v30 = vmax.f32 %v2126_v28, %v2139_v29  ;;  %v859_v56 = vpop.f32.mrb[3].mxu0  ;;  %v942_v31 = vpop.f32.mrb[3].mxu1 }
 0x30e   : >>> { %v951_v57 = vmax.f32 %v859_v56, %v942_v31 }
 0x30f   : >>> { %958 = vst.msk [vmem:[%s955_s12 + $0x8] sm:$0xff] %vm956_vm7, %v952_v30 }
 0x310   : >>> { %957 = vst.msk [vmem:[%s955_s12] sm:$0xff] %vm956_vm7, %v951_v57 }
 0x311   : > { %327 = sbr.rel (!%p325_p11) target bundleno = 165 (0xa5), region = 138  ;;  %s2948_s3 = smov (%p325_p11), 0  }
 0x318 LB: >> { %s2954_s2 = smul.u32 48, %s2499_s3  ;;  %v2960_v10 = vld [vmem:[#allocation2] sm:$0xff]  ;;  %v2964_v32 = vld [vmem:[#allocation2 + $0x8] sm:$0xff]  ;;  %s2513_s23 = smov 127   ;;  %v2975_v41 = vld [vmem:[#allocation2 + $0x18] sm:$0xff]  ;;  %vm2515_vm8 = vmmov 0   ;;  %s2499_s3 = sphi %s2948_s3, %s964_s3  }
 0x319   : >> { %v2962_v12 = vld [vmem:[#allocation2 + $0x1] sm:$0xff]  ;;  %v2966_v34 = vld [vmem:[#allocation2 + $0x9] sm:$0xff]  ;;  %v2984_v51 = vld [vmem:[#allocation2 + $0x19] sm:$0xff]  ;;  %vm1558_vm9 = vcmask 130048   ;;  %vm1856_vm10 = vcmask 64512  }
 0x31a   : >> { %s974_s18 = sadd.s32 1, %s2954_s2  ;;  %s998_s0 = sadd.s32 3, %s2954_s2  ;;  %v2977_v42 = vld [vmem:[#allocation2 + $0x20] sm:$0xff]  ;;  %v2993_v58 = vld [vmem:[#allocation2 + $0x30] sm:$0xff]  ;;  %v2995_v62 = vld [vmem:[#allocation2 + $0x38] sm:$0xff] }
 0x31b   : >> { %s975_s20 = sld [smem:[#allocation6 + %s974_s18]]  ;;  %s1023_s24 = sadd.s32 5, %s2954_s2  ;;  %v2986_v5 = vld [vmem:[#allocation2 + $0x21] sm:$0xff]  ;;  %v3002_v3 = vld [vmem:[#allocation2 + $0x31] sm:$0xff]  ;;  %v3004_v4 = vld [vmem:[#allocation2 + $0x39] sm:$0xff] }
 0x31c   : >> { %s999_s17 = sld [smem:[#allocation6 + %s998_s0]]  ;;  %s1047_s30 = sadd.s32 7, %s2954_s2  ;;  %v3011_v37 = vld [vmem:[#allocation2 + $0x48] sm:$0xff]  ;;  %v3013_v45 = vld [vmem:[#allocation2 + $0x50] sm:$0xff]  ;;  %v3029_v43 = vld [vmem:[#allocation2 + $0x60] sm:$0xff] }
 0x31d   : >> { %s1024_s1 = sld [smem:[#allocation6 + %s1023_s24]]  ;;  %s1072_s15 = sadd.s32 9, %s2954_s2  ;;  %v3020_v48 = vld [vmem:[#allocation2 + $0x49] sm:$0xff]  ;;  %v3022_v13 = vld [vmem:[#allocation2 + $0x51] sm:$0xff]  ;;  %v3038_v19 = vld [vmem:[#allocation2 + $0x61] sm:$0xff] }
 0x31e   : >> { %s1048_s13 = sld [smem:[#allocation6 + %s1047_s30]]  ;;  %s1096_s26 = sadd.s32 11, %s2954_s2  ;;  %v3031_v44 = vld [vmem:[#allocation2 + $0x68] sm:$0xff]  ;;  %v3047_v50 = vld [vmem:[#allocation2 + $0x78] sm:$0xff]  ;;  %v3049_v26 = vld [vmem:[#allocation2 + $0x80] sm:$0xff] }
 0x31f   : >> { %s1073_s25 = sld [smem:[#allocation6 + %s1072_s15]]  ;;  %s1121_s28 = sadd.s32 13, %s2954_s2  ;;  %v3040_v21 = vld [vmem:[#allocation2 + $0x69] sm:$0xff]  ;;  %v3056_v55 = vld [vmem:[#allocation2 + $0x79] sm:$0xff]  ;;  %v3058_v29 = vld [vmem:[#allocation2 + $0x81] sm:$0xff] }
 0x320   : >> { %s1097_s19 = sld [smem:[#allocation6 + %s1096_s26]]  ;;  %s1145_s10 = sadd.s32 15, %s2954_s2  ;;  %v3065_v31 = vld [vmem:[#allocation2 + $0x90] sm:$0xff] }
 0x321   : >> { %v976_v33 = vstv %s975_s20  ;;  %s1122_s29 = sld [smem:[#allocation6 + %s1121_s28]]  ;;  %s1170_s21 = sadd.s32 17, %s2954_s2 }
 0x322   : >> { %v1000_v60 = vstv %s999_s17  ;;  %v977_v35 = vmul.f32 %v976_v33, %v2960_v10  ;;  %v978_v36 = vmul.f32 %v976_v33, %v2964_v32  ;;  %s1146_s11 = sld [smem:[#allocation6 + %s1145_s10]]  ;;  %s1194_s22 = sadd.s32 19, %s2954_s2  ;;  %v3067_v33 = vld [vmem:[#allocation2 + $0x98] sm:$0xff] }
 0x323   : >> { %v1001_v61 = vmul.f32 %v1000_v60, %v2962_v12  ;;  %v1002_v40 = vmul.f32 %v1000_v60, %v2966_v34  ;;  %v1025_v63 = vstv %s1024_s1  ;;  %s1171_s27 = sld [smem:[#allocation6 + %s1170_s21]]  ;;  %s1219_s18 = sadd.s32 21, %s2954_s2 }
 0x324   : >> { %981 = vrot.lane.b32.xlu0 %v977_v35, %s2513_s23  ;;  %v1026_v0 = vmul.f32 %v1025_v63, %v2975_v41  ;;  %v1027_v47 = vmul.f32 %v1025_v63, %v2977_v42  ;;  %v1049_v52 = vstv %s1048_s13  ;;  %s1195_s12 = sld [smem:[#allocation6 + %s1194_s22]]  ;;  %s1243_s20 = sadd.s32 23, %s2954_s2 }
 0x325   : >> { %1005 = vrot.lane.b32.xlu1 %v1001_v61, %s2513_s23  ;;  %v1050_v53 = vmul.f32 %v1049_v52, %v2984_v51  ;;  %v1051_v6 = vmul.f32 %v1049_v52, %v2986_v5  ;;  %v1074_v59 = vstv %s1073_s25  ;;  %s1220_s0 = sld [smem:[#allocation6 + %s1219_s18]]  ;;  %s1268_s24 = sadd.s32 25, %s2954_s2  ;;  %v3074_v61 = vld [vmem:[#allocation2 + $0x91] sm:$0xff] }
 0x326   : >> { %v1075_v1 = vmul.f32 %v1074_v59, %v2993_v58  ;;  %v1076_v2 = vmul.f32 %v1074_v59, %v2995_v62  ;;  %v1098_v17 = vstv %s1097_s19  ;;  %s1244_s17 = sld [smem:[#allocation6 + %s1243_s20]]  ;;  %s1292_s30 = sadd.s32 27, %s2954_s2 }
 0x327   : >> { %v1099_v18 = vmul.f32 %v1098_v17, %v3002_v3  ;;  %v1100_v7 = vmul.f32 %v1098_v17, %v3004_v4  ;;  %v1123_v38 = vstv %s1122_s29  ;;  %s1269_s1 = sld [smem:[#allocation6 + %s1268_s24]]  ;;  %s1317_s15 = sadd.s32 29, %s2954_s2  ;;  %v3094_v17 = vld [vmem:[#allocation2 + $0xb1] sm:$0xff] }
 0x328   : >> { %983 = vrot.lane.b32.xlu0 %v978_v36, %s2513_s23  ;;  %v1124_v9 = vmul.f32 %v1123_v38, %v3011_v37  ;;  %v1125_v23 = vmul.f32 %v1123_v38, %v3013_v45  ;;  %v1147_v24 = vstv %s1146_s11  ;;  %s1293_s13 = sld [smem:[#allocation6 + %s1292_s30]]  ;;  %s1341_s26 = sadd.s32 31, %s2954_s2  ;;  %v3101_v38 = vld [vmem:[#allocation2 + $0xc0] sm:$0xff] }
 0x329   : >> { %1007 = vrot.lane.b32.xlu1 %v1002_v40, %s2513_s23  ;;  %v1148_v14 = vmul.f32 %v1147_v24, %v3020_v48  ;;  %v1149_v39 = vmul.f32 %v1147_v24, %v3022_v13  ;;  %v1172_v15 = vstv %s1171_s27  ;;  %s1318_s25 = sld [smem:[#allocation6 + %s1317_s15]]  ;;  %v3076_v40 = vld [vmem:[#allocation2 + $0x99] sm:$0xff]  ;;  %s1366_s28 = sadd.s32 33, %s2954_s2 }
 0x32a   : >> { %v1173_v16 = vmul.f32 %v1172_v15, %v3029_v43  ;;  %v1174_v46 = vmul.f32 %v1172_v15, %v3031_v44  ;;  %v1196_v20 = vstv %s1195_s12  ;;  %s1342_s19 = sld [smem:[#allocation6 + %s1341_s26]]  ;;  %s1390_s10 = sadd.s32 35, %s2954_s2 }
 0x32b   : >> { %v1197_v49 = vmul.f32 %v1196_v20, %v3038_v19  ;;  %v1198_v22 = vmul.f32 %v1196_v20, %v3040_v21  ;;  %v1221_v25 = vstv %s1220_s0  ;;  %s1367_s29 = sld [smem:[#allocation6 + %s1366_s28]]  ;;  %s1415_s21 = sadd.s32 37, %s2954_s2 }
 0x32c   : >> { %1030 = vrot.lane.b32.xlu0 %v1026_v0, %s2513_s23  ;;  %v1222_v54 = vmul.f32 %v1221_v25, %v3047_v50  ;;  %v1223_v27 = vmul.f32 %v1221_v25, %v3049_v26  ;;  %v1245_v28 = vstv %s1244_s17  ;;  %s1391_s11 = sld [smem:[#allocation6 + %s1390_s10]]  ;;  %s1439_s22 = sadd.s32 39, %s2954_s2  ;;  %v3121_v25 = vld [vmem:[#allocation2 + $0xe0] sm:$0xff] }
 0x32d   : >> { %1032 = vrot.lane.b32.xlu1 %v1027_v47, %s2513_s23  ;;  %v1246_v30 = vmul.f32 %v1245_v28, %v3056_v55  ;;  %v1247_v56 = vmul.f32 %v1245_v28, %v3058_v29  ;;  %v1270_v57 = vstv %s1269_s1  ;;  %v3083_v47 = vld [vmem:[#allocation2 + $0xa8] sm:$0xff]  ;;  %s1416_s27 = sld [smem:[#allocation6 + %s1415_s21]]  ;;  %s1464_s18 = sadd.s32 41, %s2954_s2  ;;  %v3128_v28 = vld [vmem:[#allocation2 + $0xd9] sm:$0xff] }
 0x32e   : >> { %v1271_v60 = vmul.f32 %v1270_v57, %v3065_v31  ;;  %v1272_v35 = vmul.f32 %v1270_v57, %v3067_v33  ;;  %v1294_v36 = vstv %s1293_s13  ;;  %s1440_s12 = sld [smem:[#allocation6 + %s1439_s22]]  ;;  %s1488_s20 = sadd.s32 43, %s2954_s2 }
 0x32f   : >> { %v1295_v63 = vmul.f32 %v1294_v36, %v3074_v61  ;;  %v1296_v0 = vmul.f32 %v1294_v36, %v3076_v40  ;;  %v1319_v52 = vstv %s1318_s25  ;;  %s1465_s0 = sld [smem:[#allocation6 + %s1464_s18]]  ;;  %s1513_s24 = sadd.s32 45, %s2954_s2 }
 0x330   : >> { %1054 = vrot.lane.b32.xlu0 %v1050_v53, %s2513_s23  ;;  %v3085_v53 = vld [vmem:[#allocation2 + $0xb0] sm:$0xff]  ;;  %s1489_s17 = sld [smem:[#allocation6 + %s1488_s20]]  ;;  %s1537_s30 = sadd.s32 47, %s2954_s2 }
 0x331   : >> { %1056 = vrot.lane.b32.xlu1 %v1051_v6, %s2513_s23  ;;  %v1320_v6 = vmul.f32 %v1319_v52, %v3083_v47  ;;  %v1321_v59 = vmul.f32 %v1319_v52, %v3085_v53  ;;  %s1514_s1 = sld [smem:[#allocation6 + %s1513_s24]]  ;;  %s991_s15 = sadd.s32 2, %s2954_s2 }
 0x332   : >> { %v1392_v15 = vstv %s1391_s11  ;;  %s1538_s13 = sld [smem:[#allocation6 + %s1537_s30]]  ;;  %s1089_s21 = sadd.s32 10, %s2954_s2 }
 0x333   : >> { %s968_s25 = sld [smem:[#allocation6 + %s2954_s2]]  ;;  %s1114_s22 = sadd.s32 12, %s2954_s2 }
 0x334   : >> { %1079 = vrot.lane.b32.xlu0 %v1075_v1, %s2513_s23  ;;  %v3092_v1 = vld [vmem:[#allocation2 + $0xa9] sm:$0xff]  ;;  %s992_s26 = sld [smem:[#allocation6 + %s991_s15]]  ;;  %s1138_s18 = sadd.s32 14, %s2954_s2 }
 0x335   : >> { %1081 = vrot.lane.b32.xlu1 %v1076_v2, %s2513_s23  ;;  %v1343_v2 = vstv %s1342_s19  ;;  %v1466_v36 = vstv %s1465_s0  ;;  %s1016_s19 = sadd.s32 4, %s2954_s2  ;;  %s3206_s0 = sld [smem:[#allocation6 + %s1138_s18]] }
 0x336   : >> { %s1017_s28 = sld [smem:[#allocation6 + %s1016_s19]]  ;;  %s1163_s20 = sadd.s32 16, %s2954_s2 }
 0x337   : >> { %s1187_s24 = sadd.s32 18, %s2954_s2  ;;  %s1212_s30 = sadd.s32 20, %s2954_s2 }
 0x338   : >> { %1103 = vrot.lane.b32.xlu0 %v1099_v18, %s2513_s23  ;;  %v1344_v18 = vmul.f32 %v1343_v2, %v3092_v1  ;;  %s1236_s15 = sadd.s32 22, %s2954_s2 }
 0x339   : >> { %1105 = vrot.lane.b32.xlu1 %v1100_v7, %s2513_s23  ;;  %v1345_v7 = vmul.f32 %v1343_v2, %v3094_v17  ;;  %v3148_v2 = vld [vmem:[#allocation2 + $0xf9] sm:$0xff] }
 0x33c   : >> { %1128 = vrot.lane.b32.xlu0 %v1124_v9, %s2513_s23  ;;  %v1368_v9 = vstv %s1367_s29  ;;  %s1040_s29 = sadd.s32 6, %s2954_s2 }
 0x33d   : >> { %1130 = vrot.lane.b32.xlu1 %v1125_v23, %s2513_s23  ;;  %v3103_v23 = vld [vmem:[#allocation2 + $0xc8] sm:$0xff]  ;;  %v1369_v24 = vmul.f32 %v1368_v9, %v3101_v38  ;;  %s3182_s10 = sld [smem:[#allocation6 + %s1040_s29]] }
 0x340   : >> { %1152 = vrot.lane.b32.xlu0 %v1148_v14, %s2513_s23  ;;  %v1370_v14 = vmul.f32 %v1368_v9, %v3103_v23  ;;  %v3154_v9 = vld [vmem:[#allocation2 + $0x108] sm:$0xff] }
 0x341   : >> { %1154 = vrot.lane.b32.xlu1 %v1149_v39, %s2513_s23  ;;  %v3110_v39 = vld [vmem:[#allocation2 + $0xc1] sm:$0xff] }
 0x344   : >> { %1177 = vrot.lane.b32.xlu0 %v1173_v16, %s2513_s23  ;;  %v3112_v16 = vld [vmem:[#allocation2 + $0xc9] sm:$0xff] }
 0x345   : >> { %1179 = vrot.lane.b32.xlu1 %v1174_v46, %s2513_s23  ;;  %v1393_v46 = vmul.f32 %v1392_v15, %v3110_v39  ;;  %v1394_v20 = vmul.f32 %v1392_v15, %v3112_v16 }
 0x348   : >> { %1201 = vrot.lane.b32.xlu0 %v1197_v49, %s2513_s23  ;;  %v3119_v49 = vld [vmem:[#allocation2 + $0xd8] sm:$0xff] }
 0x349   : >> { %1203 = vrot.lane.b32.xlu1 %v1198_v22, %s2513_s23  ;;  %v1417_v22 = vstv %s1416_s27  ;;  %s3194_s27 = sld [smem:[#allocation6 + %s1089_s21]] }
 0x34c   : >> { %1226 = vrot.lane.b32.xlu0 %v1222_v54, %s2513_s23  ;;  %v1418_v54 = vmul.f32 %v1417_v22, %v3119_v49 }
 0x34d   : >> { %1228 = vrot.lane.b32.xlu1 %v1223_v27, %s2513_s23  ;;  %v1419_v27 = vmul.f32 %v1417_v22, %v3121_v25  ;;  %v1539_v22 = vstv %s1538_s13  ;;  %s3224_s13 = sld [smem:[#allocation6 + %s1212_s30]] }
 0x350   : >> { %1250 = vrot.lane.b32.xlu0 %v1246_v30, %s2513_s23  ;;  %v1441_v30 = vstv %s1440_s12  ;;  %s3200_s12 = sld [smem:[#allocation6 + %s1114_s22]] }
 0x351   : >> { %1252 = vrot.lane.b32.xlu1 %v1247_v56, %s2513_s23  ;;  %v3130_v56 = vld [vmem:[#allocation2 + $0xe1] sm:$0xff]  ;;  %v1442_v57 = vmul.f32 %v1441_v30, %v3128_v28 }
 0x354   : >> { %1275 = vrot.lane.b32.xlu0 %v1271_v60, %s2513_s23  ;;  %v1443_v60 = vmul.f32 %v1441_v30, %v3130_v56 }
 0x355   : >> { %1277 = vrot.lane.b32.xlu1 %v1272_v35, %s2513_s23  ;;  %v3137_v35 = vld [vmem:[#allocation2 + $0xf0] sm:$0xff] }
 0x358   : >> { %1299 = vrot.lane.b32.xlu0 %v1295_v63, %s2513_s23  ;;  %v3139_v63 = vld [vmem:[#allocation2 + $0xf8] sm:$0xff] }
 0x359   : >> { %1301 = vrot.lane.b32.xlu1 %v1296_v0, %s2513_s23  ;;  %v1467_v0 = vmul.f32 %v1466_v36, %v3137_v35  ;;  %v1468_v52 = vmul.f32 %v1466_v36, %v3139_v63  ;;  %v969_v36 = vstv %s968_s25  ;;  %s3230_s25 = sld [smem:[#allocation6 + %s1236_s15]] }
 0x35c   : >> { %1324 = vrot.lane.b32.xlu0 %v1320_v6, %s2513_s23  ;;  %v3146_v6 = vld [vmem:[#allocation2 + $0xf1] sm:$0xff] }
 0x35d   : >> { %1326 = vrot.lane.b32.xlu1 %v1321_v59, %s2513_s23  ;;  %v1490_v59 = vstv %s1489_s17  ;;  %s3212_s17 = sld [smem:[#allocation6 + %s1163_s20]] }
 0x360   : >> { %1348 = vrot.lane.b32.xlu0 %v1344_v18, %s2513_s23  ;;  %v1491_v18 = vmul.f32 %v1490_v59, %v3146_v6 }
 0x361   : >> { %1350 = vrot.lane.b32.xlu1 %v1345_v7, %s2513_s23  ;;  %v1492_v7 = vmul.f32 %v1490_v59, %v3148_v2 }
 0x364   : >> { %1373 = vrot.lane.b32.xlu0 %v1369_v24, %s2513_s23  ;;  %v1515_v24 = vstv %s1514_s1  ;;  %s3218_s1 = sld [smem:[#allocation6 + %s1187_s24]] }
 0x365   : >> { %1375 = vrot.lane.b32.xlu1 %v1370_v14, %s2513_s23  ;;  %v3156_v14 = vld [vmem:[#allocation2 + $0x110] sm:$0xff]  ;;  %v1516_v15 = vmul.f32 %v1515_v24, %v3154_v9 }
 0x368   : >> { %1397 = vrot.lane.b32.xlu0 %v1393_v46, %s2513_s23  ;;  %v1517_v46 = vmul.f32 %v1515_v24, %v3156_v14  ;;  %v1018_v24 = vstv %s1017_s28  ;;  %s1285_s28 = sadd.s32 26, %s2954_s2 }
 0x369   : >> { %1399 = vrot.lane.b32.xlu1 %v1394_v20, %s2513_s23  ;;  %v3162_v20 = vld [vmem:[#allocation2 + $0x109] sm:$0xff]  ;;  %s3242_s29 = sld [smem:[#allocation6 + %s1285_s28]] }
 0x36c   : >> { %1422 = vrot.lane.b32.xlu0 %v1418_v54, %s2513_s23  ;;  %v3164_v54 = vld [vmem:[#allocation2 + $0x111] sm:$0xff] }
 0x36d   : >> { %1424 = vrot.lane.b32.xlu1 %v1419_v27, %s2513_s23  ;;  %v1540_v27 = vmul.f32 %v1539_v22, %v3162_v20  ;;  %v1541_v30 = vmul.f32 %v1539_v22, %v3164_v54 }
 0x370   : >> { %1446 = vrot.lane.b32.xlu0 %v1442_v57, %s2513_s23  ;;  %v3348_v57 = vmov 0.0|0.0  }
 0x371   : >> { %1448 = vrot.lane.b32.xlu1 %v1443_v60, %s2513_s23  ;;  %2200 = vmatprep.subr.bf16.mxu0 %v3348_v57  ;;  %v3346_v60 = vmov 0.0  }
 0x372   : >> { %2203 = vmatprep.subr.bf16.mxu1 %v3348_v57  ;;  %2144 = vmatprep.mubr.msk.f32.mxu0 %vm2515_vm8, %v3346_v60 }
 0x373   : >> { %2151 = vmatprep.mubr.msk.f32.mxu1 %vm2515_vm8, %v3346_v60 }
 0x374   : >> { %1471 = vrot.lane.b32.xlu0 %v1467_v0, %s2513_s23  ;;  %v993_v0 = vstv %s992_s26  ;;  %s1261_s26 = sadd.s32 24, %s2954_s2 }
 0x375   : >> { %1473 = vrot.lane.b32.xlu1 %v1468_v52, %s2513_s23  ;;  %v970_v52 = vmul.f32 %v969_v36, %v2960_v10  ;;  %v994_v59 = vmul.f32 %v993_v0, %v2962_v12  ;;  %v1042_v12 = vstv %s3182_s10  ;;  %s3236_s19 = sld [smem:[#allocation6 + %s1261_s26]]  ;;  %s1310_s10 = sadd.s32 28, %s2954_s2 }
 0x378   : >> { %1495 = vrot.lane.b32.xlu0 %v1491_v18, %s2513_s23 }
 0x379   : >> { %1497 = vrot.lane.b32.xlu1 %v1492_v7, %s2513_s23 }
 0x37c   : >> { %1520 = vrot.lane.b32.xlu0 %v1516_v15, %s2513_s23 }
 0x37d   : >> { %1522 = vrot.lane.b32.xlu1 %v1517_v46, %s2513_s23  ;;  %v971_v46 = vmul.f32 %v969_v36, %v2964_v32  ;;  %v1020_v32 = vmul.f32 %v1018_v24, %v2977_v42  ;;  %v1043_v36 = vmul.f32 %v1042_v12, %v2984_v51  ;;  %v1091_v51 = vstv %s3194_s27  ;;  %s1359_s27 = sadd.s32 32, %s2954_s2 }
 0x37e   : >> { %s3260_s22 = sld [smem:[#allocation6 + %s1359_s27]] }
 0x380   : >> { %1544 = vrot.lane.b32.xlu0 %v1540_v27, %s2513_s23  ;;  %v995_v27 = vmul.f32 %v993_v0, %v2966_v34 }
 0x381   : >> { %1546 = vrot.lane.b32.xlu1 %v1541_v30, %s2513_s23  ;;  %s1065_s23 = sadd.s32 8, %s2954_s2  ;;  %v1019_v30 = vmul.f32 %v1018_v24, %v2975_v41 }
 0x382   : >> { %s3187_s11 = sld [smem:[#allocation6 + %s1065_s23]] }
 0x383   : >> { %s3248_s23 = sld [smem:[#allocation6 + %s1310_s10]] }
 0x388   : >> { %v1067_v41 = vstv %s3187_s11  ;;  %s1334_s11 = sadd.s32 30, %s2954_s2 }
 0x389   : >> { %s3254_s21 = sld [smem:[#allocation6 + %s1334_s11]] }
 0x396   : >> { %v982_v18 = vpop.permute.xlu0 %981 }
 0x397   : >> { %v1006_v7 = vpop.permute.xlu1 %1005  ;;  %v987_v15 = vadd.f32 %v982_v18, %v970_v52 }
 0x399   : >> { %v996_v22 = vadd.f32 %v994_v59, %v987_v15 }
 0x39a   : >> { %v984_v10 = vpop.permute.xlu0 %983 }
 0x39b   : >> { %v1008_v60 = vpop.permute.xlu1 %1007  ;;  %v1011_v57 = vadd.f32 %v1006_v7, %v996_v22  ;;  %v988_v11 = vadd.f32 %v984_v10, %v971_v46 }
 0x39d   : >> { %v997_v8 = vadd.f32 %v995_v27, %v988_v11  ;;  %v1021_v52 = vadd.f32 %v1019_v30, %v1011_v57  ;;  %v1044_v11 = vmul.f32 %v1042_v12, %v2986_v5  ;;  %v1068_v57 = vmul.f32 %v1067_v41, %v2993_v58 }
 0x39e   : >> { %v1031_v59 = vpop.permute.xlu0 %1030  ;;  %v1092_v30 = vmul.f32 %v1091_v51, %v3002_v3  ;;  %v1116_v58 = vstv %s3200_s12  ;;  %v1140_v3 = vstv %s3206_s0  ;;  %s1383_s12 = sadd.s32 34, %s2954_s2  ;;  %s1408_s0 = sadd.s32 36, %s2954_s2 }
 0x39f   : >> { %v1033_v34 = vpop.permute.xlu1 %1032  ;;  %v1012_v0 = vadd.f32 %v1008_v60, %v997_v8  ;;  %v1036_v18 = vadd.f32 %v1031_v59, %v1021_v52  ;;  %v1069_v60 = vmul.f32 %v1067_v41, %v2995_v62  ;;  %v1093_v59 = vmul.f32 %v1091_v51, %v3004_v4  ;;  %s3266_s18 = sld [smem:[#allocation6 + %s1383_s12]] }
 0x3a0   : >> { %s3272_s20 = sld [smem:[#allocation6 + %s1408_s0]] }
 0x3a1   : >> { %v1022_v15 = vadd.f32 %v1020_v32, %v1012_v0  ;;  %v1045_v7 = vadd.f32 %v1043_v36, %v1036_v18 }
 0x3a2   : >> { %v1055_v46 = vpop.permute.xlu0 %1054 }
 0x3a3   : >> { %v1057_v42 = vpop.permute.xlu1 %1056  ;;  %v1037_v24 = vadd.f32 %v1033_v34, %v1022_v15  ;;  %v1060_v22 = vadd.f32 %v1055_v46, %v1045_v7  ;;  %v1117_v34 = vmul.f32 %v1116_v58, %v3011_v37  ;;  %v1165_v37 = vstv %s3212_s17  ;;  %s1432_s17 = sadd.s32 38, %s2954_s2 }
 0x3a4   : >> { %s3278_s24 = sld [smem:[#allocation6 + %s1432_s17]] }
 0x3a5   : >> { %v1046_v27 = vadd.f32 %v1044_v11, %v1037_v24  ;;  %v1070_v8 = vadd.f32 %v1068_v57, %v1060_v22  ;;  %v1118_v11 = vmul.f32 %v1116_v58, %v3013_v45  ;;  %v1141_v57 = vmul.f32 %v1140_v3, %v3020_v48 }
 0x3a6   : >> { %v1080_v10 = vpop.permute.xlu0 %1079  ;;  %v1189_v48 = vstv %s3218_s1  ;;  %s1457_s1 = sadd.s32 40, %s2954_s2 }
 0x3a7   : >> { %v1082_v5 = vpop.permute.xlu1 %1081  ;;  %v1061_v12 = vadd.f32 %v1057_v42, %v1046_v27  ;;  %v1085_v52 = vadd.f32 %v1080_v10, %v1070_v8  ;;  %v1142_v27 = vmul.f32 %v1140_v3, %v3022_v13  ;;  %v1166_v8 = vmul.f32 %v1165_v37, %v3029_v43  ;;  %s3284_s30 = sld [smem:[#allocation6 + %s1457_s1]] }
 0x3a8   : >> { %v1214_v43 = vstv %s3224_s13  ;;  %s1481_s13 = sadd.s32 42, %s2954_s2 }
 0x3a9   : >> { %v1071_v32 = vadd.f32 %v1069_v60, %v1061_v12  ;;  %v1094_v36 = vadd.f32 %v1092_v30, %v1085_v52  ;;  %v1167_v12 = vmul.f32 %v1165_v37, %v3031_v44  ;;  %v1190_v52 = vmul.f32 %v1189_v48, %v3038_v19  ;;  %s3290_s15 = sld [smem:[#allocation6 + %s1481_s13]] }
 0x3aa   : >> { %v1104_v0 = vpop.permute.xlu0 %1103  ;;  %v1215_v3 = vmul.f32 %v1214_v43, %v3047_v50  ;;  %v1238_v19 = vstv %s3230_s25  ;;  %v1263_v50 = vstv %s3236_s19  ;;  %s1506_s25 = sadd.s32 44, %s2954_s2  ;;  %s1530_s19 = sadd.s32 46, %s2954_s2 }
 0x3ab   : >> { %v1106_v62 = vpop.permute.xlu1 %1105  ;;  %v1086_v41 = vadd.f32 %v1082_v5, %v1071_v32  ;;  %v1109_v18 = vadd.f32 %v1104_v0, %v1094_v36  ;;  %s3296_s26 = sld [smem:[#allocation6 + %s1506_s25]] }
 0x3ac   : >> { %s3302_s28 = sld [smem:[#allocation6 + %s1530_s19]] }
 0x3ad   : >> { %v1095_v15 = vadd.f32 %v1093_v59, %v1086_v41  ;;  %v1119_v7 = vadd.f32 %v1117_v34, %v1109_v18  ;;  %s1552_s2 = sld [smem:[#allocation7 + %s2499_s3]] }
 0x3ae   : >> { %v1129_v46 = vpop.permute.xlu0 %1128 }
 0x3af   : >> { %v1131_v4 = vpop.permute.xlu1 %1130  ;;  %v1110_v42 = vadd.f32 %v1106_v62, %v1095_v15  ;;  %v1134_v51 = vadd.f32 %v1129_v46, %v1119_v7  ;;  %v1191_v62 = vmul.f32 %v1189_v48, %v3040_v21  ;;  %v1239_v46 = vmul.f32 %v1238_v19, %v3056_v55 }
 0x3b0   : >> { %v1287_v55 = vstv %s3242_s29  ;;  %s2051_s29 = sshll.u32 %s2499_s3, 3  ;;  %s964_s3 = sadd.s32 1, %s2499_s3  }
 0x3b1   : >> { %v1120_v24 = vadd.f32 %v1118_v11, %v1110_v42  ;;  %v1143_v22 = vadd.f32 %v1141_v57, %v1134_v51  ;;  %v1216_v57 = vmul.f32 %v1214_v43, %v3049_v26  ;;  %v1289_v43 = vmul.f32 %v1287_v55, %v3076_v40  ;;  %s1855_s10 = scalar_lea.vmem %s2758_s16, %s2051_s29  ;;  %p961_p12 = scmp.ge.s32.totalorder %s964_s3, 24  }
 0x3b2   : >> { %v1153_v60 = vpop.permute.xlu0 %1152 }
 0x3b3   : >> { %v1155_v45 = vpop.permute.xlu1 %1154  ;;  %v1135_v30 = vadd.f32 %v1131_v4, %v1120_v24  ;;  %v1158_v10 = vadd.f32 %v1153_v60, %v1143_v22  ;;  %v1240_v22 = vmul.f32 %v1238_v19, %v3058_v29 }
 0x3b5   : >> { %v1144_v5 = vadd.f32 %v1142_v27, %v1135_v30  ;;  %v1168_v58 = vadd.f32 %v1166_v8, %v1158_v10  ;;  %v1264_v27 = vmul.f32 %v1263_v50, %v3065_v31  ;;  %v1265_v10 = vmul.f32 %v1263_v50, %v3067_v33 }
 0x3b6   : >> { %v1178_v32 = vpop.permute.xlu0 %1177  ;;  %v1312_v31 = vstv %s3248_s23 }
 0x3b7   : >> { %v1180_v13 = vpop.permute.xlu1 %1179  ;;  %v1159_v36 = vadd.f32 %v1155_v45, %v1144_v5  ;;  %v1183_v59 = vadd.f32 %v1178_v32, %v1168_v58  ;;  %v1288_v5 = vmul.f32 %v1287_v55, %v3074_v61  ;;  %v1336_v61 = vstv %s3254_s21 }
 0x3b9   : >> { %v1169_v34 = vadd.f32 %v1167_v12, %v1159_v36  ;;  %v1192_v0 = vadd.f32 %v1190_v52, %v1183_v59  ;;  %v1313_v36 = vmul.f32 %v1312_v31, %v3083_v47  ;;  %v1361_v47 = vstv %s3260_s22 }
 0x3ba   : >> { %v1202_v41 = vpop.permute.xlu0 %1201 }
 0x3bb   : >> { %v1204_v44 = vpop.permute.xlu1 %1203  ;;  %v1184_v18 = vadd.f32 %v1180_v13, %v1169_v34  ;;  %v1207_v15 = vadd.f32 %v1202_v41, %v1192_v0  ;;  %v1314_v41 = vmul.f32 %v1312_v31, %v3085_v53 }
 0x3bd   : >> { %v1193_v7 = vadd.f32 %v1191_v62, %v1184_v18  ;;  %v1217_v11 = vadd.f32 %v1215_v3, %v1207_v15 }
 0x3be   : >> { %v1227_v4 = vpop.permute.xlu0 %1226 }
 0x3bf   : >> { %v1229_v21 = vpop.permute.xlu1 %1228  ;;  %v1208_v37 = vadd.f32 %v1204_v44, %v1193_v7  ;;  %v1232_v42 = vadd.f32 %v1227_v4, %v1217_v11  ;;  %v1337_v44 = vmul.f32 %v1336_v61, %v3092_v1  ;;  %v1385_v1 = vstv %s3266_s18 }
 0x3c1   : >> { %v1218_v51 = vadd.f32 %v1216_v57, %v1208_v37  ;;  %v1241_v24 = vadd.f32 %v1239_v46, %v1232_v42  ;;  %v1338_v57 = vmul.f32 %v1336_v61, %v3094_v17  ;;  %v1362_v46 = vmul.f32 %v1361_v47, %v3101_v38 }
 0x3c2   : >> { %v1251_v8 = vpop.permute.xlu0 %1250  ;;  %v1410_v38 = vstv %s3272_s20 }
 0x3c3   : >> { %v1253_v26 = vpop.permute.xlu1 %1252  ;;  %v1233_v60 = vadd.f32 %v1229_v21, %v1218_v51  ;;  %v1256_v45 = vadd.f32 %v1251_v8, %v1241_v24  ;;  %v1363_v51 = vmul.f32 %v1361_v47, %v3103_v23  ;;  %v1386_v24 = vmul.f32 %v1385_v1, %v3110_v39 }
 0x3c4   : >> { %v1434_v39 = vstv %s3278_s24 }
 0x3c5   : >> { %v1242_v48 = vadd.f32 %v1240_v22, %v1233_v60  ;;  %v1266_v30 = vadd.f32 %v1264_v27, %v1256_v45  ;;  %v1387_v60 = vmul.f32 %v1385_v1, %v3112_v16  ;;  %v1411_v45 = vmul.f32 %v1410_v38, %v3119_v49 }
 0x3c6   : >> { %v1276_v58 = vpop.permute.xlu0 %1275  ;;  %v1435_v31 = vmul.f32 %v1434_v39, %v3128_v28 }
 0x3c7   : >> { %v1278_v29 = vpop.permute.xlu1 %1277  ;;  %v1257_v12 = vadd.f32 %v1253_v26, %v1242_v48  ;;  %v1281_v52 = vadd.f32 %v1276_v58, %v1266_v30 }
 0x3c9   : >> { %v1267_v32 = vadd.f32 %v1265_v10, %v1257_v12  ;;  %v1290_v13 = vadd.f32 %v1288_v5, %v1281_v52  ;;  %v1459_v52 = vstv %s3284_s30 }
 0x3ca   : >> { %v1300_v59 = vpop.permute.xlu0 %1299 }
 0x3cb   : >> { %v1302_v33 = vpop.permute.xlu1 %1301  ;;  %v1282_v34 = vadd.f32 %v1278_v29, %v1267_v32  ;;  %v1305_v0 = vadd.f32 %v1300_v59, %v1290_v13  ;;  %v1412_v29 = vmul.f32 %v1410_v38, %v3121_v25  ;;  %v1460_v59 = vmul.f32 %v1459_v52, %v3137_v35 }
 0x3cc   : >> { %v1483_v25 = vstv %s3290_s15 }
 0x3cd   : >> { %v1291_v62 = vadd.f32 %v1289_v43, %v1282_v34  ;;  %v1315_v3 = vadd.f32 %v1313_v36, %v1305_v0  ;;  %v1436_v36 = vmul.f32 %v1434_v39, %v3130_v56  ;;  %v1508_v56 = vstv %s3296_s26  ;;  %v1781_v39 = vld [vmem:[#allocation13] sm:$0xff] }
 0x3ce   : >> { %v1325_v19 = vpop.permute.xlu0 %1324 }
 0x3cf   : >> { %v1327_v40 = vpop.permute.xlu1 %1326  ;;  %v1306_v18 = vadd.f32 %v1302_v33, %v1291_v62  ;;  %v1330_v15 = vadd.f32 %v1325_v19, %v1315_v3  ;;  %v1461_v3 = vmul.f32 %v1459_v52, %v3139_v63 }
 0x3d1   : >> { %v1316_v7 = vadd.f32 %v1314_v41, %v1306_v18  ;;  %v1339_v11 = vadd.f32 %v1337_v44, %v1330_v15  ;;  %v1484_v41 = vmul.f32 %v1483_v25, %v3146_v6  ;;  %v1485_v15 = vmul.f32 %v1483_v25, %v3148_v2 }
 0x3d2   : >> { %v1349_v4 = vpop.permute.xlu0 %1348  ;;  %v1510_v6 = vmul.f32 %v1508_v56, %v3156_v14 }
 0x3d3   : >> { %v1351_v53 = vpop.permute.xlu1 %1350  ;;  %v1331_v21 = vadd.f32 %v1327_v40, %v1316_v7  ;;  %v1354_v50 = vadd.f32 %v1349_v4, %v1339_v11  ;;  %v1509_v7 = vmul.f32 %v1508_v56, %v3154_v9 }
 0x3d5   : >> { %v1340_v37 = vadd.f32 %v1338_v57, %v1331_v21  ;;  %v1364_v42 = vadd.f32 %v1362_v46, %v1354_v50  ;;  %v1532_v46 = vstv %s3302_s28 }
 0x3d6   : >> { %v1374_v22 = vpop.permute.xlu0 %1373  ;;  %v1533_v21 = vmul.f32 %v1532_v46, %v3162_v20  ;;  %v1534_v9 = vmul.f32 %v1532_v46, %v3164_v54  ;;  %v1706_v20 = vld [vmem:[#allocation12] sm:$0xff] }
 0x3d7   : >> { %v1376_v17 = vpop.permute.xlu1 %1375  ;;  %v1355_v27 = vadd.f32 %v1351_v53, %v1340_v37  ;;  %v1379_v8 = vadd.f32 %v1374_v22, %v1364_v42 }
 0x3d9   : >> { %v1365_v26 = vadd.f32 %v1363_v51, %v1355_v27  ;;  %v1388_v55 = vadd.f32 %v1386_v24, %v1379_v8  ;;  %v1553_v27 = vstv %s1552_s2 }
 0x3da   : >> { %v1398_v48 = vpop.permute.xlu0 %1397 }
 0x3db   : >> { %v1400_v23 = vpop.permute.xlu1 %1399  ;;  %v1380_v30 = vadd.f32 %v1376_v17, %v1365_v26  ;;  %v1403_v10 = vadd.f32 %v1398_v48, %v1388_v55 }
 0x3dd   : >> { %v1389_v5 = vadd.f32 %v1387_v60, %v1380_v30  ;;  %v1413_v58 = vadd.f32 %v1411_v45, %v1403_v10  ;;  %v1782_v30 = vld [vmem:[#allocation13 + $0x8] sm:$0xff] }
 0x3de   : >> { %v1423_v12 = vpop.permute.xlu0 %1422 }
 0x3df   : >> { %v1425_v16 = vpop.permute.xlu1 %1424  ;;  %v1404_v49 = vadd.f32 %v1400_v23, %v1389_v5  ;;  %v1428_v32 = vadd.f32 %v1423_v12, %v1413_v58  ;;  %v1707_v23 = vld [vmem:[#allocation12 + $0x8] sm:$0xff]  ;;  %v2210_v5 = vpack.c.bf16 %v1782_v30, %v1781_v39  ;;  %v3364_v58 = vmov 0.0|0.0  }
 0x3e0   : >> { %v2207_v54 = vpack.c.bf16 %v1707_v23, %v1706_v20  ;;  %v3367_v12 = vmov 0.0  }
 0x3e1   : >> { %v1414_v13 = vadd.f32 %v1412_v29, %v1404_v49  ;;  %v1437_v43 = vadd.f32 %v1435_v31, %v1428_v32  ;;  %v3365_v29 = vld [vmem:[#allocation19_spill] sm:$0xff]  ;;  %v3366_v31 = vld [vmem:[#allocation20_spill] sm:$0xff] }
 0x3e2   : >> { %v1447_v33 = vpop.permute.xlu0 %1446 }
 0x3e3   : >> { %v1449_v61 = vpop.permute.xlu1 %1448  ;;  %v1429_v28 = vadd.f32 %v1425_v16, %v1414_v13  ;;  %v1452_v34 = vadd.f32 %v1447_v33, %v1437_v43 }
 0x3e5   : >> { %v1438_v0 = vadd.f32 %v1436_v36, %v1429_v28  ;;  %v1462_v62 = vadd.f32 %v1460_v59, %v1452_v34 }
 0x3e6   : >> { %v1472_v44 = vpop.permute.xlu0 %1471 }
 0x3e7   : >> { %v1474_v19 = vpop.permute.xlu1 %1473  ;;  %v1453_v40 = vadd.f32 %v1449_v61, %v1438_v0  ;;  %v1477_v35 = vadd.f32 %v1472_v44, %v1462_v62 }
 0x3e9   : >> { %v1463_v47 = vadd.f32 %v1461_v3, %v1453_v40  ;;  %v1486_v18 = vadd.f32 %v1484_v41, %v1477_v35 }
 0x3ea   : >> { %v1496_v11 = vpop.permute.xlu0 %1495 }
 0x3eb   : >> { %v1498_v57 = vpop.permute.xlu1 %1497  ;;  %v1478_v4 = vadd.f32 %v1474_v19, %v1463_v47  ;;  %v1501_v53 = vadd.f32 %v1496_v11, %v1486_v18 }
 0x3ed   : >> { %v1487_v63 = vadd.f32 %v1485_v15, %v1478_v4  ;;  %v1511_v1 = vadd.f32 %v1509_v7, %v1501_v53 }
 0x3ee   : >> { %v1521_v50 = vpop.permute.xlu0 %1520 }
 0x3ef   : >> { %v1523_v37 = vpop.permute.xlu1 %1522  ;;  %v1502_v42 = vadd.f32 %v1498_v57, %v1487_v63  ;;  %v1526_v51 = vadd.f32 %v1521_v50, %v1511_v1 }
 0x3f1   : >> { %v1512_v24 = vadd.f32 %v1510_v6, %v1502_v42  ;;  %v1535_v2 = vadd.f32 %v1533_v21, %v1526_v51 }
 0x3f2   : >> { %v1545_v22 = vpop.permute.xlu0 %1544 }
 0x3f3   : >> { %v1527_v17 = vadd.f32 %v1523_v37, %v1512_v24  ;;  %v1550_v38 = vadd.f32 %v1545_v22, %v1535_v2  ;;  %v1547_v8 = vpop.permute.xlu1 %1546 }
 0x3f5   : >> { %v1536_v26 = vadd.f32 %v1534_v9, %v1527_v17  ;;  %v1554_v55 = vadd.f32 %v1553_v27, %v1550_v38 }
 0x3f7   : >> { %v1551_v60 = vadd.f32 %v1547_v8, %v1536_v26  ;;  %v1556_v14 = vmax.f32 %v1554_v55, 0.0 }
 0x3f9   : >> { %v1555_v45 = vadd.f32 %v1553_v27, %v1551_v60 }
 0x3fb   : >> { %v1557_v48 = vmax.f32 %v1555_v45, 0.0 }
 0x3fd   : >> { %v2201_v10 = vpack.c.bf16 %v1557_v48, %v1556_v14 }
 0x3ff   : >> { %2202 = vmatpush3.bf16.msra.mxu0 %v2201_v10  ;;  %2205 = vmatpush3.bf16.msra.mxu1 %v2201_v10 }
 0x400   : >> { %2206 = vmatprep.subr.bf16.mxu0 %v3364_v58  ;;  %2209 = vmatprep.subr.bf16.mxu1 %v3364_v58 }
 0x402   : >> { %2145 = vmatmul.mubr.msk.f32.vlgmr.msra.gmra.mrb[0].mxu0 %vm1558_vm9, %v3365_v29  ;;  %2152 = vmatmul.mubr.msk.f32.vlgmr.msra.gmra.mrb[0].mxu1 %vm1558_vm9, %v3366_v31 }
 0x403   : >> { %2208 = vmatpush3.bf16.msra.mxu0 %v2207_v54  ;;  %2211 = vmatpush3.bf16.msra.mxu1 %v2210_v5 }
 0x404   : >> { %2158 = vmatprep.mubr.msk.f32.mxu0 %vm2515_vm8, %v3367_v12  ;;  %2165 = vmatprep.mubr.msk.f32.mxu1 %vm2515_vm8, %v3367_v12 }
 0x4d5   : >> { %v1628_v16 = vpop.f32.mrb[0].mxu0  ;;  %v1701_v52 = vpop.f32.mrb[0].mxu1 }
 0x4d6   : >> { %v1705_v49 = vmax.f32 %v1628_v16, %v1701_v52  ;;  %v2146_v32 = vpop.f32.mrb[1].mxu0  ;;  %v2153_v13 = vpop.f32.mrb[1].mxu1 }
 0x4d8   : >> { %2159 = vmatmul.mubr.msk.f32.vlgmr.msra.gmra.mrb[2].mxu0 %vm1558_vm9, %v1705_v49  ;;  %2166 = vmatmul.mubr.msk.f32.vlgmr.msra.gmra.mrb[2].mxu1 %vm1558_vm9, %v1705_v49 }
 0x5a8   : > { %963 = sbr.rel (!%p961_p12) target bundleno = 792 (0x318), region = 149 }
 0x5ab   : >> { %v1777_v43 = vpop.f32.mrb[2].mxu0  ;;  %v1849_v36 = vpop.f32.mrb[2].mxu1 }
 0x5ac   : >> { %v1853_v59 = vmax.f32 %v1777_v43, %v1849_v36  ;;  %v2160_v33 = vpop.f32.mrb[3].mxu0  ;;  %v2167_v61 = vpop.f32.mrb[3].mxu1 }
 0x5ae   : >> { %1857 = vst.msk [vmem:[%s1855_s10] sm:$0xff] %vm1856_vm10, %v1853_v59 }
 0x5af PF: > { %s36_s14 = sadd.s32 1, %s2487_s14  }
 0x5b0   : > { %p33_p13 = scmp.ge.s32.totalorder %s36_s14, 4  }
 0x5b2   :  { %35 = sbr.rel (!%p33_p13) target bundleno = 42 (0x2a), region = 160 }
 0x5b9   :  { %1879 = vsyncpa [#allocation9], 1 }
 0x5ba   :  { %1881 = vsyncpa [#allocation9 + $0x1], 1 }
 0x5bb   :  { %1882 = vsyncpa [#allocation11], 1 }
 0x5bc   :  { %1883 = vsyncpa [#allocation14], 1 }

// kernel: pigs_forward.5
= control target key start
LH: loop header
LB: loop body
LE: loop exit
PB: predicated region body
PF: predicated region fallthrough
CT: control target
= control target key end

     0   :  { %v58_v3 = vlaneseq  ;;  %v425_v4 = vmov 0.0|0.0   ;;  %vm52_vm0 = vcmask 582656   ;;  %s643_s0 = inlined_call_operand.vmem [shape: f32[2,2,200], index: 0, kind: input, shape index: {}]   ;;  %s644_s1 = inlined_call_operand.vmem [shape: f32[1,200], index: 1, kind: input, shape index: {}]   ;;  %s645_s2 = inlined_call_operand.vmem [shape: f32[200,100], index: 2, kind: input, shape index: {}]   ;;  %s646_s3 = inlined_call_operand.vmem [shape: f32[1,100], index: 3, kind: input, shape index: {}]   ;;  %s647_s4 = inlined_call_operand.vmem [shape: f32[100,4], index: 4, kind: input, shape index: {}]   ;;  %s648_s5 = inlined_call_operand.vmem [shape: f32[1,4], index: 5, kind: input, shape index: {}]   ;;  %s649_s6 = inlined_call_operand.hbm [shape: f32[2,4], index: 6, kind: output, shape index: {}]  }
   0x1   :  { %v72_v0 = vld [vmem:[%s645_s2] sm:$0xff]  ;;  %v73_v1 = vld [vmem:[%s645_s2 + $0x8] sm:$0xff]  ;;  %v74_v2 = vld [vmem:[%s645_s2 + $0x10] sm:$0xff]  ;;  %343 = vmatprep.subr.bf16.mxu0 %v425_v4  ;;  %379 = vmatprep.subr.bf16.mxu1 %v425_v4 }
   0x2   :  { %v344_v5 = vpack.c.bf16 %v73_v1, %v72_v0  ;;  %v75_v6 = vld [vmem:[%s645_s2 + $0x18] sm:$0xff]  ;;  %v478_v8 = vshrl.u32 %v58_v3, 7  ;;  %v76_v9 = vld [vmem:[%s645_s2 + $0x20] sm:$0xff]  ;;  %v77_v10 = vld [vmem:[%s645_s2 + $0x28] sm:$0xff] }
   0x3   :  { %v347_v7 = vpack.c.bf16 %v75_v6, %v74_v2  ;;  %v350_v11 = vpack.c.bf16 %v77_v10, %v76_v9  ;;  %v78_v12 = vld [vmem:[%s645_s2 + $0x30] sm:$0xff]  ;;  %v79_v14 = vld [vmem:[%s645_s2 + $0x38] sm:$0xff]  ;;  %v498_v15 = vld.sshfl [vmem:[%s643_s0] sm:$0x33 pattern:$0x76325410] }
   0x4   :  { %345 = vmatpush1.bf16.msra.mxu0 %v344_v5  ;;  %v64_v13 = vsub.s32 1, %v478_v8  ;;  %v179_v16 = vld [vmem:[%s647_s4] sm:$0xff]  ;;  %v35_v18 = vcombine.high %v498_v15, %v498_v15  ;;  %v180_v21 = vld [vmem:[%s647_s4 + $0x8] sm:$0xff]  ;;  %v181_v22 = vld [vmem:[%s647_s4 + $0x10] sm:$0xff]  ;;  %v353_v24 = vpack.c.bf16 %v79_v14, %v78_v12 }
   0x5   :  { %346 = vmatprep.subr.bf16.mxu0 %v425_v4  ;;  %v506_v17 = vld.sshfl [vmem:[%s643_s0 + $0x4] sm:$0x33 pattern:$0x76325410]  ;;  %v513_v19 = vld [vmem:[%s644_s1] sm:$0x3]  ;;  %v380_v27 = vpack.c.bf16 %v180_v21, %v179_v16 }
   0x6   :  { %v43_v20 = vcombine.high %v506_v17, %v506_v17  ;;  %v182_v23 = vld [vmem:[%s647_s4 + $0x18] sm:$0xff]  ;;  %v53_v25 = vsel %vm52_vm0, %v35_v18, 0.0  ;;  %v65_v26 = vrot.slane %v513_v19, %v64_v13  ;;  %v80_v28 = vld [vmem:[%s645_s2 + $0x40] sm:$0xff]  ;;  %v81_v29 = vld [vmem:[%s645_s2 + $0x48] sm:$0xff] }
   0x7   :  { %381 = vmatpush3.bf16.msra.mxu1 %v380_v27  ;;  %v383_v32 = vpack.c.bf16 %v182_v23, %v181_v22 }
   0x8   :  { %348 = vmatpush1.bf16.msra.mxu0 %v347_v7  ;;  %v54_v30 = vsel %vm52_vm0, %v43_v20, 0.0 }
   0x9   :  { %349 = vmatprep.subr.bf16.mxu0 %v425_v4  ;;  %v55_v31 = vadd.f32 %v54_v30, %v53_v25 }
   0xc   :  { %351 = vmatpush1.bf16.msra.mxu0 %v350_v11 }
   0xd   :  { %352 = vmatprep.subr.bf16.mxu0 %v425_v4 }
   0xe   :  { %11 = vsyncpa [#allocation3], 0  ;;  %382 = vmatprep.subr.bf16.mxu1 %v425_v4  ;;  %v183_v33 = vld [vmem:[%s647_s4 + $0x20] sm:$0xff]  ;;  %v184_v34 = vld [vmem:[%s647_s4 + $0x28] sm:$0xff]  ;;  %v356_v35 = vpack.c.bf16 %v81_v29, %v80_v28  ;;  %v69_v36 = vadd.f32 %v65_v26, %v55_v31  ;;  %vm104_vm1 = vcmask 588800   ;;  %vm48_vm2 = vcmask 1041408  }
   0xf   :  { %v82_v37 = vld [vmem:[%s645_s2 + $0x50] sm:$0xff]  ;;  %v83_v38 = vld [vmem:[%s645_s2 + $0x58] sm:$0xff]  ;;  %384 = vmatpush3.bf16.msra.mxu1 %v383_v32  ;;  %v386_v40 = vpack.c.bf16 %v184_v34, %v183_v33  ;;  %v84_v44 = vld [vmem:[%s645_s2 + $0x60] sm:$0xff]  ;;  %v60_v62 = vsub.s32 0, %v478_v8  ;;  %v49_v63 = vsel %vm48_vm2, %v498_v15, 0.0  ;;  %v50_v0 = vsel %vm48_vm2, %v506_v17, 0.0 }
  0x10   :  { %354 = vmatpush1.bf16.msra.mxu0 %v353_v24  ;;  %v71_v39 = vmax.f32 %v69_v36, 0.0  ;;  %385 = vmatprep.subr.bf16.mxu1 %v425_v4  ;;  %v185_v41 = vld [vmem:[%s647_s4 + $0x30] sm:$0xff]  ;;  %v186_v42 = vld [vmem:[%s647_s4 + $0x38] sm:$0xff]  ;;  %v359_v43 = vpack.c.bf16 %v83_v38, %v82_v37  ;;  %v85_v45 = vld [vmem:[%s645_s2 + $0x68] sm:$0xff]  ;;  %v51_v6 = vadd.f32 %v50_v0, %v49_v63  ;;  %v426_v9 = vmov 0.0   ;;  %s428_s28 = smov [#allocation2]  }
  0x11   :  { %355 = vmatprep.subr.bf16.mxu0 %v425_v4  ;;  %v389_v46 = vpack.c.bf16 %v186_v42, %v185_v41  ;;  %v187_v47 = vld [vmem:[%s647_s4 + $0x40] sm:$0xff]  ;;  %v188_v48 = vld [vmem:[%s647_s4 + $0x48] sm:$0xff]  ;;  %v362_v49 = vpack.c.bf16 %v85_v45, %v84_v44  ;;  %v86_v50 = vld [vmem:[%s645_s2 + $0x70] sm:$0xff]  ;;  %v61_v5 = vrot.slane %v513_v19, %v60_v62  ;;  %vm203_vm3 = vcmask 1043456  }
  0x12   :  { %296 = vmatprep.mubr.msk.f32.mxu0 %vm104_vm1, %v71_v39  ;;  %v87_v51 = vld [vmem:[%s645_s2 + $0x78] sm:$0xff]  ;;  %v392_v52 = vpack.c.bf16 %v188_v48, %v187_v47  ;;  %v88_v54 = vld [vmem:[%s645_s2 + $0x80] sm:$0xff]  ;;  %v89_v55 = vld [vmem:[%s645_s2 + $0x88] sm:$0xff]  ;;  %vm427_vm4 = vmmov 0   ;;  %vm199_vm5 = vcmask 818176   ;;  %vm277_vm6 = vcmask 25600  }
  0x13   :  { %387 = vmatpush3.bf16.msra.mxu1 %v386_v40  ;;  %v365_v53 = vpack.c.bf16 %v87_v51, %v86_v50  ;;  %v368_v56 = vpack.c.bf16 %v89_v55, %v88_v54  ;;  %v90_v57 = vld [vmem:[%s645_s2 + $0x90] sm:$0xff]  ;;  %v91_v58 = vld [vmem:[%s645_s2 + $0x98] sm:$0xff]  ;;  %v92_v60 = vld [vmem:[%s645_s2 + $0xa0] sm:$0xff]  ;;  %v68_v8 = vadd.f32 %v61_v5, %v51_v6  ;;  %340 = vmatprep.mubr.msk.f32.mxu1 %vm427_vm4, %v426_v9 }
  0x14   :  { %357 = vmatpush1.bf16.msra.mxu0 %v356_v35  ;;  %388 = vmatprep.subr.bf16.mxu1 %v425_v4  ;;  %v371_v59 = vpack.c.bf16 %v91_v58, %v90_v57  ;;  %v93_v61 = vld [vmem:[%s645_s2 + $0xa8] sm:$0xff]  ;;  %v94_v2 = vld [vmem:[%s645_s2 + $0xb0] sm:$0xff]  ;;  %v95_v3 = vld [vmem:[%s645_s2 + $0xb8] sm:$0xff] }
  0x15   :  { %358 = vmatprep.subr.bf16.mxu0 %v425_v4  ;;  %v374_v1 = vpack.c.bf16 %v93_v61, %v92_v60  ;;  %v377_v7 = vpack.c.bf16 %v95_v3, %v94_v2  ;;  %v96_v10 = vld [vmem:[%s645_s2 + $0xc0] sm:$0xff]  ;;  %v70_v11 = vmax.f32 %v68_v8, 0.0  ;;  %v189_v12 = vld [vmem:[%s647_s4 + $0x50] sm:$0xff]  ;;  %v190_v13 = vld [vmem:[%s647_s4 + $0x58] sm:$0xff] }
  0x16   :  { %v191_v14 = vld [vmem:[%s647_s4 + $0x60] sm:$0xf]  ;;  %s285_s4 = sshll.u32 %s428_s28, 4  ;;  %s286_s4 = int_to_ptr.vmem [resolvable:$true] %s285_s4 }
  0x17   :  { %390 = vmatpush3.bf16.msra.mxu1 %v389_v46  ;;  %v295_v15 = vld [vmem:[%s646_s3] ss:$0 sm:$0xff]  ;;  %s401_s29 = scalar_lea.vmem %s286_s4, 32  ;;  %p406_p1 = scmp.lt.s32.totalorder %s286_s4, %s286_s4 }
  0x18   :  { %360 = vmatpush1.bf16.msra.mxu0 %v359_v43  ;;  %391 = vmatprep.subr.bf16.mxu1 %v425_v4  ;;  %v297_v20 = vld [vmem:[%s648_s5] ss:$0 sm:$0xff]  ;;  %p402_p0 = scmp.ne.s32.totalorder %s286_s4, %s401_s29  ;;  %p407_p2 = scmp.lt.s32.totalorder %s401_s29, %s401_s29 }
  0x19   :  { %361 = vmatprep.subr.bf16.mxu0 %v425_v4 }
  0x1a   :  { %p408_p3 = por %p407_p2, %p406_p1 }
  0x1b   :  { %393 = vmatpush3.bf16.msra.mxu1 %v392_v52 }
  0x1c   :  { %363 = vmatpush1.bf16.msra.mxu0 %v362_v49  ;;  %394 = vmatprep.subr.bf16.mxu1 %v425_v4  ;;  %p409_p4 = pnand %p408_p3, %p402_p0 }
  0x1d   :  { %364 = vmatprep.subr.bf16.mxu0 %v425_v4 }
  0x20   :  { %366 = vmatpush1.bf16.msra.mxu0 %v365_v53 }
  0x21   :  { %367 = vmatprep.subr.bf16.mxu0 %v425_v4 }
  0x24   :  { %369 = vmatpush1.bf16.msra.mxu0 %v368_v56 }
  0x25   :  { %370 = vmatprep.subr.bf16.mxu0 %v425_v4 }
  0x28   :  { %372 = vmatpush1.bf16.msra.mxu0 %v371_v59 }
  0x29   :  { %373 = vmatprep.subr.bf16.mxu0 %v425_v4 }
  0x2c   :  { %375 = vmatpush1.bf16.msra.mxu0 %v374_v1 }
  0x2d   :  { %376 = vmatprep.subr.bf16.mxu0 %v425_v4  ;;  %v395_v4 = vpack.c.bf16 %v190_v13, %v189_v12 }
  0x2f   :  { %396 = vmatpush3.bf16.msra.mxu1 %v395_v4 }
  0x30   :  { %378 = vmatpush1.bf16.msra.mxu0 %v377_v7  ;;  %338 = vmatprep.subr.mxu1 %v426_v9 }
  0x31   :  { %156 = vmatprep.subr.mxu0 %v426_v9 }
  0x33   :  { %339 = vmatpush3.msk.msra.mxu1 %vm203_vm3, %v191_v14 }
  0x34   :  { %157 = vmatpush1.msra.mxu0 %v96_v10 }
  0x35   :  { %173 = vmatmul.mubr.f32.vlgmr.msra.gmra.mrb[0].mxu0 %v70_v11 }
 0x108   :  { %v174_v16 = vpop.f32.mrb[0].mxu0 }
 0x109   :  { %v175_v17 = vadd.f32 %v295_v15, %v174_v16  ;;  %v176_v18 = vpop.f32.mrb[1].mxu0 }
 0x10b   :  { %v178_v19 = vmax.f32 %v175_v17, 0.0 }
 0x10d   :  { %341 = vmatmul.mubr.msk.f32.vlgmr.msra.gmra.mrb[0].mxu1 %vm199_vm5, %v178_v19 }
 0x1e0   :  { %v273_v21 = vpop.f32.mrb[0].mxu1 }
 0x1e1   :  { %v274_v22 = vadd.f32 %v297_v20, %v273_v21  ;;  %v342_v23 = vpop.f32.mrb[1].mxu1 }
 0x1e3   :  { %278 = vst.msk [vmem:[#allocation2] sm:$0x3] %vm277_vm6, %v274_v22 }
 0x1e4   :  { %412 = shalt.err (!%p409_p4)
}
 0x1e5   :  { %s413_s7 = scalar_lea.hbm %s649_s6, 32 }
 0x1e6   :  { %p414_p5 = scmp.ne.s32.totalorder %s649_s6, %s413_s7  ;;  %p417_p6 = scmp.lt.u32.totalorder %s413_s7, %s649_s6 }
 0x1e8   :  { %p419_p7 = pnand %p417_p6, %p414_p5 }
 0x1ea   :  { %422 = shalt.err (!%p419_p7)
}
 0x1eb   :  { %288 = dma.vmem_to_hbm [thread:$0]  %s286_s4, 32, %s649_s6, [#allocation3]  }
 0x1ec   :  { %423 = dma.done.wait [#allocation3], 32  }
 0x1ed   :  { %424 = vsyncadd [#allocation3], 4294967264 }
 0x1ee   :  { %292 = vsyncpa [#allocation3], 1 }

</bundles_post_ra>
